<compile_context>
chip_gen: v5e
topology: v5e:2x2
jax: 0.10.0
libtpu: 0.0.40
codegen_flags: <defaults>
</compile_context>

<pallas_src>
import numpy as np

import jax
import jax.numpy as jnp
from jax.experimental import pallas as pl
from jax.experimental.pallas import tpu as pltpu


_LAYER_CFG = [
    # (c_in, c_out, stride, pad, activation)
    (8, 32, 2, 1, "leaky"),
    (32, 64, 2, 1, "leaky"),
    (64, 128, 2, 1, "leaky"),
    (128, 1, 1, 1, "sigmoid"),
]
_KH = _KW = 4
_ALPHA = 0.2          # LeakyReLU negative slope
_COUT_PAD = 128       # lane padding for the final 1-channel layer


# ----------------------------------------------------------------------------
# Host-side helpers (trace-time only)
# ----------------------------------------------------------------------------
def _selection_matrix(h_in, w_in, kh, kw, stride, pad):
    """0/1 matrix S, shape (kh*kw*Ho*Wo, Hin*Win).

    S[t*Ho*Wo + p, q] == 1 iff kernel tap t at output position p reads the
    (unpadded) input position q; rows whose tap falls inside the zero padding
    are all zero.  Then  patches = S @ X_flat  is the im2col matrix laid out
    as (tap, out_pos) x C_in.
    """
    h_out = (h_in + 2 * pad - kh) // stride + 1
    w_out = (w_in + 2 * pad - kw) // stride + 1
    s = np.zeros((kh * kw * h_out * w_out, h_in * w_in), np.float32)
    for ti in range(kh):
        for tj in range(kw):
            t = ti * kw + tj
            for oy in range(h_out):
                iy = oy * stride + ti - pad
                if not 0 <= iy < h_in:
                    continue
                for ox in range(w_out):
                    ix = ox * stride + tj - pad
                    if 0 <= ix < w_in:
                        s[t * h_out * w_out + oy * w_out + ox,
                          iy * w_in + ix] = 1.0
    return s, (h_out, w_out)


# ----------------------------------------------------------------------------
# Fused Pallas kernel: 4x (conv -> activation), all in VMEM
# ----------------------------------------------------------------------------
def _conv_block(xf, s_ref, w_ref, b_ref, act):
    """One conv layer.  xf: (Hin*Win, Cin) bf16 -> (Ho*Wo, Cout)."""
    taps, _, cout = w_ref.shape
    howo = s_ref.shape[0] // taps
    # In-kernel im2col (incl. zero padding) as a 0/1-selection matmul.
    patches = jnp.dot(s_ref[...], xf,
                      preferred_element_type=jnp.float32).astype(jnp.bfloat16)
    acc = jnp.zeros((howo, cout), jnp.float32)
    for t in range(taps):                                   # unrolled 16 taps
        acc = acc + jnp.dot(patches[t * howo:(t + 1) * howo, :], w_ref[t],
                            preferred_element_type=jnp.float32)
    y = acc + b_ref[...]                                    # f32 epilogue
    if act == "leaky":
        return jnp.maximum(y, _ALPHA * y).astype(jnp.bfloat16)
    return jax.nn.sigmoid(y)                                # final layer, f32


def _disc_kernel(x_ref, s1, s2, s3, s4, w1, w2, w3, w4,
                 b1, b2, b3, b4, o_ref):
    y = _conv_block(x_ref[0], s1, w1, b1, "leaky")          # (H/2*W/2, 32)
    y = _conv_block(y, s2, w2, b2, "leaky")                 # (H/4*W/4, 64)
    y = _conv_block(y, s3, w3, b3, "leaky")                 # (H/8*W/8, 128)
    y = _conv_block(y, s4, w4, b4, "sigmoid")               # (1, _COUT_PAD)
    o_ref[...] = y.reshape(1, 1, _COUT_PAD).astype(o_ref.dtype)


# ----------------------------------------------------------------------------
# Model: parameter init + forward
# ----------------------------------------------------------------------------
def init_params(key):
    """PyTorch-default Conv2d init: U(-1/sqrt(fan_in), 1/sqrt(fan_in))."""
    params = []
    for c_in, c_out, _, _, _ in _LAYER_CFG:
        key, kw_, kb_ = jax.random.split(key, 3)
        fan_in = c_in * _KH * _KW
        bound = 1.0 / float(np.sqrt(fan_in))
        w = jax.random.uniform(kw_, (c_out, c_in, _KH, _KW), jnp.float32,
                               -bound, bound)
        b = jax.random.uniform(kb_, (c_out,), jnp.float32, -bound, bound)
        params.append((w, b))
    return params


@jax.jit
def simple_discriminator(noisy, clean, params):
    """noisy, clean: (B, 4, H, W) f32 NCHW -> (B, 1, 1, 1) f32."""
    x = jnp.concatenate([noisy, clean], axis=1)             # (B, 8, H, W)
    B, C, H, W = x.shape
    x_flat = jnp.transpose(x, (0, 2, 3, 1)).reshape(B, H * W, C)
    x_flat = x_flat.astype(jnp.bfloat16)                    # bf16 MXU inputs

    sels, wmats, bmats = [], [], []
    h, w = H, W
    for (c_in, c_out, stride, pad, _), (wt, bi) in zip(_LAYER_CFG, params):
        s_np, (h, w) = _selection_matrix(h, w, _KH, _KW, stride, pad)
        sels.append(jnp.asarray(s_np, jnp.bfloat16))
        # (Cout, Cin, kh, kw) -> (kh*kw, Cin, Cout): one (Cin, Cout) slab per tap
        wm = jnp.transpose(wt, (2, 3, 1, 0)).reshape(_KH * _KW, c_in, c_out)
        bm = bi.reshape(1, c_out)
        if c_out == 1:  # final layer: pad out-channels to a full lane width
            wm = jnp.pad(wm, ((0, 0), (0, 0), (0, _COUT_PAD - c_out)))
            bm = jnp.pad(bm, ((0, 0), (0, _COUT_PAD - c_out)))
        wmats.append(wm.astype(jnp.bfloat16))
        bmats.append(bm.astype(jnp.float32))

    # Constant index_maps -> these operands are DMA'd once and stay resident.
    resident2 = lambda a: pl.BlockSpec(a.shape, lambda b: (0, 0))
    resident3 = lambda a: pl.BlockSpec(a.shape, lambda b: (0, 0, 0))
    in_specs = ([pl.BlockSpec((1, H * W, C), lambda b: (b, 0, 0))]
                + [resident2(s) for s in sels]
                + [resident3(wm) for wm in wmats]
                + [resident2(bm) for bm in bmats])

    out = pl.pallas_call(
        _disc_kernel,
        out_shape=jax.ShapeDtypeStruct((B, 1, _COUT_PAD), jnp.float32),
        grid=(B,),
        in_specs=in_specs,
        out_specs=pl.BlockSpec((1, 1, _COUT_PAD), lambda b: (b, 0, 0)),
        compiler_params=pltpu.CompilerParams(
            dimension_semantics=("parallel",)),
    )(x_flat, *sels, *wmats, *bmats)

    return out[:, :, 0].reshape(B, 1, 1, 1)


def _reference(noisy, clean, params):
    """Pure-JAX f32 reference matching the PyTorch module."""
    x = jnp.concatenate([noisy, clean], axis=1)
    for (c_in, c_out, stride, pad, act), (w, b) in zip(_LAYER_CFG, params):
        x = jax.lax.conv_general_dilated(
            x, w, window_strides=(stride, stride),
            padding=[(pad, pad), (pad, pad)],
            dimension_numbers=("NCHW", "OIHW", "NCHW"))
        x = x + b.reshape(1, c_out, 1, 1)
        x = jnp.maximum(x, _ALPHA * x) if act == "leaky" else jax.nn.sigmoid(x)
    return x


if __name__ == "__main__":
    key = jax.random.PRNGKey(0)
    kp, kn, kc = jax.random.split(key, 3)
    params = init_params(kp)

    noisy = jax.random.normal(kn, (2, 4, 16, 16), jnp.float32)
    clean = jax.random.normal(kc, (2, 4, 16, 16), jnp.float32)

    out = simple_discriminator(noisy, clean, params)
    out = jax.block_until_ready(out)

    assert out.shape == (2, 1, 1, 1), out.shape
    assert bool(jnp.all((out >= 0.0) & (out <= 1.0)))
    ref = _reference(noisy, clean, params)
    assert bool(jnp.allclose(out, ref, atol=0.1)), (out, ref)  # bf16 matmul tol
    print("KERNEL_OK")
</pallas_src>

<mosaic_0001>
module attributes {stable_mosaic.version = 11 : i64} {
  func.func @_disc_kernel(%arg0: i32, %arg1: memref<1x256x8xbf16, #tpu.memory_space<vmem>>, %arg2: memref<1024x256xbf16, #tpu.memory_space<vmem>>, %arg3: memref<256x64xbf16, #tpu.memory_space<vmem>>, %arg4: memref<64x16xbf16, #tpu.memory_space<vmem>>, %arg5: memref<16x4xbf16, #tpu.memory_space<vmem>>, %arg6: memref<16x8x32xbf16, #tpu.memory_space<vmem>>, %arg7: memref<16x32x64xbf16, #tpu.memory_space<vmem>>, %arg8: memref<16x64x128xbf16, #tpu.memory_space<vmem>>, %arg9: memref<16x128x128xbf16, #tpu.memory_space<vmem>>, %arg10: memref<1x32xf32, #tpu.memory_space<vmem>>, %arg11: memref<1x64xf32, #tpu.memory_space<vmem>>, %arg12: memref<1x128xf32, #tpu.memory_space<vmem>>, %arg13: memref<1x128xf32, #tpu.memory_space<vmem>>, %arg14: memref<1x1x128xf32, #tpu.memory_space<vmem>>) attributes {dimension_semantics = [#tpu.dimension_semantics<parallel>], iteration_bounds = array<i64: 2>, scalar_prefetch = 0 : i64, scratch_operands = 0 : i64, tpu.core_type = #tpu.core_type<tc>, window_params = [{transform_indices = @transform_0, window_bounds = array<i64: 1, 256, 8>}, {pipeline_mode = #tpu.pipeline_mode<synchronous>, transform_indices = @transform_1, window_bounds = array<i64: 1024, 256>}, {pipeline_mode = #tpu.pipeline_mode<synchronous>, transform_indices = @transform_2, window_bounds = array<i64: 256, 64>}, {pipeline_mode = #tpu.pipeline_mode<synchronous>, transform_indices = @transform_3, window_bounds = array<i64: 64, 16>}, {pipeline_mode = #tpu.pipeline_mode<synchronous>, transform_indices = @transform_4, window_bounds = array<i64: 16, 4>}, {pipeline_mode = #tpu.pipeline_mode<synchronous>, transform_indices = @transform_5, window_bounds = array<i64: 16, 8, 32>}, {pipeline_mode = #tpu.pipeline_mode<synchronous>, transform_indices = @transform_6, window_bounds = array<i64: 16, 32, 64>}, {pipeline_mode = #tpu.pipeline_mode<synchronous>, transform_indices = @transform_7, window_bounds = array<i64: 16, 64, 128>}, {pipeline_mode = #tpu.pipeline_mode<synchronous>, transform_indices = @transform_8, window_bounds = array<i64: 16, 128, 128>}, {pipeline_mode = #tpu.pipeline_mode<synchronous>, transform_indices = @transform_9, window_bounds = array<i64: 1, 32>}, {pipeline_mode = #tpu.pipeline_mode<synchronous>, transform_indices = @transform_10, window_bounds = array<i64: 1, 64>}, {pipeline_mode = #tpu.pipeline_mode<synchronous>, transform_indices = @transform_11, window_bounds = array<i64: 1, 128>}, {pipeline_mode = #tpu.pipeline_mode<synchronous>, transform_indices = @transform_12, window_bounds = array<i64: 1, 128>}, {transform_indices = @transform_13, window_bounds = array<i64: 1, 1, 128>}]} {
    %c0 = arith.constant 0 : index
    %c0_0 = arith.constant 0 : index
    %c0_1 = arith.constant 0 : index
    %0 = vector.load %arg1[%c0, %c0_0, %c0_1] : memref<1x256x8xbf16, #tpu.memory_space<vmem>>, vector<1x256x8xbf16>
    %1 = vector.shape_cast %0 : vector<1x256x8xbf16> to vector<256x8xbf16>
    %c0_2 = arith.constant 0 : index
    %c0_3 = arith.constant 0 : index
    %2 = vector.load %arg2[%c0_2, %c0_3] : memref<1024x256xbf16, #tpu.memory_space<vmem>>, vector<1024x256xbf16>
    %cst = arith.constant dense<0.000000e+00> : vector<1024x8xf32>
    %3 = tpu.matmul %2, %1, %cst {dimension_numbers = #tpu.dot_dimension_numbers<[1], [0], [0], [1], [0, 0, 1, 1], [], []>} : vector<1024x256xbf16>, vector<256x8xbf16>, vector<1024x8xf32> -> vector<1024x8xf32>
    %4 = arith.truncf %3 : vector<1024x8xf32> to vector<1024x8xbf16>
    %cst_4 = arith.constant 0.000000e+00 : f32
    %5 = vector.broadcast %cst_4 : f32 to vector<64x32xf32>
    %6 = vector.extract_strided_slice %4 {offsets = [0, 0], sizes = [64, 8], strides = [1, 1]} : vector<1024x8xbf16> to vector<64x8xbf16>
    %c0_5 = arith.constant 0 : index
    %c0_6 = arith.constant 0 : index
    %c0_7 = arith.constant 0 : index
    %7 = vector.load %arg6[%c0_5, %c0_6, %c0_7] : memref<16x8x32xbf16, #tpu.memory_space<vmem>>, vector<1x8x32xbf16>
    %8 = vector.shape_cast %7 : vector<1x8x32xbf16> to vector<8x32xbf16>
    %cst_8 = arith.constant dense<0.000000e+00> : vector<64x32xf32>
    %9 = tpu.matmul %6, %8, %cst_8 {dimension_numbers = #tpu.dot_dimension_numbers<[1], [0], [0], [1], [0, 0, 1, 1], [], []>} : vector<64x8xbf16>, vector<8x32xbf16>, vector<64x32xf32> -> vector<64x32xf32>
    %10 = arith.addf %5, %9 : vector<64x32xf32>
    %11 = vector.extract_strided_slice %4 {offsets = [64, 0], sizes = [64, 8], strides = [1, 1]} : vector<1024x8xbf16> to vector<64x8xbf16>
    %c1 = arith.constant 1 : index
    %c0_9 = arith.constant 0 : index
    %c0_10 = arith.constant 0 : index
    %12 = vector.load %arg6[%c1, %c0_9, %c0_10] : memref<16x8x32xbf16, #tpu.memory_space<vmem>>, vector<1x8x32xbf16>
    %13 = vector.shape_cast %12 : vector<1x8x32xbf16> to vector<8x32xbf16>
    %cst_11 = arith.constant dense<0.000000e+00> : vector<64x32xf32>
    %14 = tpu.matmul %11, %13, %cst_11 {dimension_numbers = #tpu.dot_dimension_numbers<[1], [0], [0], [1], [0, 0, 1, 1], [], []>} : vector<64x8xbf16>, vector<8x32xbf16>, vector<64x32xf32> -> vector<64x32xf32>
    %15 = arith.addf %10, %14 : vector<64x32xf32>
    %16 = vector.extract_strided_slice %4 {offsets = [128, 0], sizes = [64, 8], strides = [1, 1]} : vector<1024x8xbf16> to vector<64x8xbf16>
    %c2 = arith.constant 2 : index
    %c0_12 = arith.constant 0 : index
    %c0_13 = arith.constant 0 : index
    %17 = vector.load %arg6[%c2, %c0_12, %c0_13] : memref<16x8x32xbf16, #tpu.memory_space<vmem>>, vector<1x8x32xbf16>
    %18 = vector.shape_cast %17 : vector<1x8x32xbf16> to vector<8x32xbf16>
    %cst_14 = arith.constant dense<0.000000e+00> : vector<64x32xf32>
    %19 = tpu.matmul %16, %18, %cst_14 {dimension_numbers = #tpu.dot_dimension_numbers<[1], [0], [0], [1], [0, 0, 1, 1], [], []>} : vector<64x8xbf16>, vector<8x32xbf16>, vector<64x32xf32> -> vector<64x32xf32>
    %20 = arith.addf %15, %19 : vector<64x32xf32>
    %21 = vector.extract_strided_slice %4 {offsets = [192, 0], sizes = [64, 8], strides = [1, 1]} : vector<1024x8xbf16> to vector<64x8xbf16>
    %c3 = arith.constant 3 : index
    %c0_15 = arith.constant 0 : index
    %c0_16 = arith.constant 0 : index
    %22 = vector.load %arg6[%c3, %c0_15, %c0_16] : memref<16x8x32xbf16, #tpu.memory_space<vmem>>, vector<1x8x32xbf16>
    %23 = vector.shape_cast %22 : vector<1x8x32xbf16> to vector<8x32xbf16>
    %cst_17 = arith.constant dense<0.000000e+00> : vector<64x32xf32>
    %24 = tpu.matmul %21, %23, %cst_17 {dimension_numbers = #tpu.dot_dimension_numbers<[1], [0], [0], [1], [0, 0, 1, 1], [], []>} : vector<64x8xbf16>, vector<8x32xbf16>, vector<64x32xf32> -> vector<64x32xf32>
    %25 = arith.addf %20, %24 : vector<64x32xf32>
    %26 = vector.extract_strided_slice %4 {offsets = [256, 0], sizes = [64, 8], strides = [1, 1]} : vector<1024x8xbf16> to vector<64x8xbf16>
    %c4 = arith.constant 4 : index
    %c0_18 = arith.constant 0 : index
    %c0_19 = arith.constant 0 : index
    %27 = vector.load %arg6[%c4, %c0_18, %c0_19] : memref<16x8x32xbf16, #tpu.memory_space<vmem>>, vector<1x8x32xbf16>
    %28 = vector.shape_cast %27 : vector<1x8x32xbf16> to vector<8x32xbf16>
    %cst_20 = arith.constant dense<0.000000e+00> : vector<64x32xf32>
    %29 = tpu.matmul %26, %28, %cst_20 {dimension_numbers = #tpu.dot_dimension_numbers<[1], [0], [0], [1], [0, 0, 1, 1], [], []>} : vector<64x8xbf16>, vector<8x32xbf16>, vector<64x32xf32> -> vector<64x32xf32>
    %30 = arith.addf %25, %29 : vector<64x32xf32>
    %31 = vector.extract_strided_slice %4 {offsets = [320, 0], sizes = [64, 8], strides = [1, 1]} : vector<1024x8xbf16> to vector<64x8xbf16>
    %c5 = arith.constant 5 : index
    %c0_21 = arith.constant 0 : index
    %c0_22 = arith.constant 0 : index
    %32 = vector.load %arg6[%c5, %c0_21, %c0_22] : memref<16x8x32xbf16, #tpu.memory_space<vmem>>, vector<1x8x32xbf16>
    %33 = vector.shape_cast %32 : vector<1x8x32xbf16> to vector<8x32xbf16>
    %cst_23 = arith.constant dense<0.000000e+00> : vector<64x32xf32>
    %34 = tpu.matmul %31, %33, %cst_23 {dimension_numbers = #tpu.dot_dimension_numbers<[1], [0], [0], [1], [0, 0, 1, 1], [], []>} : vector<64x8xbf16>, vector<8x32xbf16>, vector<64x32xf32> -> vector<64x32xf32>
    %35 = arith.addf %30, %34 : vector<64x32xf32>
    %36 = vector.extract_strided_slice %4 {offsets = [384, 0], sizes = [64, 8], strides = [1, 1]} : vector<1024x8xbf16> to vector<64x8xbf16>
    %c6 = arith.constant 6 : index
    %c0_24 = arith.constant 0 : index
    %c0_25 = arith.constant 0 : index
    %37 = vector.load %arg6[%c6, %c0_24, %c0_25] : memref<16x8x32xbf16, #tpu.memory_space<vmem>>, vector<1x8x32xbf16>
    %38 = vector.shape_cast %37 : vector<1x8x32xbf16> to vector<8x32xbf16>
    %cst_26 = arith.constant dense<0.000000e+00> : vector<64x32xf32>
    %39 = tpu.matmul %36, %38, %cst_26 {dimension_numbers = #tpu.dot_dimension_numbers<[1], [0], [0], [1], [0, 0, 1, 1], [], []>} : vector<64x8xbf16>, vector<8x32xbf16>, vector<64x32xf32> -> vector<64x32xf32>
    %40 = arith.addf %35, %39 : vector<64x32xf32>
    %41 = vector.extract_strided_slice %4 {offsets = [448, 0], sizes = [64, 8], strides = [1, 1]} : vector<1024x8xbf16> to vector<64x8xbf16>
    %c7 = arith.constant 7 : index
    %c0_27 = arith.constant 0 : index
    %c0_28 = arith.constant 0 : index
    %42 = vector.load %arg6[%c7, %c0_27, %c0_28] : memref<16x8x32xbf16, #tpu.memory_space<vmem>>, vector<1x8x32xbf16>
    %43 = vector.shape_cast %42 : vector<1x8x32xbf16> to vector<8x32xbf16>
    %cst_29 = arith.constant dense<0.000000e+00> : vector<64x32xf32>
    %44 = tpu.matmul %41, %43, %cst_29 {dimension_numbers = #tpu.dot_dimension_numbers<[1], [0], [0], [1], [0, 0, 1, 1], [], []>} : vector<64x8xbf16>, vector<8x32xbf16>, vector<64x32xf32> -> vector<64x32xf32>
    %45 = arith.addf %40, %44 : vector<64x32xf32>
    %46 = vector.extract_strided_slice %4 {offsets = [512, 0], sizes = [64, 8], strides = [1, 1]} : vector<1024x8xbf16> to vector<64x8xbf16>
    %c8 = arith.constant 8 : index
    %c0_30 = arith.constant 0 : index
    %c0_31 = arith.constant 0 : index
    %47 = vector.load %arg6[%c8, %c0_30, %c0_31] : memref<16x8x32xbf16, #tpu.memory_space<vmem>>, vector<1x8x32xbf16>
    %48 = vector.shape_cast %47 : vector<1x8x32xbf16> to vector<8x32xbf16>
    %cst_32 = arith.constant dense<0.000000e+00> : vector<64x32xf32>
    %49 = tpu.matmul %46, %48, %cst_32 {dimension_numbers = #tpu.dot_dimension_numbers<[1], [0], [0], [1], [0, 0, 1, 1], [], []>} : vector<64x8xbf16>, vector<8x32xbf16>, vector<64x32xf32> -> vector<64x32xf32>
    %50 = arith.addf %45, %49 : vector<64x32xf32>
    %51 = vector.extract_strided_slice %4 {offsets = [576, 0], sizes = [64, 8], strides = [1, 1]} : vector<1024x8xbf16> to vector<64x8xbf16>
    %c9 = arith.constant 9 : index
    %c0_33 = arith.constant 0 : index
    %c0_34 = arith.constant 0 : index
    %52 = vector.load %arg6[%c9, %c0_33, %c0_34] : memref<16x8x32xbf16, #tpu.memory_space<vmem>>, vector<1x8x32xbf16>
    %53 = vector.shape_cast %52 : vector<1x8x32xbf16> to vector<8x32xbf16>
    %cst_35 = arith.constant dense<0.000000e+00> : vector<64x32xf32>
    %54 = tpu.matmul %51, %53, %cst_35 {dimension_numbers = #tpu.dot_dimension_numbers<[1], [0], [0], [1], [0, 0, 1, 1], [], []>} : vector<64x8xbf16>, vector<8x32xbf16>, vector<64x32xf32> -> vector<64x32xf32>
    %55 = arith.addf %50, %54 : vector<64x32xf32>
    %56 = vector.extract_strided_slice %4 {offsets = [640, 0], sizes = [64, 8], strides = [1, 1]} : vector<1024x8xbf16> to vector<64x8xbf16>
    %c10 = arith.constant 10 : index
    %c0_36 = arith.constant 0 : index
    %c0_37 = arith.constant 0 : index
    %57 = vector.load %arg6[%c10, %c0_36, %c0_37] : memref<16x8x32xbf16, #tpu.memory_space<vmem>>, vector<1x8x32xbf16>
    %58 = vector.shape_cast %57 : vector<1x8x32xbf16> to vector<8x32xbf16>
    %cst_38 = arith.constant dense<0.000000e+00> : vector<64x32xf32>
    %59 = tpu.matmul %56, %58, %cst_38 {dimension_numbers = #tpu.dot_dimension_numbers<[1], [0], [0], [1], [0, 0, 1, 1], [], []>} : vector<64x8xbf16>, vector<8x32xbf16>, vector<64x32xf32> -> vector<64x32xf32>
    %60 = arith.addf %55, %59 : vector<64x32xf32>
    %61 = vector.extract_strided_slice %4 {offsets = [704, 0], sizes = [64, 8], strides = [1, 1]} : vector<1024x8xbf16> to vector<64x8xbf16>
    %c11 = arith.constant 11 : index
    %c0_39 = arith.constant 0 : index
    %c0_40 = arith.constant 0 : index
    %62 = vector.load %arg6[%c11, %c0_39, %c0_40] : memref<16x8x32xbf16, #tpu.memory_space<vmem>>, vector<1x8x32xbf16>
    %63 = vector.shape_cast %62 : vector<1x8x32xbf16> to vector<8x32xbf16>
    %cst_41 = arith.constant dense<0.000000e+00> : vector<64x32xf32>
    %64 = tpu.matmul %61, %63, %cst_41 {dimension_numbers = #tpu.dot_dimension_numbers<[1], [0], [0], [1], [0, 0, 1, 1], [], []>} : vector<64x8xbf16>, vector<8x32xbf16>, vector<64x32xf32> -> vector<64x32xf32>
    %65 = arith.addf %60, %64 : vector<64x32xf32>
    %66 = vector.extract_strided_slice %4 {offsets = [768, 0], sizes = [64, 8], strides = [1, 1]} : vector<1024x8xbf16> to vector<64x8xbf16>
    %c12 = arith.constant 12 : index
    %c0_42 = arith.constant 0 : index
    %c0_43 = arith.constant 0 : index
    %67 = vector.load %arg6[%c12, %c0_42, %c0_43] : memref<16x8x32xbf16, #tpu.memory_space<vmem>>, vector<1x8x32xbf16>
    %68 = vector.shape_cast %67 : vector<1x8x32xbf16> to vector<8x32xbf16>
    %cst_44 = arith.constant dense<0.000000e+00> : vector<64x32xf32>
    %69 = tpu.matmul %66, %68, %cst_44 {dimension_numbers = #tpu.dot_dimension_numbers<[1], [0], [0], [1], [0, 0, 1, 1], [], []>} : vector<64x8xbf16>, vector<8x32xbf16>, vector<64x32xf32> -> vector<64x32xf32>
    %70 = arith.addf %65, %69 : vector<64x32xf32>
    %71 = vector.extract_strided_slice %4 {offsets = [832, 0], sizes = [64, 8], strides = [1, 1]} : vector<1024x8xbf16> to vector<64x8xbf16>
    %c13 = arith.constant 13 : index
    %c0_45 = arith.constant 0 : index
    %c0_46 = arith.constant 0 : index
    %72 = vector.load %arg6[%c13, %c0_45, %c0_46] : memref<16x8x32xbf16, #tpu.memory_space<vmem>>, vector<1x8x32xbf16>
    %73 = vector.shape_cast %72 : vector<1x8x32xbf16> to vector<8x32xbf16>
    %cst_47 = arith.constant dense<0.000000e+00> : vector<64x32xf32>
    %74 = tpu.matmul %71, %73, %cst_47 {dimension_numbers = #tpu.dot_dimension_numbers<[1], [0], [0], [1], [0, 0, 1, 1], [], []>} : vector<64x8xbf16>, vector<8x32xbf16>, vector<64x32xf32> -> vector<64x32xf32>
    %75 = arith.addf %70, %74 : vector<64x32xf32>
    %76 = vector.extract_strided_slice %4 {offsets = [896, 0], sizes = [64, 8], strides = [1, 1]} : vector<1024x8xbf16> to vector<64x8xbf16>
    %c14 = arith.constant 14 : index
    %c0_48 = arith.constant 0 : index
    %c0_49 = arith.constant 0 : index
    %77 = vector.load %arg6[%c14, %c0_48, %c0_49] : memref<16x8x32xbf16, #tpu.memory_space<vmem>>, vector<1x8x32xbf16>
    %78 = vector.shape_cast %77 : vector<1x8x32xbf16> to vector<8x32xbf16>
    %cst_50 = arith.constant dense<0.000000e+00> : vector<64x32xf32>
    %79 = tpu.matmul %76, %78, %cst_50 {dimension_numbers = #tpu.dot_dimension_numbers<[1], [0], [0], [1], [0, 0, 1, 1], [], []>} : vector<64x8xbf16>, vector<8x32xbf16>, vector<64x32xf32> -> vector<64x32xf32>
    %80 = arith.addf %75, %79 : vector<64x32xf32>
    %81 = vector.extract_strided_slice %4 {offsets = [960, 0], sizes = [64, 8], strides = [1, 1]} : vector<1024x8xbf16> to vector<64x8xbf16>
    %c15 = arith.constant 15 : index
    %c0_51 = arith.constant 0 : index
    %c0_52 = arith.constant 0 : index
    %82 = vector.load %arg6[%c15, %c0_51, %c0_52] : memref<16x8x32xbf16, #tpu.memory_space<vmem>>, vector<1x8x32xbf16>
    %83 = vector.shape_cast %82 : vector<1x8x32xbf16> to vector<8x32xbf16>
    %cst_53 = arith.constant dense<0.000000e+00> : vector<64x32xf32>
    %84 = tpu.matmul %81, %83, %cst_53 {dimension_numbers = #tpu.dot_dimension_numbers<[1], [0], [0], [1], [0, 0, 1, 1], [], []>} : vector<64x8xbf16>, vector<8x32xbf16>, vector<64x32xf32> -> vector<64x32xf32>
    %85 = arith.addf %80, %84 : vector<64x32xf32>
    %c0_54 = arith.constant 0 : index
    %c0_55 = arith.constant 0 : index
    %86 = vector.load %arg10[%c0_54, %c0_55] : memref<1x32xf32, #tpu.memory_space<vmem>>, vector<1x32xf32>
    %87 = vector.broadcast %86 : vector<1x32xf32> to vector<64x32xf32>
    %88 = arith.addf %85, %87 : vector<64x32xf32>
    %cst_56 = arith.constant 2.000000e-01 : f32
    %89 = vector.broadcast %cst_56 : f32 to vector<64x32xf32>
    %90 = arith.mulf %89, %88 : vector<64x32xf32>
    %91 = arith.maximumf %88, %90 : vector<64x32xf32>
    %92 = arith.truncf %91 : vector<64x32xf32> to vector<64x32xbf16>
    %c0_57 = arith.constant 0 : index
    %c0_58 = arith.constant 0 : index
    %93 = vector.load %arg3[%c0_57, %c0_58] : memref<256x64xbf16, #tpu.memory_space<vmem>>, vector<256x64xbf16>
    %cst_59 = arith.constant dense<0.000000e+00> : vector<256x32xf32>
    %94 = tpu.matmul %93, %92, %cst_59 {dimension_numbers = #tpu.dot_dimension_numbers<[1], [0], [0], [1], [0, 0, 1, 1], [], []>} : vector<256x64xbf16>, vector<64x32xbf16>, vector<256x32xf32> -> vector<256x32xf32>
    %95 = arith.truncf %94 : vector<256x32xf32> to vector<256x32xbf16>
    %cst_60 = arith.constant 0.000000e+00 : f32
    %96 = vector.broadcast %cst_60 : f32 to vector<16x64xf32>
    %97 = vector.extract_strided_slice %95 {offsets = [0, 0], sizes = [16, 32], strides = [1, 1]} : vector<256x32xbf16> to vector<16x32xbf16>
    %c0_61 = arith.constant 0 : index
    %c0_62 = arith.constant 0 : index
    %c0_63 = arith.constant 0 : index
    %98 = vector.load %arg7[%c0_61, %c0_62, %c0_63] : memref<16x32x64xbf16, #tpu.memory_space<vmem>>, vector<1x32x64xbf16>
    %99 = vector.shape_cast %98 : vector<1x32x64xbf16> to vector<32x64xbf16>
    %cst_64 = arith.constant dense<0.000000e+00> : vector<16x64xf32>
    %100 = tpu.matmul %97, %99, %cst_64 {dimension_numbers = #tpu.dot_dimension_numbers<[1], [0], [0], [1], [0, 0, 1, 1], [], []>} : vector<16x32xbf16>, vector<32x64xbf16>, vector<16x64xf32> -> vector<16x64xf32>
    %101 = arith.addf %96, %100 : vector<16x64xf32>
    %102 = vector.extract_strided_slice %95 {offsets = [16, 0], sizes = [16, 32], strides = [1, 1]} : vector<256x32xbf16> to vector<16x32xbf16>
    %c1_65 = arith.constant 1 : index
    %c0_66 = arith.constant 0 : index
    %c0_67 = arith.constant 0 : index
    %103 = vector.load %arg7[%c1_65, %c0_66, %c0_67] : memref<16x32x64xbf16, #tpu.memory_space<vmem>>, vector<1x32x64xbf16>
    %104 = vector.shape_cast %103 : vector<1x32x64xbf16> to vector<32x64xbf16>
    %cst_68 = arith.constant dense<0.000000e+00> : vector<16x64xf32>
    %105 = tpu.matmul %102, %104, %cst_68 {dimension_numbers = #tpu.dot_dimension_numbers<[1], [0], [0], [1], [0, 0, 1, 1], [], []>} : vector<16x32xbf16>, vector<32x64xbf16>, vector<16x64xf32> -> vector<16x64xf32>
    %106 = arith.addf %101, %105 : vector<16x64xf32>
    %107 = vector.extract_strided_slice %95 {offsets = [32, 0], sizes = [16, 32], strides = [1, 1]} : vector<256x32xbf16> to vector<16x32xbf16>
    %c2_69 = arith.constant 2 : index
    %c0_70 = arith.constant 0 : index
    %c0_71 = arith.constant 0 : index
    %108 = vector.load %arg7[%c2_69, %c0_70, %c0_71] : memref<16x32x64xbf16, #tpu.memory_space<vmem>>, vector<1x32x64xbf16>
    %109 = vector.shape_cast %108 : vector<1x32x64xbf16> to vector<32x64xbf16>
    %cst_72 = arith.constant dense<0.000000e+00> : vector<16x64xf32>
    %110 = tpu.matmul %107, %109, %cst_72 {dimension_numbers = #tpu.dot_dimension_numbers<[1], [0], [0], [1], [0, 0, 1, 1], [], []>} : vector<16x32xbf16>, vector<32x64xbf16>, vector<16x64xf32> -> vector<16x64xf32>
    %111 = arith.addf %106, %110 : vector<16x64xf32>
    %112 = vector.extract_strided_slice %95 {offsets = [48, 0], sizes = [16, 32], strides = [1, 1]} : vector<256x32xbf16> to vector<16x32xbf16>
    %c3_73 = arith.constant 3 : index
    %c0_74 = arith.constant 0 : index
    %c0_75 = arith.constant 0 : index
    %113 = vector.load %arg7[%c3_73, %c0_74, %c0_75] : memref<16x32x64xbf16, #tpu.memory_space<vmem>>, vector<1x32x64xbf16>
    %114 = vector.shape_cast %113 : vector<1x32x64xbf16> to vector<32x64xbf16>
    %cst_76 = arith.constant dense<0.000000e+00> : vector<16x64xf32>
    %115 = tpu.matmul %112, %114, %cst_76 {dimension_numbers = #tpu.dot_dimension_numbers<[1], [0], [0], [1], [0, 0, 1, 1], [], []>} : vector<16x32xbf16>, vector<32x64xbf16>, vector<16x64xf32> -> vector<16x64xf32>
    %116 = arith.addf %111, %115 : vector<16x64xf32>
    %117 = vector.extract_strided_slice %95 {offsets = [64, 0], sizes = [16, 32], strides = [1, 1]} : vector<256x32xbf16> to vector<16x32xbf16>
    %c4_77 = arith.constant 4 : index
    %c0_78 = arith.constant 0 : index
    %c0_79 = arith.constant 0 : index
    %118 = vector.load %arg7[%c4_77, %c0_78, %c0_79] : memref<16x32x64xbf16, #tpu.memory_space<vmem>>, vector<1x32x64xbf16>
    %119 = vector.shape_cast %118 : vector<1x32x64xbf16> to vector<32x64xbf16>
    %cst_80 = arith.constant dense<0.000000e+00> : vector<16x64xf32>
    %120 = tpu.matmul %117, %119, %cst_80 {dimension_numbers = #tpu.dot_dimension_numbers<[1], [0], [0], [1], [0, 0, 1, 1], [], []>} : vector<16x32xbf16>, vector<32x64xbf16>, vector<16x64xf32> -> vector<16x64xf32>
    %121 = arith.addf %116, %120 : vector<16x64xf32>
    %122 = vector.extract_strided_slice %95 {offsets = [80, 0], sizes = [16, 32], strides = [1, 1]} : vector<256x32xbf16> to vector<16x32xbf16>
    %c5_81 = arith.constant 5 : index
    %c0_82 = arith.constant 0 : index
    %c0_83 = arith.constant 0 : index
    %123 = vector.load %arg7[%c5_81, %c0_82, %c0_83] : memref<16x32x64xbf16, #tpu.memory_space<vmem>>, vector<1x32x64xbf16>
    %124 = vector.shape_cast %123 : vector<1x32x64xbf16> to vector<32x64xbf16>
    %cst_84 = arith.constant dense<0.000000e+00> : vector<16x64xf32>
    %125 = tpu.matmul %122, %124, %cst_84 {dimension_numbers = #tpu.dot_dimension_numbers<[1], [0], [0], [1], [0, 0, 1, 1], [], []>} : vector<16x32xbf16>, vector<32x64xbf16>, vector<16x64xf32> -> vector<16x64xf32>
    %126 = arith.addf %121, %125 : vector<16x64xf32>
    %127 = vector.extract_strided_slice %95 {offsets = [96, 0], sizes = [16, 32], strides = [1, 1]} : vector<256x32xbf16> to vector<16x32xbf16>
    %c6_85 = arith.constant 6 : index
    %c0_86 = arith.constant 0 : index
    %c0_87 = arith.constant 0 : index
    %128 = vector.load %arg7[%c6_85, %c0_86, %c0_87] : memref<16x32x64xbf16, #tpu.memory_space<vmem>>, vector<1x32x64xbf16>
    %129 = vector.shape_cast %128 : vector<1x32x64xbf16> to vector<32x64xbf16>
    %cst_88 = arith.constant dense<0.000000e+00> : vector<16x64xf32>
    %130 = tpu.matmul %127, %129, %cst_88 {dimension_numbers = #tpu.dot_dimension_numbers<[1], [0], [0], [1], [0, 0, 1, 1], [], []>} : vector<16x32xbf16>, vector<32x64xbf16>, vector<16x64xf32> -> vector<16x64xf32>
    %131 = arith.addf %126, %130 : vector<16x64xf32>
    %132 = vector.extract_strided_slice %95 {offsets = [112, 0], sizes = [16, 32], strides = [1, 1]} : vector<256x32xbf16> to vector<16x32xbf16>
    %c7_89 = arith.constant 7 : index
    %c0_90 = arith.constant 0 : index
    %c0_91 = arith.constant 0 : index
    %133 = vector.load %arg7[%c7_89, %c0_90, %c0_91] : memref<16x32x64xbf16, #tpu.memory_space<vmem>>, vector<1x32x64xbf16>
    %134 = vector.shape_cast %133 : vector<1x32x64xbf16> to vector<32x64xbf16>
    %cst_92 = arith.constant dense<0.000000e+00> : vector<16x64xf32>
    %135 = tpu.matmul %132, %134, %cst_92 {dimension_numbers = #tpu.dot_dimension_numbers<[1], [0], [0], [1], [0, 0, 1, 1], [], []>} : vector<16x32xbf16>, vector<32x64xbf16>, vector<16x64xf32> -> vector<16x64xf32>
    %136 = arith.addf %131, %135 : vector<16x64xf32>
    %137 = vector.extract_strided_slice %95 {offsets = [128, 0], sizes = [16, 32], strides = [1, 1]} : vector<256x32xbf16> to vector<16x32xbf16>
    %c8_93 = arith.constant 8 : index
    %c0_94 = arith.constant 0 : index
    %c0_95 = arith.constant 0 : index
    %138 = vector.load %arg7[%c8_93, %c0_94, %c0_95] : memref<16x32x64xbf16, #tpu.memory_space<vmem>>, vector<1x32x64xbf16>
    %139 = vector.shape_cast %138 : vector<1x32x64xbf16> to vector<32x64xbf16>
    %cst_96 = arith.constant dense<0.000000e+00> : vector<16x64xf32>
    %140 = tpu.matmul %137, %139, %cst_96 {dimension_numbers = #tpu.dot_dimension_numbers<[1], [0], [0], [1], [0, 0, 1, 1], [], []>} : vector<16x32xbf16>, vector<32x64xbf16>, vector<16x64xf32> -> vector<16x64xf32>
    %141 = arith.addf %136, %140 : vector<16x64xf32>
    %142 = vector.extract_strided_slice %95 {offsets = [144, 0], sizes = [16, 32], strides = [1, 1]} : vector<256x32xbf16> to vector<16x32xbf16>
    %c9_97 = arith.constant 9 : index
    %c0_98 = arith.constant 0 : index
    %c0_99 = arith.constant 0 : index
    %143 = vector.load %arg7[%c9_97, %c0_98, %c0_99] : memref<16x32x64xbf16, #tpu.memory_space<vmem>>, vector<1x32x64xbf16>
    %144 = vector.shape_cast %143 : vector<1x32x64xbf16> to vector<32x64xbf16>
    %cst_100 = arith.constant dense<0.000000e+00> : vector<16x64xf32>
    %145 = tpu.matmul %142, %144, %cst_100 {dimension_numbers = #tpu.dot_dimension_numbers<[1], [0], [0], [1], [0, 0, 1, 1], [], []>} : vector<16x32xbf16>, vector<32x64xbf16>, vector<16x64xf32> -> vector<16x64xf32>
    %146 = arith.addf %141, %145 : vector<16x64xf32>
    %147 = vector.extract_strided_slice %95 {offsets = [160, 0], sizes = [16, 32], strides = [1, 1]} : vector<256x32xbf16> to vector<16x32xbf16>
    %c10_101 = arith.constant 10 : index
    %c0_102 = arith.constant 0 : index
    %c0_103 = arith.constant 0 : index
    %148 = vector.load %arg7[%c10_101, %c0_102, %c0_103] : memref<16x32x64xbf16, #tpu.memory_space<vmem>>, vector<1x32x64xbf16>
    %149 = vector.shape_cast %148 : vector<1x32x64xbf16> to vector<32x64xbf16>
    %cst_104 = arith.constant dense<0.000000e+00> : vector<16x64xf32>
    %150 = tpu.matmul %147, %149, %cst_104 {dimension_numbers = #tpu.dot_dimension_numbers<[1], [0], [0], [1], [0, 0, 1, 1], [], []>} : vector<16x32xbf16>, vector<32x64xbf16>, vector<16x64xf32> -> vector<16x64xf32>
    %151 = arith.addf %146, %150 : vector<16x64xf32>
    %152 = vector.extract_strided_slice %95 {offsets = [176, 0], sizes = [16, 32], strides = [1, 1]} : vector<256x32xbf16> to vector<16x32xbf16>
    %c11_105 = arith.constant 11 : index
    %c0_106 = arith.constant 0 : index
    %c0_107 = arith.constant 0 : index
    %153 = vector.load %arg7[%c11_105, %c0_106, %c0_107] : memref<16x32x64xbf16, #tpu.memory_space<vmem>>, vector<1x32x64xbf16>
    %154 = vector.shape_cast %153 : vector<1x32x64xbf16> to vector<32x64xbf16>
    %cst_108 = arith.constant dense<0.000000e+00> : vector<16x64xf32>
    %155 = tpu.matmul %152, %154, %cst_108 {dimension_numbers = #tpu.dot_dimension_numbers<[1], [0], [0], [1], [0, 0, 1, 1], [], []>} : vector<16x32xbf16>, vector<32x64xbf16>, vector<16x64xf32> -> vector<16x64xf32>
    %156 = arith.addf %151, %155 : vector<16x64xf32>
    %157 = vector.extract_strided_slice %95 {offsets = [192, 0], sizes = [16, 32], strides = [1, 1]} : vector<256x32xbf16> to vector<16x32xbf16>
    %c12_109 = arith.constant 12 : index
    %c0_110 = arith.constant 0 : index
    %c0_111 = arith.constant 0 : index
    %158 = vector.load %arg7[%c12_109, %c0_110, %c0_111] : memref<16x32x64xbf16, #tpu.memory_space<vmem>>, vector<1x32x64xbf16>
    %159 = vector.shape_cast %158 : vector<1x32x64xbf16> to vector<32x64xbf16>
    %cst_112 = arith.constant dense<0.000000e+00> : vector<16x64xf32>
    %160 = tpu.matmul %157, %159, %cst_112 {dimension_numbers = #tpu.dot_dimension_numbers<[1], [0], [0], [1], [0, 0, 1, 1], [], []>} : vector<16x32xbf16>, vector<32x64xbf16>, vector<16x64xf32> -> vector<16x64xf32>
    %161 = arith.addf %156, %160 : vector<16x64xf32>
    %162 = vector.extract_strided_slice %95 {offsets = [208, 0], sizes = [16, 32], strides = [1, 1]} : vector<256x32xbf16> to vector<16x32xbf16>
    %c13_113 = arith.constant 13 : index
    %c0_114 = arith.constant 0 : index
    %c0_115 = arith.constant 0 : index
    %163 = vector.load %arg7[%c13_113, %c0_114, %c0_115] : memref<16x32x64xbf16, #tpu.memory_space<vmem>>, vector<1x32x64xbf16>
    %164 = vector.shape_cast %163 : vector<1x32x64xbf16> to vector<32x64xbf16>
    %cst_116 = arith.constant dense<0.000000e+00> : vector<16x64xf32>
    %165 = tpu.matmul %162, %164, %cst_116 {dimension_numbers = #tpu.dot_dimension_numbers<[1], [0], [0], [1], [0, 0, 1, 1], [], []>} : vector<16x32xbf16>, vector<32x64xbf16>, vector<16x64xf32> -> vector<16x64xf32>
    %166 = arith.addf %161, %165 : vector<16x64xf32>
    %167 = vector.extract_strided_slice %95 {offsets = [224, 0], sizes = [16, 32], strides = [1, 1]} : vector<256x32xbf16> to vector<16x32xbf16>
    %c14_117 = arith.constant 14 : index
    %c0_118 = arith.constant 0 : index
    %c0_119 = arith.constant 0 : index
    %168 = vector.load %arg7[%c14_117, %c0_118, %c0_119] : memref<16x32x64xbf16, #tpu.memory_space<vmem>>, vector<1x32x64xbf16>
    %169 = vector.shape_cast %168 : vector<1x32x64xbf16> to vector<32x64xbf16>
    %cst_120 = arith.constant dense<0.000000e+00> : vector<16x64xf32>
    %170 = tpu.matmul %167, %169, %cst_120 {dimension_numbers = #tpu.dot_dimension_numbers<[1], [0], [0], [1], [0, 0, 1, 1], [], []>} : vector<16x32xbf16>, vector<32x64xbf16>, vector<16x64xf32> -> vector<16x64xf32>
    %171 = arith.addf %166, %170 : vector<16x64xf32>
    %172 = vector.extract_strided_slice %95 {offsets = [240, 0], sizes = [16, 32], strides = [1, 1]} : vector<256x32xbf16> to vector<16x32xbf16>
    %c15_121 = arith.constant 15 : index
    %c0_122 = arith.constant 0 : index
    %c0_123 = arith.constant 0 : index
    %173 = vector.load %arg7[%c15_121, %c0_122, %c0_123] : memref<16x32x64xbf16, #tpu.memory_space<vmem>>, vector<1x32x64xbf16>
    %174 = vector.shape_cast %173 : vector<1x32x64xbf16> to vector<32x64xbf16>
    %cst_124 = arith.constant dense<0.000000e+00> : vector<16x64xf32>
    %175 = tpu.matmul %172, %174, %cst_124 {dimension_numbers = #tpu.dot_dimension_numbers<[1], [0], [0], [1], [0, 0, 1, 1], [], []>} : vector<16x32xbf16>, vector<32x64xbf16>, vector<16x64xf32> -> vector<16x64xf32>
    %176 = arith.addf %171, %175 : vector<16x64xf32>
    %c0_125 = arith.constant 0 : index
    %c0_126 = arith.constant 0 : index
    %177 = vector.load %arg11[%c0_125, %c0_126] : memref<1x64xf32, #tpu.memory_space<vmem>>, vector<1x64xf32>
    %178 = vector.broadcast %177 : vector<1x64xf32> to vector<16x64xf32>
    %179 = arith.addf %176, %178 : vector<16x64xf32>
    %cst_127 = arith.constant 2.000000e-01 : f32
    %180 = vector.broadcast %cst_127 : f32 to vector<16x64xf32>
    %181 = arith.mulf %180, %179 : vector<16x64xf32>
    %182 = arith.maximumf %179, %181 : vector<16x64xf32>
    %183 = arith.truncf %182 : vector<16x64xf32> to vector<16x64xbf16>
    %c0_128 = arith.constant 0 : index
    %c0_129 = arith.constant 0 : index
    %184 = vector.load %arg4[%c0_128, %c0_129] : memref<64x16xbf16, #tpu.memory_space<vmem>>, vector<64x16xbf16>
    %cst_130 = arith.constant dense<0.000000e+00> : vector<64x64xf32>
    %185 = tpu.matmul %184, %183, %cst_130 {dimension_numbers = #tpu.dot_dimension_numbers<[1], [0], [0], [1], [0, 0, 1, 1], [], []>} : vector<64x16xbf16>, vector<16x64xbf16>, vector<64x64xf32> -> vector<64x64xf32>
    %186 = arith.truncf %185 : vector<64x64xf32> to vector<64x64xbf16>
    %cst_131 = arith.constant 0.000000e+00 : f32
    %187 = vector.broadcast %cst_131 : f32 to vector<4x128xf32>
    %188 = vector.extract_strided_slice %186 {offsets = [0, 0], sizes = [4, 64], strides = [1, 1]} : vector<64x64xbf16> to vector<4x64xbf16>
    %c0_132 = arith.constant 0 : index
    %c0_133 = arith.constant 0 : index
    %c0_134 = arith.constant 0 : index
    %189 = vector.load %arg8[%c0_132, %c0_133, %c0_134] : memref<16x64x128xbf16, #tpu.memory_space<vmem>>, vector<1x64x128xbf16>
    %190 = vector.shape_cast %189 : vector<1x64x128xbf16> to vector<64x128xbf16>
    %cst_135 = arith.constant dense<0.000000e+00> : vector<4x128xf32>
    %191 = tpu.matmul %188, %190, %cst_135 {dimension_numbers = #tpu.dot_dimension_numbers<[1], [0], [0], [1], [0, 0, 1, 1], [], []>} : vector<4x64xbf16>, vector<64x128xbf16>, vector<4x128xf32> -> vector<4x128xf32>
    %192 = arith.addf %187, %191 : vector<4x128xf32>
    %193 = vector.extract_strided_slice %186 {offsets = [4, 0], sizes = [4, 64], strides = [1, 1]} : vector<64x64xbf16> to vector<4x64xbf16>
    %c1_136 = arith.constant 1 : index
    %c0_137 = arith.constant 0 : index
    %c0_138 = arith.constant 0 : index
    %194 = vector.load %arg8[%c1_136, %c0_137, %c0_138] : memref<16x64x128xbf16, #tpu.memory_space<vmem>>, vector<1x64x128xbf16>
    %195 = vector.shape_cast %194 : vector<1x64x128xbf16> to vector<64x128xbf16>
    %cst_139 = arith.constant dense<0.000000e+00> : vector<4x128xf32>
    %196 = tpu.matmul %193, %195, %cst_139 {dimension_numbers = #tpu.dot_dimension_numbers<[1], [0], [0], [1], [0, 0, 1, 1], [], []>} : vector<4x64xbf16>, vector<64x128xbf16>, vector<4x128xf32> -> vector<4x128xf32>
    %197 = arith.addf %192, %196 : vector<4x128xf32>
    %198 = vector.extract_strided_slice %186 {offsets = [8, 0], sizes = [4, 64], strides = [1, 1]} : vector<64x64xbf16> to vector<4x64xbf16>
    %c2_140 = arith.constant 2 : index
    %c0_141 = arith.constant 0 : index
    %c0_142 = arith.constant 0 : index
    %199 = vector.load %arg8[%c2_140, %c0_141, %c0_142] : memref<16x64x128xbf16, #tpu.memory_space<vmem>>, vector<1x64x128xbf16>
    %200 = vector.shape_cast %199 : vector<1x64x128xbf16> to vector<64x128xbf16>
    %cst_143 = arith.constant dense<0.000000e+00> : vector<4x128xf32>
    %201 = tpu.matmul %198, %200, %cst_143 {dimension_numbers = #tpu.dot_dimension_numbers<[1], [0], [0], [1], [0, 0, 1, 1], [], []>} : vector<4x64xbf16>, vector<64x128xbf16>, vector<4x128xf32> -> vector<4x128xf32>
    %202 = arith.addf %197, %201 : vector<4x128xf32>
    %203 = vector.extract_strided_slice %186 {offsets = [12, 0], sizes = [4, 64], strides = [1, 1]} : vector<64x64xbf16> to vector<4x64xbf16>
    %c3_144 = arith.constant 3 : index
    %c0_145 = arith.constant 0 : index
    %c0_146 = arith.constant 0 : index
    %204 = vector.load %arg8[%c3_144, %c0_145, %c0_146] : memref<16x64x128xbf16, #tpu.memory_space<vmem>>, vector<1x64x128xbf16>
    %205 = vector.shape_cast %204 : vector<1x64x128xbf16> to vector<64x128xbf16>
    %cst_147 = arith.constant dense<0.000000e+00> : vector<4x128xf32>
    %206 = tpu.matmul %203, %205, %cst_147 {dimension_numbers = #tpu.dot_dimension_numbers<[1], [0], [0], [1], [0, 0, 1, 1], [], []>} : vector<4x64xbf16>, vector<64x128xbf16>, vector<4x128xf32> -> vector<4x128xf32>
    %207 = arith.addf %202, %206 : vector<4x128xf32>
    %208 = vector.extract_strided_slice %186 {offsets = [16, 0], sizes = [4, 64], strides = [1, 1]} : vector<64x64xbf16> to vector<4x64xbf16>
    %c4_148 = arith.constant 4 : index
    %c0_149 = arith.constant 0 : index
    %c0_150 = arith.constant 0 : index
    %209 = vector.load %arg8[%c4_148, %c0_149, %c0_150] : memref<16x64x128xbf16, #tpu.memory_space<vmem>>, vector<1x64x128xbf16>
    %210 = vector.shape_cast %209 : vector<1x64x128xbf16> to vector<64x128xbf16>
    %cst_151 = arith.constant dense<0.000000e+00> : vector<4x128xf32>
    %211 = tpu.matmul %208, %210, %cst_151 {dimension_numbers = #tpu.dot_dimension_numbers<[1], [0], [0], [1], [0, 0, 1, 1], [], []>} : vector<4x64xbf16>, vector<64x128xbf16>, vector<4x128xf32> -> vector<4x128xf32>
    %212 = arith.addf %207, %211 : vector<4x128xf32>
    %213 = vector.extract_strided_slice %186 {offsets = [20, 0], sizes = [4, 64], strides = [1, 1]} : vector<64x64xbf16> to vector<4x64xbf16>
    %c5_152 = arith.constant 5 : index
    %c0_153 = arith.constant 0 : index
    %c0_154 = arith.constant 0 : index
    %214 = vector.load %arg8[%c5_152, %c0_153, %c0_154] : memref<16x64x128xbf16, #tpu.memory_space<vmem>>, vector<1x64x128xbf16>
    %215 = vector.shape_cast %214 : vector<1x64x128xbf16> to vector<64x128xbf16>
    %cst_155 = arith.constant dense<0.000000e+00> : vector<4x128xf32>
    %216 = tpu.matmul %213, %215, %cst_155 {dimension_numbers = #tpu.dot_dimension_numbers<[1], [0], [0], [1], [0, 0, 1, 1], [], []>} : vector<4x64xbf16>, vector<64x128xbf16>, vector<4x128xf32> -> vector<4x128xf32>
    %217 = arith.addf %212, %216 : vector<4x128xf32>
    %218 = vector.extract_strided_slice %186 {offsets = [24, 0], sizes = [4, 64], strides = [1, 1]} : vector<64x64xbf16> to vector<4x64xbf16>
    %c6_156 = arith.constant 6 : index
    %c0_157 = arith.constant 0 : index
    %c0_158 = arith.constant 0 : index
    %219 = vector.load %arg8[%c6_156, %c0_157, %c0_158] : memref<16x64x128xbf16, #tpu.memory_space<vmem>>, vector<1x64x128xbf16>
    %220 = vector.shape_cast %219 : vector<1x64x128xbf16> to vector<64x128xbf16>
    %cst_159 = arith.constant dense<0.000000e+00> : vector<4x128xf32>
    %221 = tpu.matmul %218, %220, %cst_159 {dimension_numbers = #tpu.dot_dimension_numbers<[1], [0], [0], [1], [0, 0, 1, 1], [], []>} : vector<4x64xbf16>, vector<64x128xbf16>, vector<4x128xf32> -> vector<4x128xf32>
    %222 = arith.addf %217, %221 : vector<4x128xf32>
    %223 = vector.extract_strided_slice %186 {offsets = [28, 0], sizes = [4, 64], strides = [1, 1]} : vector<64x64xbf16> to vector<4x64xbf16>
    %c7_160 = arith.constant 7 : index
    %c0_161 = arith.constant 0 : index
    %c0_162 = arith.constant 0 : index
    %224 = vector.load %arg8[%c7_160, %c0_161, %c0_162] : memref<16x64x128xbf16, #tpu.memory_space<vmem>>, vector<1x64x128xbf16>
    %225 = vector.shape_cast %224 : vector<1x64x128xbf16> to vector<64x128xbf16>
    %cst_163 = arith.constant dense<0.000000e+00> : vector<4x128xf32>
    %226 = tpu.matmul %223, %225, %cst_163 {dimension_numbers = #tpu.dot_dimension_numbers<[1], [0], [0], [1], [0, 0, 1, 1], [], []>} : vector<4x64xbf16>, vector<64x128xbf16>, vector<4x128xf32> -> vector<4x128xf32>
    %227 = arith.addf %222, %226 : vector<4x128xf32>
    %228 = vector.extract_strided_slice %186 {offsets = [32, 0], sizes = [4, 64], strides = [1, 1]} : vector<64x64xbf16> to vector<4x64xbf16>
    %c8_164 = arith.constant 8 : index
    %c0_165 = arith.constant 0 : index
    %c0_166 = arith.constant 0 : index
    %229 = vector.load %arg8[%c8_164, %c0_165, %c0_166] : memref<16x64x128xbf16, #tpu.memory_space<vmem>>, vector<1x64x128xbf16>
    %230 = vector.shape_cast %229 : vector<1x64x128xbf16> to vector<64x128xbf16>
    %cst_167 = arith.constant dense<0.000000e+00> : vector<4x128xf32>
    %231 = tpu.matmul %228, %230, %cst_167 {dimension_numbers = #tpu.dot_dimension_numbers<[1], [0], [0], [1], [0, 0, 1, 1], [], []>} : vector<4x64xbf16>, vector<64x128xbf16>, vector<4x128xf32> -> vector<4x128xf32>
    %232 = arith.addf %227, %231 : vector<4x128xf32>
    %233 = vector.extract_strided_slice %186 {offsets = [36, 0], sizes = [4, 64], strides = [1, 1]} : vector<64x64xbf16> to vector<4x64xbf16>
    %c9_168 = arith.constant 9 : index
    %c0_169 = arith.constant 0 : index
    %c0_170 = arith.constant 0 : index
    %234 = vector.load %arg8[%c9_168, %c0_169, %c0_170] : memref<16x64x128xbf16, #tpu.memory_space<vmem>>, vector<1x64x128xbf16>
    %235 = vector.shape_cast %234 : vector<1x64x128xbf16> to vector<64x128xbf16>
    %cst_171 = arith.constant dense<0.000000e+00> : vector<4x128xf32>
    %236 = tpu.matmul %233, %235, %cst_171 {dimension_numbers = #tpu.dot_dimension_numbers<[1], [0], [0], [1], [0, 0, 1, 1], [], []>} : vector<4x64xbf16>, vector<64x128xbf16>, vector<4x128xf32> -> vector<4x128xf32>
    %237 = arith.addf %232, %236 : vector<4x128xf32>
    %238 = vector.extract_strided_slice %186 {offsets = [40, 0], sizes = [4, 64], strides = [1, 1]} : vector<64x64xbf16> to vector<4x64xbf16>
    %c10_172 = arith.constant 10 : index
    %c0_173 = arith.constant 0 : index
    %c0_174 = arith.constant 0 : index
    %239 = vector.load %arg8[%c10_172, %c0_173, %c0_174] : memref<16x64x128xbf16, #tpu.memory_space<vmem>>, vector<1x64x128xbf16>
    %240 = vector.shape_cast %239 : vector<1x64x128xbf16> to vector<64x128xbf16>
    %cst_175 = arith.constant dense<0.000000e+00> : vector<4x128xf32>
    %241 = tpu.matmul %238, %240, %cst_175 {dimension_numbers = #tpu.dot_dimension_numbers<[1], [0], [0], [1], [0, 0, 1, 1], [], []>} : vector<4x64xbf16>, vector<64x128xbf16>, vector<4x128xf32> -> vector<4x128xf32>
    %242 = arith.addf %237, %241 : vector<4x128xf32>
    %243 = vector.extract_strided_slice %186 {offsets = [44, 0], sizes = [4, 64], strides = [1, 1]} : vector<64x64xbf16> to vector<4x64xbf16>
    %c11_176 = arith.constant 11 : index
    %c0_177 = arith.constant 0 : index
    %c0_178 = arith.constant 0 : index
    %244 = vector.load %arg8[%c11_176, %c0_177, %c0_178] : memref<16x64x128xbf16, #tpu.memory_space<vmem>>, vector<1x64x128xbf16>
    %245 = vector.shape_cast %244 : vector<1x64x128xbf16> to vector<64x128xbf16>
    %cst_179 = arith.constant dense<0.000000e+00> : vector<4x128xf32>
    %246 = tpu.matmul %243, %245, %cst_179 {dimension_numbers = #tpu.dot_dimension_numbers<[1], [0], [0], [1], [0, 0, 1, 1], [], []>} : vector<4x64xbf16>, vector<64x128xbf16>, vector<4x128xf32> -> vector<4x128xf32>
    %247 = arith.addf %242, %246 : vector<4x128xf32>
    %248 = vector.extract_strided_slice %186 {offsets = [48, 0], sizes = [4, 64], strides = [1, 1]} : vector<64x64xbf16> to vector<4x64xbf16>
    %c12_180 = arith.constant 12 : index
    %c0_181 = arith.constant 0 : index
    %c0_182 = arith.constant 0 : index
    %249 = vector.load %arg8[%c12_180, %c0_181, %c0_182] : memref<16x64x128xbf16, #tpu.memory_space<vmem>>, vector<1x64x128xbf16>
    %250 = vector.shape_cast %249 : vector<1x64x128xbf16> to vector<64x128xbf16>
    %cst_183 = arith.constant dense<0.000000e+00> : vector<4x128xf32>
    %251 = tpu.matmul %248, %250, %cst_183 {dimension_numbers = #tpu.dot_dimension_numbers<[1], [0], [0], [1], [0, 0, 1, 1], [], []>} : vector<4x64xbf16>, vector<64x128xbf16>, vector<4x128xf32> -> vector<4x128xf32>
    %252 = arith.addf %247, %251 : vector<4x128xf32>
    %253 = vector.extract_strided_slice %186 {offsets = [52, 0], sizes = [4, 64], strides = [1, 1]} : vector<64x64xbf16> to vector<4x64xbf16>
    %c13_184 = arith.constant 13 : index
    %c0_185 = arith.constant 0 : index
    %c0_186 = arith.constant 0 : index
    %254 = vector.load %arg8[%c13_184, %c0_185, %c0_186] : memref<16x64x128xbf16, #tpu.memory_space<vmem>>, vector<1x64x128xbf16>
    %255 = vector.shape_cast %254 : vector<1x64x128xbf16> to vector<64x128xbf16>
    %cst_187 = arith.constant dense<0.000000e+00> : vector<4x128xf32>
    %256 = tpu.matmul %253, %255, %cst_187 {dimension_numbers = #tpu.dot_dimension_numbers<[1], [0], [0], [1], [0, 0, 1, 1], [], []>} : vector<4x64xbf16>, vector<64x128xbf16>, vector<4x128xf32> -> vector<4x128xf32>
    %257 = arith.addf %252, %256 : vector<4x128xf32>
    %258 = vector.extract_strided_slice %186 {offsets = [56, 0], sizes = [4, 64], strides = [1, 1]} : vector<64x64xbf16> to vector<4x64xbf16>
    %c14_188 = arith.constant 14 : index
    %c0_189 = arith.constant 0 : index
    %c0_190 = arith.constant 0 : index
    %259 = vector.load %arg8[%c14_188, %c0_189, %c0_190] : memref<16x64x128xbf16, #tpu.memory_space<vmem>>, vector<1x64x128xbf16>
    %260 = vector.shape_cast %259 : vector<1x64x128xbf16> to vector<64x128xbf16>
    %cst_191 = arith.constant dense<0.000000e+00> : vector<4x128xf32>
    %261 = tpu.matmul %258, %260, %cst_191 {dimension_numbers = #tpu.dot_dimension_numbers<[1], [0], [0], [1], [0, 0, 1, 1], [], []>} : vector<4x64xbf16>, vector<64x128xbf16>, vector<4x128xf32> -> vector<4x128xf32>
    %262 = arith.addf %257, %261 : vector<4x128xf32>
    %263 = vector.extract_strided_slice %186 {offsets = [60, 0], sizes = [4, 64], strides = [1, 1]} : vector<64x64xbf16> to vector<4x64xbf16>
    %c15_192 = arith.constant 15 : index
    %c0_193 = arith.constant 0 : index
    %c0_194 = arith.constant 0 : index
    %264 = vector.load %arg8[%c15_192, %c0_193, %c0_194] : memref<16x64x128xbf16, #tpu.memory_space<vmem>>, vector<1x64x128xbf16>
    %265 = vector.shape_cast %264 : vector<1x64x128xbf16> to vector<64x128xbf16>
    %cst_195 = arith.constant dense<0.000000e+00> : vector<4x128xf32>
    %266 = tpu.matmul %263, %265, %cst_195 {dimension_numbers = #tpu.dot_dimension_numbers<[1], [0], [0], [1], [0, 0, 1, 1], [], []>} : vector<4x64xbf16>, vector<64x128xbf16>, vector<4x128xf32> -> vector<4x128xf32>
    %267 = arith.addf %262, %266 : vector<4x128xf32>
    %c0_196 = arith.constant 0 : index
    %c0_197 = arith.constant 0 : index
    %268 = vector.load %arg12[%c0_196, %c0_197] : memref<1x128xf32, #tpu.memory_space<vmem>>, vector<1x128xf32>
    %269 = vector.broadcast %268 : vector<1x128xf32> to vector<4x128xf32>
    %270 = arith.addf %267, %269 : vector<4x128xf32>
    %cst_198 = arith.constant 2.000000e-01 : f32
    %271 = vector.broadcast %cst_198 : f32 to vector<4x128xf32>
    %272 = arith.mulf %271, %270 : vector<4x128xf32>
    %273 = arith.maximumf %270, %272 : vector<4x128xf32>
    %274 = arith.truncf %273 : vector<4x128xf32> to vector<4x128xbf16>
    %c0_199 = arith.constant 0 : index
    %c0_200 = arith.constant 0 : index
    %275 = vector.load %arg5[%c0_199, %c0_200] : memref<16x4xbf16, #tpu.memory_space<vmem>>, vector<16x4xbf16>
    %cst_201 = arith.constant dense<0.000000e+00> : vector<16x128xf32>
    %276 = tpu.matmul %275, %274, %cst_201 {dimension_numbers = #tpu.dot_dimension_numbers<[1], [0], [0], [1], [0, 0, 1, 1], [], []>} : vector<16x4xbf16>, vector<4x128xbf16>, vector<16x128xf32> -> vector<16x128xf32>
    %277 = arith.truncf %276 : vector<16x128xf32> to vector<16x128xbf16>
    %cst_202 = arith.constant 0.000000e+00 : f32
    %278 = vector.broadcast %cst_202 : f32 to vector<1x128xf32>
    %279 = vector.extract_strided_slice %277 {offsets = [0, 0], sizes = [1, 128], strides = [1, 1]} : vector<16x128xbf16> to vector<1x128xbf16>
    %c0_203 = arith.constant 0 : index
    %c0_204 = arith.constant 0 : index
    %c0_205 = arith.constant 0 : index
    %280 = vector.load %arg9[%c0_203, %c0_204, %c0_205] : memref<16x128x128xbf16, #tpu.memory_space<vmem>>, vector<1x128x128xbf16>
    %281 = vector.shape_cast %280 : vector<1x128x128xbf16> to vector<128x128xbf16>
    %cst_206 = arith.constant dense<0.000000e+00> : vector<1x128xf32>
    %282 = tpu.matmul %279, %281, %cst_206 {dimension_numbers = #tpu.dot_dimension_numbers<[1], [0], [0], [1], [0, 0, 1, 1], [], []>} : vector<1x128xbf16>, vector<128x128xbf16>, vector<1x128xf32> -> vector<1x128xf32>
    %283 = arith.addf %278, %282 : vector<1x128xf32>
    %284 = vector.extract_strided_slice %277 {offsets = [1, 0], sizes = [1, 128], strides = [1, 1]} : vector<16x128xbf16> to vector<1x128xbf16>
    %c1_207 = arith.constant 1 : index
    %c0_208 = arith.constant 0 : index
    %c0_209 = arith.constant 0 : index
    %285 = vector.load %arg9[%c1_207, %c0_208, %c0_209] : memref<16x128x128xbf16, #tpu.memory_space<vmem>>, vector<1x128x128xbf16>
    %286 = vector.shape_cast %285 : vector<1x128x128xbf16> to vector<128x128xbf16>
    %cst_210 = arith.constant dense<0.000000e+00> : vector<1x128xf32>
    %287 = tpu.matmul %284, %286, %cst_210 {dimension_numbers = #tpu.dot_dimension_numbers<[1], [0], [0], [1], [0, 0, 1, 1], [], []>} : vector<1x128xbf16>, vector<128x128xbf16>, vector<1x128xf32> -> vector<1x128xf32>
    %288 = arith.addf %283, %287 : vector<1x128xf32>
    %289 = vector.extract_strided_slice %277 {offsets = [2, 0], sizes = [1, 128], strides = [1, 1]} : vector<16x128xbf16> to vector<1x128xbf16>
    %c2_211 = arith.constant 2 : index
    %c0_212 = arith.constant 0 : index
    %c0_213 = arith.constant 0 : index
    %290 = vector.load %arg9[%c2_211, %c0_212, %c0_213] : memref<16x128x128xbf16, #tpu.memory_space<vmem>>, vector<1x128x128xbf16>
    %291 = vector.shape_cast %290 : vector<1x128x128xbf16> to vector<128x128xbf16>
    %cst_214 = arith.constant dense<0.000000e+00> : vector<1x128xf32>
    %292 = tpu.matmul %289, %291, %cst_214 {dimension_numbers = #tpu.dot_dimension_numbers<[1], [0], [0], [1], [0, 0, 1, 1], [], []>} : vector<1x128xbf16>, vector<128x128xbf16>, vector<1x128xf32> -> vector<1x128xf32>
    %293 = arith.addf %288, %292 : vector<1x128xf32>
    %294 = vector.extract_strided_slice %277 {offsets = [3, 0], sizes = [1, 128], strides = [1, 1]} : vector<16x128xbf16> to vector<1x128xbf16>
    %c3_215 = arith.constant 3 : index
    %c0_216 = arith.constant 0 : index
    %c0_217 = arith.constant 0 : index
    %295 = vector.load %arg9[%c3_215, %c0_216, %c0_217] : memref<16x128x128xbf16, #tpu.memory_space<vmem>>, vector<1x128x128xbf16>
    %296 = vector.shape_cast %295 : vector<1x128x128xbf16> to vector<128x128xbf16>
    %cst_218 = arith.constant dense<0.000000e+00> : vector<1x128xf32>
    %297 = tpu.matmul %294, %296, %cst_218 {dimension_numbers = #tpu.dot_dimension_numbers<[1], [0], [0], [1], [0, 0, 1, 1], [], []>} : vector<1x128xbf16>, vector<128x128xbf16>, vector<1x128xf32> -> vector<1x128xf32>
    %298 = arith.addf %293, %297 : vector<1x128xf32>
    %299 = vector.extract_strided_slice %277 {offsets = [4, 0], sizes = [1, 128], strides = [1, 1]} : vector<16x128xbf16> to vector<1x128xbf16>
    %c4_219 = arith.constant 4 : index
    %c0_220 = arith.constant 0 : index
    %c0_221 = arith.constant 0 : index
    %300 = vector.load %arg9[%c4_219, %c0_220, %c0_221] : memref<16x128x128xbf16, #tpu.memory_space<vmem>>, vector<1x128x128xbf16>
    %301 = vector.shape_cast %300 : vector<1x128x128xbf16> to vector<128x128xbf16>
    %cst_222 = arith.constant dense<0.000000e+00> : vector<1x128xf32>
    %302 = tpu.matmul %299, %301, %cst_222 {dimension_numbers = #tpu.dot_dimension_numbers<[1], [0], [0], [1], [0, 0, 1, 1], [], []>} : vector<1x128xbf16>, vector<128x128xbf16>, vector<1x128xf32> -> vector<1x128xf32>
    %303 = arith.addf %298, %302 : vector<1x128xf32>
    %304 = vector.extract_strided_slice %277 {offsets = [5, 0], sizes = [1, 128], strides = [1, 1]} : vector<16x128xbf16> to vector<1x128xbf16>
    %c5_223 = arith.constant 5 : index
    %c0_224 = arith.constant 0 : index
    %c0_225 = arith.constant 0 : index
    %305 = vector.load %arg9[%c5_223, %c0_224, %c0_225] : memref<16x128x128xbf16, #tpu.memory_space<vmem>>, vector<1x128x128xbf16>
    %306 = vector.shape_cast %305 : vector<1x128x128xbf16> to vector<128x128xbf16>
    %cst_226 = arith.constant dense<0.000000e+00> : vector<1x128xf32>
    %307 = tpu.matmul %304, %306, %cst_226 {dimension_numbers = #tpu.dot_dimension_numbers<[1], [0], [0], [1], [0, 0, 1, 1], [], []>} : vector<1x128xbf16>, vector<128x128xbf16>, vector<1x128xf32> -> vector<1x128xf32>
    %308 = arith.addf %303, %307 : vector<1x128xf32>
    %309 = vector.extract_strided_slice %277 {offsets = [6, 0], sizes = [1, 128], strides = [1, 1]} : vector<16x128xbf16> to vector<1x128xbf16>
    %c6_227 = arith.constant 6 : index
    %c0_228 = arith.constant 0 : index
    %c0_229 = arith.constant 0 : index
    %310 = vector.load %arg9[%c6_227, %c0_228, %c0_229] : memref<16x128x128xbf16, #tpu.memory_space<vmem>>, vector<1x128x128xbf16>
    %311 = vector.shape_cast %310 : vector<1x128x128xbf16> to vector<128x128xbf16>
    %cst_230 = arith.constant dense<0.000000e+00> : vector<1x128xf32>
    %312 = tpu.matmul %309, %311, %cst_230 {dimension_numbers = #tpu.dot_dimension_numbers<[1], [0], [0], [1], [0, 0, 1, 1], [], []>} : vector<1x128xbf16>, vector<128x128xbf16>, vector<1x128xf32> -> vector<1x128xf32>
    %313 = arith.addf %308, %312 : vector<1x128xf32>
    %314 = vector.extract_strided_slice %277 {offsets = [7, 0], sizes = [1, 128], strides = [1, 1]} : vector<16x128xbf16> to vector<1x128xbf16>
    %c7_231 = arith.constant 7 : index
    %c0_232 = arith.constant 0 : index
    %c0_233 = arith.constant 0 : index
    %315 = vector.load %arg9[%c7_231, %c0_232, %c0_233] : memref<16x128x128xbf16, #tpu.memory_space<vmem>>, vector<1x128x128xbf16>
    %316 = vector.shape_cast %315 : vector<1x128x128xbf16> to vector<128x128xbf16>
    %cst_234 = arith.constant dense<0.000000e+00> : vector<1x128xf32>
    %317 = tpu.matmul %314, %316, %cst_234 {dimension_numbers = #tpu.dot_dimension_numbers<[1], [0], [0], [1], [0, 0, 1, 1], [], []>} : vector<1x128xbf16>, vector<128x128xbf16>, vector<1x128xf32> -> vector<1x128xf32>
    %318 = arith.addf %313, %317 : vector<1x128xf32>
    %319 = vector.extract_strided_slice %277 {offsets = [8, 0], sizes = [1, 128], strides = [1, 1]} : vector<16x128xbf16> to vector<1x128xbf16>
    %c8_235 = arith.constant 8 : index
    %c0_236 = arith.constant 0 : index
    %c0_237 = arith.constant 0 : index
    %320 = vector.load %arg9[%c8_235, %c0_236, %c0_237] : memref<16x128x128xbf16, #tpu.memory_space<vmem>>, vector<1x128x128xbf16>
    %321 = vector.shape_cast %320 : vector<1x128x128xbf16> to vector<128x128xbf16>
    %cst_238 = arith.constant dense<0.000000e+00> : vector<1x128xf32>
    %322 = tpu.matmul %319, %321, %cst_238 {dimension_numbers = #tpu.dot_dimension_numbers<[1], [0], [0], [1], [0, 0, 1, 1], [], []>} : vector<1x128xbf16>, vector<128x128xbf16>, vector<1x128xf32> -> vector<1x128xf32>
    %323 = arith.addf %318, %322 : vector<1x128xf32>
    %324 = vector.extract_strided_slice %277 {offsets = [9, 0], sizes = [1, 128], strides = [1, 1]} : vector<16x128xbf16> to vector<1x128xbf16>
    %c9_239 = arith.constant 9 : index
    %c0_240 = arith.constant 0 : index
    %c0_241 = arith.constant 0 : index
    %325 = vector.load %arg9[%c9_239, %c0_240, %c0_241] : memref<16x128x128xbf16, #tpu.memory_space<vmem>>, vector<1x128x128xbf16>
    %326 = vector.shape_cast %325 : vector<1x128x128xbf16> to vector<128x128xbf16>
    %cst_242 = arith.constant dense<0.000000e+00> : vector<1x128xf32>
    %327 = tpu.matmul %324, %326, %cst_242 {dimension_numbers = #tpu.dot_dimension_numbers<[1], [0], [0], [1], [0, 0, 1, 1], [], []>} : vector<1x128xbf16>, vector<128x128xbf16>, vector<1x128xf32> -> vector<1x128xf32>
    %328 = arith.addf %323, %327 : vector<1x128xf32>
    %329 = vector.extract_strided_slice %277 {offsets = [10, 0], sizes = [1, 128], strides = [1, 1]} : vector<16x128xbf16> to vector<1x128xbf16>
    %c10_243 = arith.constant 10 : index
    %c0_244 = arith.constant 0 : index
    %c0_245 = arith.constant 0 : index
    %330 = vector.load %arg9[%c10_243, %c0_244, %c0_245] : memref<16x128x128xbf16, #tpu.memory_space<vmem>>, vector<1x128x128xbf16>
    %331 = vector.shape_cast %330 : vector<1x128x128xbf16> to vector<128x128xbf16>
    %cst_246 = arith.constant dense<0.000000e+00> : vector<1x128xf32>
    %332 = tpu.matmul %329, %331, %cst_246 {dimension_numbers = #tpu.dot_dimension_numbers<[1], [0], [0], [1], [0, 0, 1, 1], [], []>} : vector<1x128xbf16>, vector<128x128xbf16>, vector<1x128xf32> -> vector<1x128xf32>
    %333 = arith.addf %328, %332 : vector<1x128xf32>
    %334 = vector.extract_strided_slice %277 {offsets = [11, 0], sizes = [1, 128], strides = [1, 1]} : vector<16x128xbf16> to vector<1x128xbf16>
    %c11_247 = arith.constant 11 : index
    %c0_248 = arith.constant 0 : index
    %c0_249 = arith.constant 0 : index
    %335 = vector.load %arg9[%c11_247, %c0_248, %c0_249] : memref<16x128x128xbf16, #tpu.memory_space<vmem>>, vector<1x128x128xbf16>
    %336 = vector.shape_cast %335 : vector<1x128x128xbf16> to vector<128x128xbf16>
    %cst_250 = arith.constant dense<0.000000e+00> : vector<1x128xf32>
    %337 = tpu.matmul %334, %336, %cst_250 {dimension_numbers = #tpu.dot_dimension_numbers<[1], [0], [0], [1], [0, 0, 1, 1], [], []>} : vector<1x128xbf16>, vector<128x128xbf16>, vector<1x128xf32> -> vector<1x128xf32>
    %338 = arith.addf %333, %337 : vector<1x128xf32>
    %339 = vector.extract_strided_slice %277 {offsets = [12, 0], sizes = [1, 128], strides = [1, 1]} : vector<16x128xbf16> to vector<1x128xbf16>
    %c12_251 = arith.constant 12 : index
    %c0_252 = arith.constant 0 : index
    %c0_253 = arith.constant 0 : index
    %340 = vector.load %arg9[%c12_251, %c0_252, %c0_253] : memref<16x128x128xbf16, #tpu.memory_space<vmem>>, vector<1x128x128xbf16>
    %341 = vector.shape_cast %340 : vector<1x128x128xbf16> to vector<128x128xbf16>
    %cst_254 = arith.constant dense<0.000000e+00> : vector<1x128xf32>
    %342 = tpu.matmul %339, %341, %cst_254 {dimension_numbers = #tpu.dot_dimension_numbers<[1], [0], [0], [1], [0, 0, 1, 1], [], []>} : vector<1x128xbf16>, vector<128x128xbf16>, vector<1x128xf32> -> vector<1x128xf32>
    %343 = arith.addf %338, %342 : vector<1x128xf32>
    %344 = vector.extract_strided_slice %277 {offsets = [13, 0], sizes = [1, 128], strides = [1, 1]} : vector<16x128xbf16> to vector<1x128xbf16>
    %c13_255 = arith.constant 13 : index
    %c0_256 = arith.constant 0 : index
    %c0_257 = arith.constant 0 : index
    %345 = vector.load %arg9[%c13_255, %c0_256, %c0_257] : memref<16x128x128xbf16, #tpu.memory_space<vmem>>, vector<1x128x128xbf16>
    %346 = vector.shape_cast %345 : vector<1x128x128xbf16> to vector<128x128xbf16>
    %cst_258 = arith.constant dense<0.000000e+00> : vector<1x128xf32>
    %347 = tpu.matmul %344, %346, %cst_258 {dimension_numbers = #tpu.dot_dimension_numbers<[1], [0], [0], [1], [0, 0, 1, 1], [], []>} : vector<1x128xbf16>, vector<128x128xbf16>, vector<1x128xf32> -> vector<1x128xf32>
    %348 = arith.addf %343, %347 : vector<1x128xf32>
    %349 = vector.extract_strided_slice %277 {offsets = [14, 0], sizes = [1, 128], strides = [1, 1]} : vector<16x128xbf16> to vector<1x128xbf16>
    %c14_259 = arith.constant 14 : index
    %c0_260 = arith.constant 0 : index
    %c0_261 = arith.constant 0 : index
    %350 = vector.load %arg9[%c14_259, %c0_260, %c0_261] : memref<16x128x128xbf16, #tpu.memory_space<vmem>>, vector<1x128x128xbf16>
    %351 = vector.shape_cast %350 : vector<1x128x128xbf16> to vector<128x128xbf16>
    %cst_262 = arith.constant dense<0.000000e+00> : vector<1x128xf32>
    %352 = tpu.matmul %349, %351, %cst_262 {dimension_numbers = #tpu.dot_dimension_numbers<[1], [0], [0], [1], [0, 0, 1, 1], [], []>} : vector<1x128xbf16>, vector<128x128xbf16>, vector<1x128xf32> -> vector<1x128xf32>
    %353 = arith.addf %348, %352 : vector<1x128xf32>
    %354 = vector.extract_strided_slice %277 {offsets = [15, 0], sizes = [1, 128], strides = [1, 1]} : vector<16x128xbf16> to vector<1x128xbf16>
    %c15_263 = arith.constant 15 : index
    %c0_264 = arith.constant 0 : index
    %c0_265 = arith.constant 0 : index
    %355 = vector.load %arg9[%c15_263, %c0_264, %c0_265] : memref<16x128x128xbf16, #tpu.memory_space<vmem>>, vector<1x128x128xbf16>
    %356 = vector.shape_cast %355 : vector<1x128x128xbf16> to vector<128x128xbf16>
    %cst_266 = arith.constant dense<0.000000e+00> : vector<1x128xf32>
    %357 = tpu.matmul %354, %356, %cst_266 {dimension_numbers = #tpu.dot_dimension_numbers<[1], [0], [0], [1], [0, 0, 1, 1], [], []>} : vector<1x128xbf16>, vector<128x128xbf16>, vector<1x128xf32> -> vector<1x128xf32>
    %358 = arith.addf %353, %357 : vector<1x128xf32>
    %c0_267 = arith.constant 0 : index
    %c0_268 = arith.constant 0 : index
    %359 = vector.load %arg13[%c0_267, %c0_268] : memref<1x128xf32, #tpu.memory_space<vmem>>, vector<1x128xf32>
    %360 = arith.addf %358, %359 : vector<1x128xf32>
    %361 = arith.negf %360 : vector<1x128xf32>
    %362 = math.exp %361 : vector<1x128xf32>
    %cst_269 = arith.constant 1.000000e+00 : f32
    %363 = vector.broadcast %cst_269 : f32 to vector<1x128xf32>
    %364 = arith.addf %363, %362 : vector<1x128xf32>
    %365 = arith.divf %363, %364 : vector<1x128xf32>
    %366 = vector.shape_cast %365 : vector<1x128xf32> to vector<1x1x128xf32>
    %c0_270 = arith.constant 0 : index
    %c0_271 = arith.constant 0 : index
    %c0_272 = arith.constant 0 : index
    %367 = vector.load %arg14[%c0_270, %c0_271, %c0_272] : memref<1x1x128xf32, #tpu.memory_space<vmem>>, vector<1x1x128xf32>
    tpu.vector_store %arg14[%c0_270, %c0_271, %c0_272], %366 {strides = array<i32>} : memref<1x1x128xf32, #tpu.memory_space<vmem>>, vector<1x1x128xf32>,
    return
  }
  func.func @transform_0(%arg0: i32) -> (i32, i32, i32) {
    %c0_i32 = arith.constant 0 : i32
    %c0_i32_0 = arith.constant 0 : i32
    %c0_i32_1 = arith.constant 0 : i32
    return %arg0, %c0_i32, %c0_i32_0 : i32, i32, i32
  }
  func.func @transform_1(%arg0: i32) -> (i32, i32) {
    %c0_i32 = arith.constant 0 : i32
    %c0_i32_0 = arith.constant 0 : i32
    %c0_i32_1 = arith.constant 0 : i32
    return %c0_i32, %c0_i32_0 : i32, i32
  }
  func.func @transform_2(%arg0: i32) -> (i32, i32) {
    %c0_i32 = arith.constant 0 : i32
    %c0_i32_0 = arith.constant 0 : i32
    %c0_i32_1 = arith.constant 0 : i32
    return %c0_i32, %c0_i32_0 : i32, i32
  }
  func.func @transform_3(%arg0: i32) -> (i32, i32) {
    %c0_i32 = arith.constant 0 : i32
    %c0_i32_0 = arith.constant 0 : i32
    %c0_i32_1 = arith.constant 0 : i32
    return %c0_i32, %c0_i32_0 : i32, i32
  }
  func.func @transform_4(%arg0: i32) -> (i32, i32) {
    %c0_i32 = arith.constant 0 : i32
    %c0_i32_0 = arith.constant 0 : i32
    %c0_i32_1 = arith.constant 0 : i32
    return %c0_i32, %c0_i32_0 : i32, i32
  }
  func.func @transform_5(%arg0: i32) -> (i32, i32, i32) {
    %c0_i32 = arith.constant 0 : i32
    %c0_i32_0 = arith.constant 0 : i32
    %c0_i32_1 = arith.constant 0 : i32
    %c0_i32_2 = arith.constant 0 : i32
    return %c0_i32, %c0_i32_0, %c0_i32_1 : i32, i32, i32
  }
  func.func @transform_6(%arg0: i32) -> (i32, i32, i32) {
    %c0_i32 = arith.constant 0 : i32
    %c0_i32_0 = arith.constant 0 : i32
    %c0_i32_1 = arith.constant 0 : i32
    %c0_i32_2 = arith.constant 0 : i32
    return %c0_i32, %c0_i32_0, %c0_i32_1 : i32, i32, i32
  }
  func.func @transform_7(%arg0: i32) -> (i32, i32, i32) {
    %c0_i32 = arith.constant 0 : i32
    %c0_i32_0 = arith.constant 0 : i32
    %c0_i32_1 = arith.constant 0 : i32
    %c0_i32_2 = arith.constant 0 : i32
    return %c0_i32, %c0_i32_0, %c0_i32_1 : i32, i32, i32
  }
  func.func @transform_8(%arg0: i32) -> (i32, i32, i32) {
    %c0_i32 = arith.constant 0 : i32
    %c0_i32_0 = arith.constant 0 : i32
    %c0_i32_1 = arith.constant 0 : i32
    %c0_i32_2 = arith.constant 0 : i32
    return %c0_i32, %c0_i32_0, %c0_i32_1 : i32, i32, i32
  }
  func.func @transform_9(%arg0: i32) -> (i32, i32) {
    %c0_i32 = arith.constant 0 : i32
    %c0_i32_0 = arith.constant 0 : i32
    %c0_i32_1 = arith.constant 0 : i32
    return %c0_i32, %c0_i32_0 : i32, i32
  }
  func.func @transform_10(%arg0: i32) -> (i32, i32) {
    %c0_i32 = arith.constant 0 : i32
    %c0_i32_0 = arith.constant 0 : i32
    %c0_i32_1 = arith.constant 0 : i32
    return %c0_i32, %c0_i32_0 : i32, i32
  }
  func.func @transform_11(%arg0: i32) -> (i32, i32) {
    %c0_i32 = arith.constant 0 : i32
    %c0_i32_0 = arith.constant 0 : i32
    %c0_i32_1 = arith.constant 0 : i32
    return %c0_i32, %c0_i32_0 : i32, i32
  }
  func.func @transform_12(%arg0: i32) -> (i32, i32) {
    %c0_i32 = arith.constant 0 : i32
    %c0_i32_0 = arith.constant 0 : i32
    %c0_i32_1 = arith.constant 0 : i32
    return %c0_i32, %c0_i32_0 : i32, i32
  }
  func.func @transform_13(%arg0: i32) -> (i32, i32, i32) {
    %c0_i32 = arith.constant 0 : i32
    %c0_i32_0 = arith.constant 0 : i32
    %c0_i32_1 = arith.constant 0 : i32
    return %arg0, %c0_i32, %c0_i32_0 : i32, i32, i32
  }
}

</mosaic_0001>

<bundles_post_ra>
// kernel: simple_discriminator.1
= control target key start
LH: loop header
LB: loop body
LE: loop exit
PB: predicated region body
PF: predicated region fallthrough
CT: control target
= control target key end

     0   :  { %s9181_s25 = smov 0   ;;  %s11286_s0 = inlined_call_operand.vmem [shape: bf16[2,256,8], index: 0, kind: input, shape index: {}]   ;;  %s11287_s1 = inlined_call_operand.vmem [shape: bf16[1024,256], index: 1, kind: input, shape index: {}]   ;;  %s11288_s2 = inlined_call_operand.vmem [shape: bf16[256,64], index: 2, kind: input, shape index: {}]   ;;  %s11289_s3 = inlined_call_operand.vmem [shape: bf16[64,16], index: 3, kind: input, shape index: {}]   ;;  %s11290_s4 = inlined_call_operand.vmem [shape: bf16[16,4], index: 4, kind: input, shape index: {}]   ;;  %s11291_s5 = inlined_call_operand.vmem [shape: bf16[16,8,32], index: 5, kind: input, shape index: {}]   ;;  %s11292_s6 = inlined_call_operand.vmem [shape: bf16[16,32,64], index: 6, kind: input, shape index: {}]   ;;  %s11293_s7 = inlined_call_operand.vmem [shape: bf16[16,64,128], index: 7, kind: input, shape index: {}]   ;;  %s11294_s8 = inlined_call_operand.vmem [shape: bf16[16,128,128], index: 8, kind: input, shape index: {}]   ;;  %s11295_s9 = inlined_call_operand.vmem [shape: f32[1,32], index: 9, kind: input, shape index: {}]   ;;  %s11296_s10 = inlined_call_operand.vmem [shape: f32[1,64], index: 10, kind: input, shape index: {}]   ;;  %s11297_s11 = inlined_call_operand.vmem [shape: f32[1,128], index: 11, kind: input, shape index: {}]   ;;  %s11298_s12 = inlined_call_operand.vmem [shape: f32[1,128], index: 12, kind: input, shape index: {}]   ;;  %s11299_s13 = inlined_call_operand.vmem [shape: f32[2,1,128], index: 13, kind: output, shape index: {}]  }
   0x1 LB: > { %s6580_s26 = sadd.s32 4294967295, %s9109_s25   ;;  %p6584_p0 = scmp.ge.s32.totalorder %s9109_s25, 1  ;;  %s9109_s25 = sphi %s9181_s25, %s23_s25  }
   0x2   : > { %p387_p1 = scmp.lt.s32.totalorder %s9109_s25, 3 }
   0x4   : > { %p388_p2 = pnand %p6584_p0, %p387_p1 }
   0x6   : > { %391 = sbr.rel (%p388_p2) target bundleno = 2784 (0xae0), region = 72 }
   0xb   : > { %p429_p3 = scmp.lt.s32.totalorder %s6580_s26, 1  ;;  %v6589_v14 = vld [vmem:[%s11287_s1] sm:$0xf]  ;;  %v8716_v15 = vld [vmem:[%s11287_s1 + $0x4] sm:$0xf0]  ;;  %vm2156_vm0 = vcmask 1043456  }
   0xc   : > { %v8715_v16 = vld [vmem:[%s11287_s1 + $0x4] sm:$0xf]  ;;  %v6591_v19 = vld [vmem:[%s11287_s1 + $0x8] sm:$0xf0]  ;;  %v6590_v20 = vor.u32 %v8716_v15, %v6589_v14  ;;  %v6597_v22 = vld [vmem:[%s11287_s1 + $0x10] sm:$0xf] }
   0xd   : > { %s11325_s26 = smov (!%p429_p3, %s6580_s26), 1  ;;  %v6594_v21 = vor.u32 %v8715_v16, %v6591_v19  ;;  %v8718_v23 = vld [vmem:[%s11287_s1 + $0x14] sm:$0xf0]  ;;  %v8717_v24 = vld [vmem:[%s11287_s1 + $0x14] sm:$0xf]  ;;  %vm2143_vm1 = vcmask 64512  }
   0xe   : > { %s8698_s27 = sshll.u32 %s11325_s26, 7  ;;  %v6599_v25 = vld [vmem:[%s11287_s1 + $0x18] sm:$0xf0]  ;;  %v6598_v26 = vor.u32 %v8718_v23, %v6597_v22  ;;  %v6605_v28 = vld [vmem:[%s11287_s1 + $0x20] sm:$0xf]  ;;  %vm3433_vm2 = vcmask 523264   ;;  %s436_s23 = scalar_lea.vmem %s11299_s13, %s11325_s26 }
   0xf   : > { %s9195_s30 = scalar_lea.vmem %s11286_s0, %s8698_s27  ;;  %v6602_v27 = vor.u32 %v8717_v24, %v6599_v25  ;;  %v8720_v29 = vld [vmem:[%s11287_s1 + $0x24] sm:$0xf0]  ;;  %v8719_v30 = vld [vmem:[%s11287_s1 + $0x24] sm:$0xf]  ;;  %v6607_v31 = vld [vmem:[%s11287_s1 + $0x28] sm:$0xf0] }
  0x10   : > { %v8706_v0 = vld [vmem:[%s9195_s30 + $0x38] sm:$0xff]  ;;  %v8705_v2 = vld [vmem:[%s9195_s30 + $0x30] sm:$0xff]  ;;  %v8704_v4 = vld [vmem:[%s9195_s30 + $0x28] sm:$0xff]  ;;  %v6606_v32 = vor.u32 %v8720_v29, %v6605_v28  ;;  %v6610_v33 = vor.u32 %v8719_v30, %v6607_v31  ;;  %vm3629_vm3 = vcmask 261120   ;;  %vm4294_vm4 = vcmask 130048  }
  0x11   : > { %v8714_v1 = vld [vmem:[%s9195_s30 + $0x78] sm:$0xff]  ;;  %1334 = vmatpush.bf16.msra.mxu0 %v8706_v0  ;;  %v8713_v3 = vld [vmem:[%s9195_s30 + $0x70] sm:$0xff]  ;;  %v8712_v5 = vld [vmem:[%s9195_s30 + $0x68] sm:$0xff]  ;;  %vm5192_vm5 = vcmask 1041408   ;;  %vm5188_vm6 = vcmask 31744  }
  0x12   : > { %1663 = vmatpush.bf16.msra.mxu1 %v8714_v1  ;;  %v8703_v6 = vld [vmem:[%s9195_s30 + $0x20] sm:$0xff]  ;;  %v8702_v8 = vld [vmem:[%s9195_s30 + $0x18] sm:$0xff]  ;;  %v8701_v10 = vld [vmem:[%s9195_s30 + $0x10] sm:$0xff] }
  0x13   : > { %v8711_v7 = vld [vmem:[%s9195_s30 + $0x60] sm:$0xff]  ;;  %v8710_v9 = vld [vmem:[%s9195_s30 + $0x58] sm:$0xff]  ;;  %v8709_v11 = vld [vmem:[%s9195_s30 + $0x50] sm:$0xff] }
  0x14   : > { %v8700_v12 = vld [vmem:[%s9195_s30 + $0x8] sm:$0xff]  ;;  %v8699_v17 = vld [vmem:[%s9195_s30] sm:$0xff]  ;;  %v6613_v34 = vld [vmem:[%s11287_s1 + $0x30] sm:$0xf] }
  0x15   : > { %1335 = vmatpush.bf16.msra.mxu0 %v8705_v2  ;;  %v8708_v13 = vld [vmem:[%s9195_s30 + $0x48] sm:$0xff]  ;;  %v8707_v18 = vld [vmem:[%s9195_s30 + $0x40] sm:$0xff]  ;;  %v8722_v35 = vld [vmem:[%s11287_s1 + $0x34] sm:$0xf0] }
  0x16   : > { %1664 = vmatpush.bf16.msra.mxu1 %v8713_v3  ;;  %v8721_v36 = vld [vmem:[%s11287_s1 + $0x34] sm:$0xf]  ;;  %v6615_v37 = vld [vmem:[%s11287_s1 + $0x38] sm:$0xf0]  ;;  %v6614_v38 = vor.u32 %v8722_v35, %v6613_v34  ;;  %v6621_v40 = vld [vmem:[%s11287_s1 + $0x40] sm:$0xf] }
  0x17   : > { %v6618_v39 = vor.u32 %v8721_v36, %v6615_v37  ;;  %v8724_v41 = vld [vmem:[%s11287_s1 + $0x44] sm:$0xf0]  ;;  %v8723_v42 = vld [vmem:[%s11287_s1 + $0x44] sm:$0xf]  ;;  %v6623_v43 = vld [vmem:[%s11287_s1 + $0x48] sm:$0xf0] }
  0x18   : > { %v6622_v44 = vor.u32 %v8724_v41, %v6621_v40  ;;  %v6626_v45 = vor.u32 %v8723_v42, %v6623_v43  ;;  %v6629_v46 = vld [vmem:[%s11287_s1 + $0x50] sm:$0xf]  ;;  %v8726_v47 = vld [vmem:[%s11287_s1 + $0x54] sm:$0xf0]  ;;  %v8725_v48 = vld [vmem:[%s11287_s1 + $0x54] sm:$0xf] }
  0x19   : > { %1336 = vmatpush.bf16.msra.mxu0 %v8704_v4  ;;  %v6631_v49 = vld [vmem:[%s11287_s1 + $0x58] sm:$0xf0]  ;;  %v6630_v50 = vor.u32 %v8726_v47, %v6629_v46  ;;  %v6637_v52 = vld [vmem:[%s11287_s1 + $0x60] sm:$0xf]  ;;  %v8728_v53 = vld [vmem:[%s11287_s1 + $0x64] sm:$0xf0] }
  0x1a   : > { %1665 = vmatpush.bf16.msra.mxu1 %v8712_v5  ;;  %v6634_v51 = vor.u32 %v8725_v48, %v6631_v49  ;;  %v8727_v54 = vld [vmem:[%s11287_s1 + $0x64] sm:$0xf]  ;;  %v6639_v55 = vld [vmem:[%s11287_s1 + $0x68] sm:$0xf0]  ;;  %v6638_v56 = vor.u32 %v8728_v53, %v6637_v52  ;;  %v6645_v58 = vld [vmem:[%s11287_s1 + $0x70] sm:$0xf] }
  0x1b   : > { %v6642_v57 = vor.u32 %v8727_v54, %v6639_v55  ;;  %v8730_v59 = vld [vmem:[%s11287_s1 + $0x74] sm:$0xf0]  ;;  %v8729_v60 = vld [vmem:[%s11287_s1 + $0x74] sm:$0xf]  ;;  %v6647_v61 = vld [vmem:[%s11287_s1 + $0x78] sm:$0xf0] }
  0x1c   : > { %v2120_v62 = vld [vmem:[%s11291_s5] sm:$0xf]  ;;  %v6646_v0 = vor.u32 %v8730_v59, %v6645_v58  ;;  %v6650_v1 = vor.u32 %v8729_v60, %v6647_v61  ;;  %v8732_v3 = vld [vmem:[%s11287_s1 + $0x84] sm:$0xf0]  ;;  %v8731_v4 = vld [vmem:[%s11287_s1 + $0x84] sm:$0xf] }
  0x1d   : > { %1337 = vmatpush.bf16.msra.mxu0 %v8703_v6  ;;  %v2222_v63 = vsel %vm2156_vm0, %v2120_v62, 0  ;;  %v6653_v2 = vld [vmem:[%s11287_s1 + $0x80] sm:$0xf]  ;;  %v6655_v5 = vld [vmem:[%s11287_s1 + $0x88] sm:$0xf0] }
  0x1e   : > { %1666 = vmatpush.bf16.msra.mxu1 %v8711_v7  ;;  %2231 = vmatpush.bf16.msra.mxu3 %v2222_v63  ;;  %v6654_v6 = vor.u32 %v8732_v3, %v6653_v2  ;;  %v6658_v7 = vor.u32 %v8731_v4, %v6655_v5  ;;  %v6661_v16 = vld [vmem:[%s11287_s1 + $0x90] sm:$0xf]  ;;  %v6663_v19 = vld [vmem:[%s11287_s1 + $0x98] sm:$0xf0]  ;;  %v8736_v34 = vld [vmem:[%s11287_s1 + $0xa4] sm:$0xf0] }
  0x1f   : > { %v8735_v35 = vld [vmem:[%s11287_s1 + $0xa4] sm:$0xf]  ;;  %v6671_v36 = vld [vmem:[%s11287_s1 + $0xa8] sm:$0xf0]  ;;  %v8737_v52 = vld [vmem:[%s11287_s1 + $0xb4] sm:$0xf] }
  0x20   : > { %v6674_v41 = vor.u32 %v8735_v35, %v6671_v36  ;;  %v6679_v53 = vld [vmem:[%s11287_s1 + $0xb8] sm:$0xf0]  ;;  %v7163_v54 = vld [vmem:[%s11291_s5 + $0x4] sm:$0xf]  ;;  %v6685_v5 = vld [vmem:[%s11287_s1 + $0xc0] sm:$0xf] }
  0x21   : > { %1338 = vmatpush.bf16.msra.mxu0 %v8702_v8  ;;  %v6682_v60 = vor.u32 %v8737_v52, %v6679_v53 }
  0x22   : > { %1667 = vmatpush.bf16.msra.mxu1 %v8710_v9 }
  0x25   : > { %1339 = vmatpush.bf16.msra.mxu0 %v8701_v10 }
  0x26   : > { %1668 = vmatpush.bf16.msra.mxu1 %v8709_v11 }
  0x29   : > { %1340 = vmatpush.bf16.msra.mxu0 %v8700_v12 }
  0x2a   : > { %1669 = vmatpush.bf16.msra.mxu1 %v8708_v13 }
  0x2d   : > { %1341 = vmatpush.bf16.msra.mxu0 %v8699_v17  ;;  %v8734_v17 = vld [vmem:[%s11287_s1 + $0x94] sm:$0xf0] }
  0x2e   : > { %1670 = vmatpush.bf16.msra.mxu1 %v8707_v18  ;;  %v8733_v18 = vld [vmem:[%s11287_s1 + $0x94] sm:$0xf]  ;;  %v6662_v23 = vor.u32 %v8734_v17, %v6661_v16 }
  0x2f   : > { %v6666_v24 = vor.u32 %v8733_v18, %v6663_v19 }
  0x30   : > { %1342 = vmatmul.bf16.vlgmr.msra.gmra.mxu0 %v6590_v20 }
  0x31   : > { %1671 = vmatmul.bf16.vlgmr.msra.gmra.mxu1 %v6594_v21 }
  0x40   : > { %1347 = vmatmul.bf16.gmra.mxu0 %v6598_v26 }
  0x41   : > { %1676 = vmatmul.bf16.gmra.mxu1 %v6602_v27 }
  0x50   : > { %1352 = vmatmul.bf16.gmra.mxu0 %v6606_v32 }
  0x51   : > { %1681 = vmatmul.bf16.gmra.mxu1 %v6610_v33  ;;  %v6669_v33 = vld [vmem:[%s11287_s1 + $0xa0] sm:$0xf] }
  0x52   : > { %v6670_v40 = vor.u32 %v8736_v34, %v6669_v33 }
  0x60   : > { %1357 = vmatmul.bf16.gmra.mxu0 %v6614_v38 }
  0x61   : > { %1686 = vmatmul.bf16.gmra.mxu1 %v6618_v39 }
  0x70   : > { %1362 = vmatmul.bf16.gmra.mxu0 %v6622_v44 }
  0x71   : > { %1691 = vmatmul.bf16.gmra.mxu1 %v6626_v45 }
  0x80   : > { %1367 = vmatmul.bf16.gmra.mxu0 %v6630_v50  ;;  %v6677_v50 = vld [vmem:[%s11287_s1 + $0xb0] sm:$0xf] }
  0x81   : > { %1696 = vmatmul.bf16.gmra.mxu1 %v6634_v51  ;;  %v8738_v51 = vld [vmem:[%s11287_s1 + $0xb4] sm:$0xf0] }
  0x82   : > { %v6678_v59 = vor.u32 %v8738_v51, %v6677_v50 }
  0x90   : > { %1372 = vmatmul.bf16.gmra.mxu0 %v6638_v56 }
  0x91   : > { %1701 = vmatmul.bf16.gmra.mxu1 %v6642_v57  ;;  %v2158_v57 = vsel %vm2156_vm0, %v7163_v54, 0 }
  0x92   : > { %2167 = vmatpush.bf16.msra.mxu2 %v2158_v57  ;;  %v8746_v57 = vld [vmem:[%s11287_s1 + $0xf4] sm:$0xf0] }
  0xa0   : > { %1377 = vmatmul.bf16.gmra.mxu0 %v6646_v0 }
  0xa1   : > { %1706 = vmatmul.bf16.gmra.mxu1 %v6650_v1 }
  0xad   : > { %v1343_v8 = vpop.f32.mrf.mxu0 }
  0xae   : > { %v1672_v9 = vpop.f32.mrf.mxu1 }
  0xaf   : > { %v1673_v10 = vadd.f32 %v1672_v9, %v1343_v8  ;;  %v6687_v8 = vld [vmem:[%s11287_s1 + $0xc8] sm:$0xf0] }
  0xb0   : > { %1382 = vmatmul.bf16.gmra.mxu0 %v6654_v6  ;;  %v8740_v6 = vld [vmem:[%s11287_s1 + $0xc4] sm:$0xf0] }
  0xb1   : > { %1711 = vmatmul.bf16.gmra.mxu1 %v6658_v7  ;;  %v1992_v13 = vpack.c.bf16 %v1673_v10, %v1673_v10  ;;  %v8739_v7 = vld [vmem:[%s11287_s1 + $0xc4] sm:$0xf] }
  0xb3   : > { %v2197_v20 = vunpack.c.l.b16 %v1992_v13  ;;  %v6690_v13 = vor.u32 %v8739_v7, %v6687_v8 }
  0xb5   : > { %v1345_v11 = vpop.f32.mrf.mxu0 }
  0xb6   : > { %v1674_v12 = vpop.f32.mrf.mxu1 }
  0xb7   : > { %v1675_v14 = vadd.f32 %v1674_v12, %v1345_v11  ;;  %v6686_v12 = vor.u32 %v8740_v6, %v6685_v5 }
  0xb9   : > { %v1993_v15 = vpack.c.bf16 %v1675_v14, %v1675_v14 }
  0xbb   : > { %v2198_v21 = vunpack.c.l.b16 %v1993_v15 }
  0xbd   : > { %v2205_v22 = vpack.c.b16 %v2198_v21, %v2197_v20  ;;  %v1348_v25 = vpop.f32.mrf.mxu0 }
  0xbe   : > { %v1677_v26 = vpop.f32.mrf.mxu1 }
  0xbf   : > { %7168 = vmatmul.msk.bf16.vlgmr.msra.gmra.mxu3 %vm2143_vm1, %v2205_v22  ;;  %v1678_v27 = vadd.f32 %v1677_v26, %v1348_v25  ;;  %v6693_v22 = vld [vmem:[%s11287_s1 + $0xd0] sm:$0xf]  ;;  %v6695_v25 = vld [vmem:[%s11287_s1 + $0xd8] sm:$0xf0] }
  0xc0   : > { %1387 = vmatmul.bf16.gmra.mxu0 %v6662_v23  ;;  %v8742_v23 = vld [vmem:[%s11287_s1 + $0xd4] sm:$0xf0] }
  0xc1   : > { %1716 = vmatmul.bf16.gmra.mxu1 %v6666_v24  ;;  %v1994_v30 = vpack.c.bf16 %v1678_v27, %v1678_v27  ;;  %v8741_v24 = vld [vmem:[%s11287_s1 + $0xd4] sm:$0xf] }
  0xc3   : > { %v2199_v37 = vunpack.c.l.b16 %v1994_v30  ;;  %v6698_v30 = vor.u32 %v8741_v24, %v6695_v25 }
  0xc5   : > { %v1350_v28 = vpop.f32.mrf.mxu0 }
  0xc6   : > { %v1679_v29 = vpop.f32.mrf.mxu1 }
  0xc7   : > { %v1680_v31 = vadd.f32 %v1679_v29, %v1350_v28  ;;  %v6694_v29 = vor.u32 %v8742_v23, %v6693_v22 }
  0xc9   : > { %v1995_v32 = vpack.c.bf16 %v1680_v31, %v1680_v31 }
  0xcb   : > { %v2200_v38 = vunpack.c.l.b16 %v1995_v32 }
  0xcd   : > { %v2206_v39 = vpack.c.b16 %v2200_v38, %v2199_v37  ;;  %v1353_v42 = vpop.f32.mrf.mxu0 }
  0xce   : > { %v1682_v43 = vpop.f32.mrf.mxu1 }
  0xcf   : > { %7169 = vmatmul.msk.bf16.gmra.mxu3 %vm2143_vm1, %v2206_v39  ;;  %v1683_v44 = vadd.f32 %v1682_v43, %v1353_v42  ;;  %v6701_v39 = vld [vmem:[%s11287_s1 + $0xe0] sm:$0xf]  ;;  %v6703_v42 = vld [vmem:[%s11287_s1 + $0xe8] sm:$0xf0] }
  0xd0   : > { %1392 = vmatmul.bf16.gmra.mxu0 %v6670_v40  ;;  %v8744_v40 = vld [vmem:[%s11287_s1 + $0xe4] sm:$0xf0] }
  0xd1   : > { %1721 = vmatmul.bf16.gmra.mxu1 %v6674_v41  ;;  %v1996_v47 = vpack.c.bf16 %v1683_v44, %v1683_v44  ;;  %v8743_v41 = vld [vmem:[%s11287_s1 + $0xe4] sm:$0xf] }
  0xd3   : > { %v2201_v55 = vunpack.c.l.b16 %v1996_v47  ;;  %v6706_v47 = vor.u32 %v8743_v41, %v6703_v42 }
  0xd5   : > { %v1355_v45 = vpop.f32.mrf.mxu0 }
  0xd6   : > { %v1684_v46 = vpop.f32.mrf.mxu1 }
  0xd7   : > { %v1685_v48 = vadd.f32 %v1684_v46, %v1355_v45  ;;  %v6702_v46 = vor.u32 %v8744_v40, %v6701_v39 }
  0xd9   : > { %v1997_v49 = vpack.c.bf16 %v1685_v48, %v1685_v48 }
  0xdb   : > { %v2202_v56 = vunpack.c.l.b16 %v1997_v49 }
  0xdd   : > { %v2207_v58 = vpack.c.b16 %v2202_v56, %v2201_v55  ;;  %v1358_v61 = vpop.f32.mrf.mxu0  ;;  %v6709_v56 = vld [vmem:[%s11287_s1 + $0xf0] sm:$0xf] }
  0xde   : > { %v1687_v62 = vpop.f32.mrf.mxu1 }
  0xdf   : > { %7170 = vmatmul.msk.bf16.gmra.mxu3 %vm2143_vm1, %v2207_v58  ;;  %v1688_v63 = vadd.f32 %v1687_v62, %v1358_v61  ;;  %v8745_v58 = vld [vmem:[%s11287_s1 + $0xf4] sm:$0xf] }
  0xe0   : > { %1397 = vmatmul.bf16.gmra.mxu0 %v6678_v59  ;;  %v6711_v59 = vld [vmem:[%s11287_s1 + $0xf8] sm:$0xf0] }
  0xe1   : > { %1726 = vmatmul.bf16.gmra.mxu1 %v6682_v60  ;;  %v1998_v2 = vpack.c.bf16 %v1688_v63, %v1688_v63  ;;  %v7172_v60 = vld [vmem:[%s11291_s5 + $0x8] sm:$0xf] }
  0xe2   : > { %v2288_v63 = vsel %vm2156_vm0, %v7172_v60, 0 }
  0xe3   : > { %v2203_v9 = vunpack.c.l.b16 %v1998_v2  ;;  %2297 = vmatpush.bf16.msrb.mxu2 %v2288_v63  ;;  %v6714_v2 = vor.u32 %v8745_v58, %v6711_v59  ;;  %v8754_v63 = vld [vmem:[%s11287_s1 + $0x134] sm:$0xf0] }
  0xe5   : > { %v1360_v0 = vpop.f32.mrf.mxu0 }
  0xe6   : > { %v1689_v1 = vpop.f32.mrf.mxu1 }
  0xe7   : > { %v1690_v3 = vadd.f32 %v1689_v1, %v1360_v0  ;;  %v6710_v1 = vor.u32 %v8746_v57, %v6709_v56 }
  0xe9   : > { %v1999_v4 = vpack.c.bf16 %v1690_v3, %v1690_v3 }
  0xeb   : > { %v2204_v10 = vunpack.c.l.b16 %v1999_v4 }
  0xed   : > { %v2208_v11 = vpack.c.b16 %v2204_v10, %v2203_v9  ;;  %v1363_v14 = vpop.f32.mrf.mxu0 }
  0xee   : > { %v1692_v15 = vpop.f32.mrf.mxu1 }
  0xef   : > { %7171 = vmatmul.msk.bf16.gmra.mxu3 %vm2143_vm1, %v2208_v11  ;;  %v1693_v16 = vadd.f32 %v1692_v15, %v1363_v14  ;;  %v6717_v11 = vld [vmem:[%s11287_s1 + $0x100] sm:$0xf]  ;;  %v6719_v14 = vld [vmem:[%s11287_s1 + $0x108] sm:$0xf0] }
  0xf0   : > { %1402 = vmatmul.bf16.gmra.mxu0 %v6686_v12  ;;  %v8748_v12 = vld [vmem:[%s11287_s1 + $0x104] sm:$0xf0] }
  0xf1   : > { %1731 = vmatmul.bf16.gmra.mxu1 %v6690_v13  ;;  %v2000_v19 = vpack.c.bf16 %v1693_v16, %v1693_v16  ;;  %v8747_v13 = vld [vmem:[%s11287_s1 + $0x104] sm:$0xf] }
  0xf3   : > { %v2131_v26 = vunpack.c.l.b16 %v2000_v19  ;;  %v6722_v19 = vor.u32 %v8747_v13, %v6719_v14 }
  0xf5   : > { %v1365_v17 = vpop.f32.mrf.mxu0 }
  0xf6   : > { %v1694_v18 = vpop.f32.mrf.mxu1 }
  0xf7   : > { %v1695_v20 = vadd.f32 %v1694_v18, %v1365_v17  ;;  %v6718_v18 = vor.u32 %v8748_v12, %v6717_v11 }
  0xf9   : > { %v2001_v21 = vpack.c.bf16 %v1695_v20, %v1695_v20 }
  0xfb   : > { %v2132_v27 = vunpack.c.l.b16 %v2001_v21 }
  0xfd   : > { %v2139_v28 = vpack.c.b16 %v2132_v27, %v2131_v26  ;;  %v1368_v31 = vpop.f32.mrf.mxu0 }
  0xfe   : > { %v1697_v32 = vpop.f32.mrf.mxu1 }
  0xff   : > { %7164 = vmatmul.msk.bf16.vlgmr.msra.gmra.mxu2 %vm2143_vm1, %v2139_v28  ;;  %v1698_v33 = vadd.f32 %v1697_v32, %v1368_v31  ;;  %v6725_v28 = vld [vmem:[%s11287_s1 + $0x110] sm:$0xf]  ;;  %v6727_v31 = vld [vmem:[%s11287_s1 + $0x118] sm:$0xf0] }
 0x100   : > { %1407 = vmatmul.bf16.gmra.mxu0 %v6694_v29  ;;  %v8750_v29 = vld [vmem:[%s11287_s1 + $0x114] sm:$0xf0] }
 0x101   : > { %1736 = vmatmul.bf16.gmra.mxu1 %v6698_v30  ;;  %v2002_v36 = vpack.c.bf16 %v1698_v33, %v1698_v33  ;;  %v8749_v30 = vld [vmem:[%s11287_s1 + $0x114] sm:$0xf] }
 0x103   : > { %v2133_v43 = vunpack.c.l.b16 %v2002_v36  ;;  %v6730_v36 = vor.u32 %v8749_v30, %v6727_v31 }
 0x105   : > { %v1370_v34 = vpop.f32.mrf.mxu0 }
 0x106   : > { %v1699_v35 = vpop.f32.mrf.mxu1 }
 0x107   : > { %v1700_v37 = vadd.f32 %v1699_v35, %v1370_v34  ;;  %v6726_v35 = vor.u32 %v8750_v29, %v6725_v28 }
 0x109   : > { %v2003_v38 = vpack.c.bf16 %v1700_v37, %v1700_v37 }
 0x10b   : > { %v2134_v44 = vunpack.c.l.b16 %v2003_v38 }
 0x10d   : > { %v2140_v45 = vpack.c.b16 %v2134_v44, %v2133_v43  ;;  %v1373_v48 = vpop.f32.mrf.mxu0 }
 0x10e   : > { %v1702_v49 = vpop.f32.mrf.mxu1 }
 0x10f   : > { %7165 = vmatmul.msk.bf16.gmra.mxu2 %vm2143_vm1, %v2140_v45  ;;  %v1703_v50 = vadd.f32 %v1702_v49, %v1373_v48  ;;  %v6733_v45 = vld [vmem:[%s11287_s1 + $0x120] sm:$0xf]  ;;  %v6735_v48 = vld [vmem:[%s11287_s1 + $0x128] sm:$0xf0] }
 0x110   : > { %1412 = vmatmul.bf16.gmra.mxu0 %v6702_v46  ;;  %v8752_v46 = vld [vmem:[%s11287_s1 + $0x124] sm:$0xf0] }
 0x111   : > { %1741 = vmatmul.bf16.gmra.mxu1 %v6706_v47  ;;  %v2004_v53 = vpack.c.bf16 %v1703_v50, %v1703_v50  ;;  %v8751_v47 = vld [vmem:[%s11287_s1 + $0x124] sm:$0xf] }
 0x113   : > { %v2135_v61 = vunpack.c.l.b16 %v2004_v53  ;;  %v6738_v53 = vor.u32 %v8751_v47, %v6735_v48 }
 0x115   : > { %v1375_v51 = vpop.f32.mrf.mxu0 }
 0x116   : > { %v1704_v52 = vpop.f32.mrf.mxu1 }
 0x117   : > { %v1705_v54 = vadd.f32 %v1704_v52, %v1375_v51  ;;  %v6734_v52 = vor.u32 %v8752_v46, %v6733_v45 }
 0x119   : > { %v2005_v55 = vpack.c.bf16 %v1705_v54, %v1705_v54 }
 0x11b   : > { %v2136_v62 = vunpack.c.l.b16 %v2005_v55 }
 0x11d   : > { %v2141_v0 = vpack.c.b16 %v2136_v62, %v2135_v61  ;;  %v1378_v3 = vpop.f32.mrf.mxu0  ;;  %v6741_v62 = vld [vmem:[%s11287_s1 + $0x130] sm:$0xf] }
 0x11e   : > { %v1707_v4 = vpop.f32.mrf.mxu1 }
 0x11f   : > { %7166 = vmatmul.msk.bf16.gmra.mxu2 %vm2143_vm1, %v2141_v0  ;;  %v1708_v5 = vadd.f32 %v1707_v4, %v1378_v3  ;;  %v8753_v0 = vld [vmem:[%s11287_s1 + $0x134] sm:$0xf] }
 0x120   : > { %1417 = vmatmul.bf16.gmra.mxu0 %v6710_v1  ;;  %v6743_v1 = vld [vmem:[%s11287_s1 + $0x138] sm:$0xf0] }
 0x121   : > { %1746 = vmatmul.bf16.gmra.mxu1 %v6714_v2  ;;  %v2006_v8 = vpack.c.bf16 %v1708_v5, %v1708_v5  ;;  %v7177_v2 = vld [vmem:[%s11291_s5 + $0xc] sm:$0xf] }
 0x122   : > { %v2362_v5 = vsel %vm2156_vm0, %v7177_v2, 0 }
 0x123   : > { %v2137_v15 = vunpack.c.l.b16 %v2006_v8  ;;  %2371 = vmatpush.bf16.msrb.mxu3 %v2362_v5  ;;  %v6746_v8 = vor.u32 %v8753_v0, %v6743_v1 }
 0x125   : > { %v1380_v6 = vpop.f32.mrf.mxu0 }
 0x126   : > { %v1709_v7 = vpop.f32.mrf.mxu1 }
 0x127   : > { %v1710_v9 = vadd.f32 %v1709_v7, %v1380_v6  ;;  %v6742_v7 = vor.u32 %v8754_v63, %v6741_v62 }
 0x129   : > { %v2007_v10 = vpack.c.bf16 %v1710_v9, %v1710_v9 }
 0x12b   : > { %v2138_v16 = vunpack.c.l.b16 %v2007_v10 }
 0x12d   : > { %v2142_v17 = vpack.c.b16 %v2138_v16, %v2137_v15  ;;  %v1383_v20 = vpop.f32.mrf.mxu0 }
 0x12e   : > { %v1712_v21 = vpop.f32.mrf.mxu1 }
 0x12f   : > { %7167 = vmatmul.msk.bf16.gmra.mxu2 %vm2143_vm1, %v2142_v17  ;;  %v1713_v22 = vadd.f32 %v1712_v21, %v1383_v20  ;;  %v6749_v17 = vld [vmem:[%s11287_s1 + $0x140] sm:$0xf]  ;;  %v6751_v20 = vld [vmem:[%s11287_s1 + $0x148] sm:$0xf0] }
 0x130   : > { %1422 = vmatmul.bf16.gmra.mxu0 %v6718_v18  ;;  %v8756_v18 = vld [vmem:[%s11287_s1 + $0x144] sm:$0xf0] }
 0x131   : > { %1751 = vmatmul.bf16.gmra.mxu1 %v6722_v19  ;;  %v2008_v25 = vpack.c.bf16 %v1713_v22, %v1713_v22  ;;  %v8755_v19 = vld [vmem:[%s11287_s1 + $0x144] sm:$0xf] }
 0x133   : > { %v2263_v32 = vunpack.c.l.b16 %v2008_v25  ;;  %v6754_v25 = vor.u32 %v8755_v19, %v6751_v20 }
 0x135   : > { %v1385_v23 = vpop.f32.mrf.mxu0 }
 0x136   : > { %v1714_v24 = vpop.f32.mrf.mxu1 }
 0x137   : > { %v1715_v26 = vadd.f32 %v1714_v24, %v1385_v23  ;;  %v6750_v24 = vor.u32 %v8756_v18, %v6749_v17  ;;  %v6775_v17 = vld [vmem:[%s11287_s1 + $0x178] sm:$0xf0]  ;;  %v7182_v18 = vld [vmem:[%s11291_s5 + $0x10] sm:$0xf] }
 0x139   : > { %v2009_v27 = vpack.c.bf16 %v1715_v26, %v1715_v26 }
 0x13b   : > { %v2264_v33 = vunpack.c.l.b16 %v2009_v27 }
 0x13d   : > { %v2271_v34 = vpack.c.b16 %v2264_v33, %v2263_v32  ;;  %v1388_v37 = vpop.f32.mrf.mxu0 }
 0x13e   : > { %v1717_v38 = vpop.f32.mrf.mxu1 }
 0x13f   : > { %7173 = vmatmul.msk.bf16.vlgmr.msrb.gmra.mxu2 %vm2143_vm1, %v2271_v34  ;;  %v1718_v39 = vadd.f32 %v1717_v38, %v1388_v37  ;;  %v8757_v37 = vld [vmem:[%s11287_s1 + $0x154] sm:$0xf]  ;;  %v6759_v38 = vld [vmem:[%s11287_s1 + $0x158] sm:$0xf0] }
 0x140   : > { %1427 = vmatmul.bf16.gmra.mxu0 %v6726_v35  ;;  %v6757_v35 = vld [vmem:[%s11287_s1 + $0x150] sm:$0xf] }
 0x141   : > { %1756 = vmatmul.bf16.gmra.mxu1 %v6730_v36  ;;  %v2010_v42 = vpack.c.bf16 %v1718_v39, %v1718_v39  ;;  %v8758_v36 = vld [vmem:[%s11287_s1 + $0x154] sm:$0xf0] }
 0x142   : > { %v2233_v29 = vpop.f32.mrf.mxu3 }
 0x143   : > { %v2265_v49 = vunpack.c.l.b16 %v2010_v42  ;;  %v6758_v42 = vor.u32 %v8758_v36, %v6757_v35 }
 0x145   : > { %v1390_v40 = vpop.f32.mrf.mxu0 }
 0x146   : > { %v1719_v41 = vpop.f32.mrf.mxu1 }
 0x147   : > { %v1720_v43 = vadd.f32 %v1719_v41, %v1390_v40 }
 0x149   : > { %v2011_v44 = vpack.c.bf16 %v1720_v43, %v1720_v43  ;;  %v6762_v43 = vor.u32 %v8757_v37, %v6759_v38  ;;  %v6781_v37 = vld [vmem:[%s11287_s1 + $0x180] sm:$0xf] }
 0x14a   : > { %v9505_v46 = vpop.f32.mrf.mxu3 }
 0x14b   : > { %v2266_v50 = vunpack.c.l.b16 %v2011_v44 }
 0x14d   : > { %v2272_v51 = vpack.c.b16 %v2266_v50, %v2265_v49  ;;  %v1393_v54 = vpop.f32.mrf.mxu0 }
 0x14e   : > { %v1722_v55 = vpop.f32.mrf.mxu1 }
 0x14f   : > { %7174 = vmatmul.msk.bf16.gmra.mxu2 %vm2143_vm1, %v2272_v51  ;;  %v1723_v56 = vadd.f32 %v1722_v55, %v1393_v54 }
 0x150   : > { %1432 = vmatmul.bf16.gmra.mxu0 %v6734_v52 }
 0x151   : > { %1761 = vmatmul.bf16.gmra.mxu1 %v6738_v53  ;;  %v2012_v59 = vpack.c.bf16 %v1723_v56, %v1723_v56  ;;  %v6765_v56 = vld [vmem:[%s11287_s1 + $0x160] sm:$0xf] }
 0x152   : > { %v2238_v54 = vpop.f32.mrf.mxu3 }
 0x153   : > { %v2267_v3 = vunpack.c.l.b16 %v2012_v59  ;;  %v8759_v59 = vld [vmem:[%s11287_s1 + $0x164] sm:$0xf] }
 0x155   : > { %v1395_v57 = vpop.f32.mrf.mxu0 }
 0x156   : > { %v1724_v58 = vpop.f32.mrf.mxu1 }
 0x157   : > { %v1725_v60 = vadd.f32 %v1724_v58, %v1395_v57  ;;  %v8760_v58 = vld [vmem:[%s11287_s1 + $0x164] sm:$0xf0] }
 0x158   : > { %v6766_v0 = vor.u32 %v8760_v58, %v6765_v56 }
 0x159   : > { %v2013_v61 = vpack.c.bf16 %v1725_v60, %v1725_v60  ;;  %v6767_v60 = vld [vmem:[%s11287_s1 + $0x168] sm:$0xf0] }
 0x15a   : > { %v6770_v1 = vor.u32 %v8759_v59, %v6767_v60  ;;  %v9525_v5 = vpop.f32.mrf.mxu3 }
 0x15b   : > { %v2268_v4 = vunpack.c.l.b16 %v2013_v61 }
 0x15d   : > { %v2273_v6 = vpack.c.b16 %v2268_v4, %v2267_v3  ;;  %v1398_v9 = vpop.f32.mrf.mxu0 }
 0x15e   : > { %v1727_v10 = vpop.f32.mrf.mxu1 }
 0x15f   : > { %7175 = vmatmul.msk.bf16.gmra.mxu2 %vm2143_vm1, %v2273_v6  ;;  %v1728_v11 = vadd.f32 %v1727_v10, %v1398_v9 }
 0x160   : > { %1437 = vmatmul.bf16.gmra.mxu0 %v6742_v7 }
 0x161   : > { %1766 = vmatmul.bf16.gmra.mxu1 %v6746_v8  ;;  %v2014_v14 = vpack.c.bf16 %v1728_v11, %v1728_v11 }
 0x163   : > { %v2269_v21 = vunpack.c.l.b16 %v2014_v14  ;;  %v8762_v14 = vld [vmem:[%s11287_s1 + $0x174] sm:$0xf0] }
 0x165   : > { %v1400_v12 = vpop.f32.mrf.mxu0 }
 0x166   : > { %v1729_v13 = vpop.f32.mrf.mxu1 }
 0x167   : > { %v1730_v15 = vadd.f32 %v1729_v13, %v1400_v12  ;;  %v6773_v13 = vld [vmem:[%s11287_s1 + $0x170] sm:$0xf] }
 0x169   : > { %v2015_v16 = vpack.c.bf16 %v1730_v15, %v1730_v15 }
 0x16b   : > { %v2270_v22 = vunpack.c.l.b16 %v2015_v16  ;;  %v8761_v16 = vld [vmem:[%s11287_s1 + $0x174] sm:$0xf] }
 0x16d   : > { %v2274_v23 = vpack.c.b16 %v2270_v22, %v2269_v21  ;;  %v1403_v26 = vpop.f32.mrf.mxu0  ;;  %v2436_v21 = vsel %vm2156_vm0, %v7182_v18, 0  ;;  %v2243_v22 = vpop.f32.mrf.mxu3 }
 0x16e   : > { %v1732_v27 = vpop.f32.mrf.mxu1  ;;  %2445 = vmatpush.bf16.msra.mxu2 %v2436_v21 }
 0x16f   : > { %7176 = vmatmul.msk.bf16.gmra.mxu2 %vm2143_vm1, %v2274_v23  ;;  %v1733_v28 = vadd.f32 %v1732_v27, %v1403_v26 }
 0x170   : > { %1442 = vmatmul.bf16.gmra.mxu0 %v6750_v24  ;;  %v6774_v24 = vor.u32 %v8762_v14, %v6773_v13 }
 0x171   : > { %1771 = vmatmul.bf16.gmra.mxu1 %v6754_v25  ;;  %v2016_v32 = vpack.c.bf16 %v1733_v28, %v1733_v28  ;;  %v6778_v25 = vor.u32 %v8761_v16, %v6775_v17 }
 0x173   : > { %v2337_v39 = vunpack.c.l.b16 %v2016_v32 }
 0x175   : > { %v1405_v30 = vpop.f32.mrf.mxu0  ;;  %v9550_v35 = vpop.f32.mrf.mxu3 }
 0x176   : > { %v1734_v31 = vpop.f32.mrf.mxu1 }
 0x177   : > { %v1735_v33 = vadd.f32 %v1734_v31, %v1405_v30 }
 0x179   : > { %v2017_v34 = vpack.c.bf16 %v1735_v33, %v1735_v33 }
 0x17b   : > { %v2338_v40 = vunpack.c.l.b16 %v2017_v34 }
 0x17d   : > { %v2345_v41 = vpack.c.b16 %v2338_v40, %v2337_v39  ;;  %v1408_v44 = vpop.f32.mrf.mxu0  ;;  %v8764_v39 = vld [vmem:[%s11287_s1 + $0x184] sm:$0xf0]  ;;  %v8763_v40 = vld [vmem:[%s11287_s1 + $0x184] sm:$0xf] }
 0x17e   : > { %v1737_v45 = vpop.f32.mrf.mxu1 }
 0x17f   : > { %7178 = vmatmul.msk.bf16.vlgmr.msrb.gmra.mxu3 %vm2143_vm1, %v2345_v41  ;;  %v1738_v48 = vadd.f32 %v1737_v45, %v1408_v44  ;;  %v6783_v41 = vld [vmem:[%s11287_s1 + $0x188] sm:$0xf0]  ;;  %v6782_v45 = vor.u32 %v8764_v39, %v6781_v37 }
 0x180   : > { %1447 = vmatmul.bf16.gmra.mxu0 %v6758_v42 }
 0x181   : > { %1776 = vmatmul.bf16.gmra.mxu1 %v6762_v43  ;;  %v2018_v52 = vpack.c.bf16 %v1738_v48, %v1738_v48 }
 0x182   : > { %v2169_v47 = vpop.f32.mrf.mxu2 }
 0x183   : > { %v9508_v49 = vadd.f32 %v2233_v29, %v2169_v47  ;;  %v2339_v61 = vunpack.c.l.b16 %v2018_v52  ;;  %v6786_v47 = vor.u32 %v8763_v40, %v6783_v41 }
 0x185   : > { %v1410_v50 = vpop.f32.mrf.mxu0 }
 0x186   : > { %v1739_v51 = vpop.f32.mrf.mxu1 }
 0x187   : > { %v1740_v53 = vadd.f32 %v1739_v51, %v1410_v50  ;;  %v2248_v51 = vpop.f32.mrf.mxu3 }
 0x189   : > { %v2019_v55 = vpack.c.bf16 %v1740_v53, %v1740_v53 }
 0x18a   : > { %v9513_v57 = vpop.f32.mrf.mxu2 }
 0x18b   : > { %v2340_v62 = vunpack.c.l.b16 %v2019_v55 }
 0x18d   : > { %v2346_v63 = vpack.c.b16 %v2340_v62, %v2339_v61  ;;  %v1413_v2 = vpop.f32.mrf.mxu0  ;;  %v6789_v61 = vld [vmem:[%s11287_s1 + $0x190] sm:$0xf] }
 0x18e   : > { %v1742_v3 = vpop.f32.mrf.mxu1 }
 0x18f   : > { %7179 = vmatmul.msk.bf16.gmra.mxu3 %vm2143_vm1, %v2346_v63  ;;  %v1743_v6 = vadd.f32 %v1742_v3, %v1413_v2  ;;  %v8766_v63 = vld [vmem:[%s11287_s1 + $0x194] sm:$0xf0] }
 0x190   : > { %1452 = vmatmul.bf16.gmra.mxu0 %v6766_v0  ;;  %v8765_v0 = vld [vmem:[%s11287_s1 + $0x194] sm:$0xf] }
 0x191   : > { %1781 = vmatmul.bf16.gmra.mxu1 %v6770_v1  ;;  %v2020_v10 = vpack.c.bf16 %v1743_v6, %v1743_v6  ;;  %v6791_v1 = vld [vmem:[%s11287_s1 + $0x198] sm:$0xf0]  ;;  %v6790_v6 = vor.u32 %v8766_v63, %v6789_v61 }
 0x192   : > { %v2174_v4 = vpop.f32.mrf.mxu2 }
 0x193   : > { %v9527_v7 = vadd.f32 %v2238_v54, %v2174_v4  ;;  %v2341_v19 = vunpack.c.l.b16 %v2020_v10 }
 0x195   : > { %v1415_v8 = vpop.f32.mrf.mxu0 }
 0x196   : > { %v1744_v9 = vpop.f32.mrf.mxu1 }
 0x197   : > { %v1745_v11 = vadd.f32 %v1744_v9, %v1415_v8  ;;  %v6794_v8 = vor.u32 %v8765_v0, %v6791_v1 }
 0x199   : > { %v2021_v12 = vpack.c.bf16 %v1745_v11, %v1745_v11 }
 0x19a   : > { %v9535_v15 = vpop.f32.mrf.mxu2 }
 0x19b   : > { %v2342_v20 = vunpack.c.l.b16 %v2021_v12 }
 0x19d   : > { %v2347_v23 = vpack.c.b16 %v2342_v20, %v2341_v19  ;;  %v1418_v26 = vpop.f32.mrf.mxu0  ;;  %v6797_v20 = vld [vmem:[%s11287_s1 + $0x1a0] sm:$0xf] }
 0x19e   : > { %v1747_v27 = vpop.f32.mrf.mxu1 }
 0x19f   : > { %7180 = vmatmul.msk.bf16.gmra.mxu3 %vm2143_vm1, %v2347_v23  ;;  %v1748_v29 = vadd.f32 %v1747_v27, %v1418_v26  ;;  %v6799_v23 = vld [vmem:[%s11287_s1 + $0x1a8] sm:$0xf0] }
 0x1a0   : > { %1457 = vmatmul.bf16.gmra.mxu0 %v6774_v24 }
 0x1a1   : > { %1786 = vmatmul.bf16.gmra.mxu1 %v6778_v25  ;;  %v2022_v33 = vpack.c.bf16 %v1748_v29, %v1748_v29 }
 0x1a2   : > { %v2179_v28 = vpop.f32.mrf.mxu2 }
 0x1a3   : > { %v9548_v30 = vadd.f32 %v2243_v22, %v2179_v28  ;;  %v2343_v42 = vunpack.c.l.b16 %v2022_v33  ;;  %v8768_v22 = vld [vmem:[%s11287_s1 + $0x1a4] sm:$0xf0] }
 0x1a4   : > { %v6798_v27 = vor.u32 %v8768_v22, %v6797_v20 }
 0x1a5   : > { %v1420_v31 = vpop.f32.mrf.mxu0 }
 0x1a6   : > { %v1749_v32 = vpop.f32.mrf.mxu1 }
 0x1a7   : > { %v1750_v34 = vadd.f32 %v1749_v32, %v1420_v31 }
 0x1a9   : > { %v2023_v36 = vpack.c.bf16 %v1750_v34, %v1750_v34 }
 0x1aa   : > { %v9555_v38 = vpop.f32.mrf.mxu2 }
 0x1ab   : > { %v2344_v43 = vunpack.c.l.b16 %v2023_v36 }
 0x1ad   : > { %v2348_v44 = vpack.c.b16 %v2344_v43, %v2343_v42  ;;  %v1423_v48 = vpop.f32.mrf.mxu0  ;;  %v6805_v42 = vld [vmem:[%s11287_s1 + $0x1b0] sm:$0xf]  ;;  %v8770_v43 = vld [vmem:[%s11287_s1 + $0x1b4] sm:$0xf0] }
 0x1ae   : > { %v1752_v50 = vpop.f32.mrf.mxu1 }
 0x1af   : > { %7181 = vmatmul.msk.bf16.gmra.mxu3 %vm2143_vm1, %v2348_v44  ;;  %v1753_v53 = vadd.f32 %v1752_v50, %v1423_v48 }
 0x1b0   : > { %1462 = vmatmul.bf16.gmra.mxu0 %v6782_v45  ;;  %v6807_v45 = vld [vmem:[%s11287_s1 + $0x1b8] sm:$0xf0] }
 0x1b1   : > { %1791 = vmatmul.bf16.gmra.mxu1 %v6786_v47  ;;  %v2024_v58 = vpack.c.bf16 %v1753_v53, %v1753_v53  ;;  %v7187_v47 = vld [vmem:[%s11291_s5 + $0x14] sm:$0xf]  ;;  %v6806_v53 = vor.u32 %v8770_v43, %v6805_v42 }
 0x1b2   : > { %v2184_v52 = vpop.f32.mrf.mxu2 }
 0x1b3   : > { %v9567_v54 = vadd.f32 %v2248_v51, %v2184_v52  ;;  %v2411_v2 = vunpack.c.l.b16 %v2024_v58  ;;  %v2510_v51 = vsel %vm2156_vm0, %v7187_v47, 0 }
 0x1b4   : > { %2519 = vmatpush.bf16.msra.mxu3 %v2510_v51 }
 0x1b5   : > { %v1425_v55 = vpop.f32.mrf.mxu0 }
 0x1b6   : > { %v1754_v56 = vpop.f32.mrf.mxu1 }
 0x1b7   : > { %v1755_v59 = vadd.f32 %v1754_v56, %v1425_v55 }
 0x1b9   : > { %v2025_v60 = vpack.c.bf16 %v1755_v59, %v1755_v59 }
 0x1ba   : > { %v9572_v62 = vpop.f32.mrf.mxu2 }
 0x1bb   : > { %v2412_v3 = vunpack.c.l.b16 %v2025_v60 }
 0x1bd   : > { %v2419_v4 = vpack.c.b16 %v2412_v3, %v2411_v2  ;;  %v1428_v9 = vpop.f32.mrf.mxu0 }
 0x1be   : > { %v1757_v10 = vpop.f32.mrf.mxu1 }
 0x1bf   : > { %7183 = vmatmul.msk.bf16.vlgmr.msra.gmra.mxu2 %vm2143_vm1, %v2419_v4  ;;  %v1758_v12 = vadd.f32 %v1757_v10, %v1428_v9  ;;  %v6813_v4 = vld [vmem:[%s11287_s1 + $0x1c0] sm:$0xf]  ;;  %v6815_v9 = vld [vmem:[%s11287_s1 + $0x1c8] sm:$0xf0] }
 0x1c0   : > { %1467 = vmatmul.bf16.gmra.mxu0 %v6790_v6 }
 0x1c1   : > { %1796 = vmatmul.bf16.gmra.mxu1 %v6794_v8  ;;  %v2026_v17 = vpack.c.bf16 %v1758_v12, %v1758_v12  ;;  %v8772_v8 = vld [vmem:[%s11287_s1 + $0x1c4] sm:$0xf0] }
 0x1c2   : > { %v2299_v11 = vpop.f32.mrf.mxu2 }
 0x1c3   : > { %v9585_v13 = vadd.f32 %v2299_v11, %v9508_v49  ;;  %v8767_v49 = vld [vmem:[%s11287_s1 + $0x1a4] sm:$0xf]  ;;  %v2413_v24 = vunpack.c.l.b16 %v2026_v17 }
 0x1c4   : > { %v6802_v28 = vor.u32 %v8767_v49, %v6799_v23 }
 0x1c5   : > { %v1430_v14 = vpop.f32.mrf.mxu0 }
 0x1c6   : > { %v1759_v16 = vpop.f32.mrf.mxu1 }
 0x1c7   : > { %v1760_v18 = vadd.f32 %v1759_v16, %v1430_v14  ;;  %v6814_v14 = vor.u32 %v8772_v8, %v6813_v4 }
 0x1c9   : > { %v2027_v19 = vpack.c.bf16 %v1760_v18, %v1760_v18 }
 0x1ca   : > { %v9590_v21 = vpop.f32.mrf.mxu2 }
 0x1cb   : > { %v2414_v25 = vunpack.c.l.b16 %v2027_v19 }
 0x1cd   : > { %v2420_v26 = vpack.c.b16 %v2414_v25, %v2413_v24  ;;  %v1433_v29 = vpop.f32.mrf.mxu0 }
 0x1ce   : > { %v1762_v31 = vpop.f32.mrf.mxu1 }
 0x1cf   : > { %7184 = vmatmul.msk.bf16.gmra.mxu2 %vm2143_vm1, %v2420_v26  ;;  %v1763_v33 = vadd.f32 %v1762_v31, %v1433_v29  ;;  %v8774_v29 = vld [vmem:[%s11287_s1 + $0x1d4] sm:$0xf0]  ;;  %v6823_v31 = vld [vmem:[%s11287_s1 + $0x1d8] sm:$0xf0] }
 0x1d0   : > { %1472 = vmatmul.bf16.gmra.mxu0 %v6798_v27  ;;  %v6821_v27 = vld [vmem:[%s11287_s1 + $0x1d0] sm:$0xf] }
 0x1d1   : > { %1801 = vmatmul.bf16.gmra.mxu1 %v6802_v28  ;;  %v2028_v39 = vpack.c.bf16 %v1763_v33, %v1763_v33  ;;  %v9648_v28 = vpop.f32.mrf.mxu3 }
 0x1d2   : > { %v2304_v32 = vpop.f32.mrf.mxu2 }
 0x1d3   : > { %v9603_v34 = vadd.f32 %v2304_v32, %v9527_v7  ;;  %v8769_v7 = vld [vmem:[%s11287_s1 + $0x1b4] sm:$0xf]  ;;  %v2415_v48 = vunpack.c.l.b16 %v2028_v39 }
 0x1d4   : > { %v6810_v55 = vor.u32 %v8769_v7, %v6807_v45 }
 0x1d5   : > { %v1435_v36 = vpop.f32.mrf.mxu0 }
 0x1d6   : > { %v1764_v37 = vpop.f32.mrf.mxu1 }
 0x1d7   : > { %v1765_v40 = vadd.f32 %v1764_v37, %v1435_v36  ;;  %v6822_v37 = vor.u32 %v8774_v29, %v6821_v27 }
 0x1d9   : > { %v2029_v41 = vpack.c.bf16 %v1765_v40, %v1765_v40 }
 0x1da   : > { %v9611_v44 = vpop.f32.mrf.mxu2 }
 0x1db   : > { %v2416_v50 = vunpack.c.l.b16 %v2029_v41 }
 0x1dd   : > { %v2421_v52 = vpack.c.b16 %v2416_v50, %v2415_v48  ;;  %v1438_v56 = vpop.f32.mrf.mxu0 }
 0x1de   : > { %v1767_v58 = vpop.f32.mrf.mxu1 }
 0x1df   : > { %7185 = vmatmul.msk.bf16.gmra.mxu2 %vm2143_vm1, %v2421_v52  ;;  %v1768_v60 = vadd.f32 %v1767_v58, %v1438_v56  ;;  %v6829_v52 = vld [vmem:[%s11287_s1 + $0x1e0] sm:$0xf]  ;;  %v6831_v56 = vld [vmem:[%s11287_s1 + $0x1e8] sm:$0xf0] }
 0x1e0   : > { %1477 = vmatmul.bf16.gmra.mxu0 %v6806_v53 }
 0x1e1   : > { %1806 = vmatmul.bf16.gmra.mxu1 %v6810_v55  ;;  %v2030_v1 = vpack.c.bf16 %v1768_v60, %v1768_v60  ;;  %v8776_v55 = vld [vmem:[%s11287_s1 + $0x1e4] sm:$0xf0] }
 0x1e2   : > { %v2309_v59 = vpop.f32.mrf.mxu2 }
 0x1e3   : > { %v9625_v61 = vadd.f32 %v2309_v59, %v9548_v30  ;;  %v8771_v30 = vld [vmem:[%s11287_s1 + $0x1c4] sm:$0xf]  ;;  %v2417_v10 = vunpack.c.l.b16 %v2030_v1 }
 0x1e4   : > { %v6818_v16 = vor.u32 %v8771_v30, %v6815_v9 }
 0x1e5   : > { %v1440_v63 = vpop.f32.mrf.mxu0 }
 0x1e6   : > { %v1769_v0 = vpop.f32.mrf.mxu1 }
 0x1e7   : > { %v1770_v2 = vadd.f32 %v1769_v0, %v1440_v63  ;;  %v6830_v63 = vor.u32 %v8776_v55, %v6829_v52 }
 0x1e9   : > { %v2031_v3 = vpack.c.bf16 %v1770_v2, %v1770_v2 }
 0x1ea   : > { %v9630_v6 = vpop.f32.mrf.mxu2 }
 0x1eb   : > { %v2418_v11 = vunpack.c.l.b16 %v2031_v3 }
 0x1ed   : > { %v2422_v12 = vpack.c.b16 %v2418_v11, %v2417_v10  ;;  %v1443_v17 = vpop.f32.mrf.mxu0 }
 0x1ee   : > { %v1772_v18 = vpop.f32.mrf.mxu1 }
 0x1ef   : > { %7186 = vmatmul.msk.bf16.gmra.mxu2 %vm2143_vm1, %v2422_v12  ;;  %v1773_v20 = vadd.f32 %v1772_v18, %v1443_v17  ;;  %v6839_v18 = vld [vmem:[%s11287_s1 + $0x1f8] sm:$0xf0] }
 0x1f0   : > { %1482 = vmatmul.bf16.gmra.mxu0 %v6814_v14  ;;  %v6837_v14 = vld [vmem:[%s11287_s1 + $0x1f0] sm:$0xf] }
 0x1f1   : > { %1811 = vmatmul.bf16.gmra.mxu1 %v6818_v16  ;;  %v2032_v24 = vpack.c.bf16 %v1773_v20, %v1773_v20  ;;  %v8778_v16 = vld [vmem:[%s11287_s1 + $0x1f4] sm:$0xf0] }
 0x1f2   : > { %v2314_v19 = vpop.f32.mrf.mxu2 }
 0x1f3   : > { %v9643_v22 = vadd.f32 %v2314_v19, %v9567_v54  ;;  %v8773_v54 = vld [vmem:[%s11287_s1 + $0x1d4] sm:$0xf]  ;;  %v2485_v32 = vunpack.c.l.b16 %v2032_v24  ;;  %v7192_v19 = vld [vmem:[%s11291_s5 + $0x18] sm:$0xf] }
 0x1f4   : > { %v6826_v39 = vor.u32 %v8773_v54, %v6823_v31 }
 0x1f5   : > { %v1445_v49 = vpop.f32.mrf.mxu0 }
 0x1f6   : > { %v1774_v23 = vpop.f32.mrf.mxu1 }
 0x1f7   : > { %v1775_v25 = vadd.f32 %v1774_v23, %v1445_v49  ;;  %v2584_v23 = vsel %vm2156_vm0, %v7192_v19, 0 }
 0x1f8   : > { %2593 = vmatpush.bf16.msrb.mxu2 %v2584_v23 }
 0x1f9   : > { %v2033_v26 = vpack.c.bf16 %v1775_v25, %v1775_v25  ;;  %v6838_v25 = vor.u32 %v8778_v16, %v6837_v14 }
 0x1fb   : > { %v2486_v33 = vunpack.c.l.b16 %v2033_v26 }
 0x1fd   : > { %v2493_v36 = vpack.c.b16 %v2486_v33, %v2485_v32  ;;  %v1448_v40 = vpop.f32.mrf.mxu0 }
 0x1fe   : > { %v1777_v41 = vpop.f32.mrf.mxu1 }
 0x1ff   : > { %7188 = vmatmul.msk.bf16.vlgmr.msra.gmra.mxu3 %vm2143_vm1, %v2493_v36  ;;  %v1778_v43 = vadd.f32 %v1777_v41, %v1448_v40  ;;  %v6845_v41 = vld [vmem:[%s11287_s1 + $0x200] sm:$0xf] }
 0x200   : > { %1487 = vmatmul.bf16.gmra.mxu0 %v6822_v37 }
 0x201   : > { %1816 = vmatmul.bf16.gmra.mxu1 %v6826_v39  ;;  %v2034_v48 = vpack.c.bf16 %v1778_v43, %v1778_v43  ;;  %v8780_v43 = vld [vmem:[%s11287_s1 + $0x204] sm:$0xf0] }
 0x202   : > { %v2373_v42 = vpop.f32.mrf.mxu3 }
 0x203   : > { %v9661_v7 = vadd.f32 %v2373_v42, %v9585_v13  ;;  %v8775_v13 = vld [vmem:[%s11287_s1 + $0x1e4] sm:$0xf]  ;;  %v2487_v58 = vunpack.c.l.b16 %v2034_v48 }
 0x204   : > { %v6834_v0 = vor.u32 %v8775_v13, %v6831_v56 }
 0x205   : > { %v1450_v45 = vpop.f32.mrf.mxu0 }
 0x206   : > { %v1779_v47 = vpop.f32.mrf.mxu1 }
 0x207   : > { %v1780_v50 = vadd.f32 %v1779_v47, %v1450_v45  ;;  %v6847_v45 = vld [vmem:[%s11287_s1 + $0x208] sm:$0xf0] }
 0x209   : > { %v2035_v51 = vpack.c.bf16 %v1780_v50, %v1780_v50 }
 0x20a   : > { %v9666_v53 = vpop.f32.mrf.mxu3 }
 0x20b   : > { %v2488_v59 = vunpack.c.l.b16 %v2035_v51  ;;  %v6846_v51 = vor.u32 %v8780_v43, %v6845_v41 }
 0x20d   : > { %v2494_v60 = vpack.c.b16 %v2488_v59, %v2487_v58  ;;  %v1453_v1 = vpop.f32.mrf.mxu0 }
 0x20e   : > { %v1782_v2 = vpop.f32.mrf.mxu1 }
 0x20f   : > { %7189 = vmatmul.msk.bf16.gmra.mxu3 %vm2143_vm1, %v2494_v60  ;;  %v1783_v4 = vadd.f32 %v1782_v2, %v1453_v1 }
 0x210   : > { %1492 = vmatmul.bf16.gmra.mxu0 %v6830_v63 }
 0x211   : > { %1821 = vmatmul.bf16.gmra.mxu1 %v6834_v0  ;;  %v2036_v10 = vpack.c.bf16 %v1783_v4, %v1783_v4  ;;  %v9724_v4 = vpop.f32.mrf.mxu2 }
 0x212   : > { %v2378_v3 = vpop.f32.mrf.mxu3 }
 0x213   : > { %v9679_v8 = vadd.f32 %v2378_v3, %v9603_v34  ;;  %v8777_v34 = vld [vmem:[%s11287_s1 + $0x1f4] sm:$0xf]  ;;  %v2489_v20 = vunpack.c.l.b16 %v2036_v10  ;;  %v6853_v3 = vld [vmem:[%s11287_s1 + $0x210] sm:$0xf] }
 0x214   : > { %v6842_v26 = vor.u32 %v8777_v34, %v6839_v18 }
 0x215   : > { %v1455_v30 = vpop.f32.mrf.mxu0 }
 0x216   : > { %v1784_v9 = vpop.f32.mrf.mxu1 }
 0x217   : > { %v1785_v11 = vadd.f32 %v1784_v9, %v1455_v30  ;;  %v8782_v30 = vld [vmem:[%s11287_s1 + $0x214] sm:$0xf0]  ;;  %v6855_v9 = vld [vmem:[%s11287_s1 + $0x218] sm:$0xf0] }
 0x218   : > { %v6854_v14 = vor.u32 %v8782_v30, %v6853_v3 }
 0x219   : > { %v2037_v12 = vpack.c.bf16 %v1785_v11, %v1785_v11 }
 0x21a   : > { %v9687_v17 = vpop.f32.mrf.mxu3 }
 0x21b   : > { %v2490_v49 = vunpack.c.l.b16 %v2037_v12 }
 0x21d   : > { %v2495_v24 = vpack.c.b16 %v2490_v49, %v2489_v20  ;;  %v1458_v27 = vpop.f32.mrf.mxu0 }
 0x21e   : > { %v1787_v29 = vpop.f32.mrf.mxu1 }
 0x21f   : > { %7190 = vmatmul.msk.bf16.gmra.mxu3 %vm2143_vm1, %v2495_v24  ;;  %v1788_v31 = vadd.f32 %v1787_v29, %v1458_v27  ;;  %v6861_v29 = vld [vmem:[%s11287_s1 + $0x220] sm:$0xf] }
 0x220   : > { %1497 = vmatmul.bf16.gmra.mxu0 %v6838_v25 }
 0x221   : > { %1826 = vmatmul.bf16.gmra.mxu1 %v6842_v26  ;;  %v2038_v37 = vpack.c.bf16 %v1788_v31, %v1788_v31  ;;  %v8784_v31 = vld [vmem:[%s11287_s1 + $0x224] sm:$0xf0] }
 0x222   : > { %v2383_v54 = vpop.f32.mrf.mxu3 }
 0x223   : > { %v9701_v32 = vadd.f32 %v2383_v54, %v9625_v61  ;;  %v8779_v61 = vld [vmem:[%s11287_s1 + $0x204] sm:$0xf]  ;;  %v2491_v47 = vunpack.c.l.b16 %v2038_v37 }
 0x224   : > { %v6850_v52 = vor.u32 %v8779_v61, %v6847_v45 }
 0x225   : > { %v1460_v33 = vpop.f32.mrf.mxu0 }
 0x226   : > { %v1789_v36 = vpop.f32.mrf.mxu1 }
 0x227   : > { %v1790_v39 = vadd.f32 %v1789_v36, %v1460_v33  ;;  %v6863_v33 = vld [vmem:[%s11287_s1 + $0x228] sm:$0xf0] }
 0x229   : > { %v2039_v40 = vpack.c.bf16 %v1790_v39, %v1790_v39 }
 0x22a   : > { %v9706_v42 = vpop.f32.mrf.mxu3 }
 0x22b   : > { %v2492_v48 = vunpack.c.l.b16 %v2039_v40  ;;  %v6862_v40 = vor.u32 %v8784_v31, %v6861_v29 }
 0x22d   : > { %v2496_v50 = vpack.c.b16 %v2492_v48, %v2491_v47  ;;  %v1463_v55 = vpop.f32.mrf.mxu0 }
 0x22e   : > { %v1792_v13 = vpop.f32.mrf.mxu1 }
 0x22f   : > { %7191 = vmatmul.msk.bf16.gmra.mxu3 %vm2143_vm1, %v2496_v50  ;;  %v1793_v58 = vadd.f32 %v1792_v13, %v1463_v55 }
 0x230   : > { %1502 = vmatmul.bf16.gmra.mxu0 %v6846_v51 }
 0x231   : > { %1831 = vmatmul.bf16.gmra.mxu1 %v6850_v52  ;;  %v2040_v0 = vpack.c.bf16 %v1793_v58, %v1793_v58  ;;  %v8786_v58 = vld [vmem:[%s11287_s1 + $0x234] sm:$0xf0] }
 0x232   : > { %v2388_v56 = vpop.f32.mrf.mxu3 }
 0x233   : > { %v9719_v59 = vadd.f32 %v2388_v56, %v9643_v22  ;;  %v8781_v22 = vld [vmem:[%s11287_s1 + $0x214] sm:$0xf]  ;;  %v2559_v10 = vunpack.c.l.b16 %v2040_v0  ;;  %v6869_v56 = vld [vmem:[%s11287_s1 + $0x230] sm:$0xf]  ;;  %v7197_v0 = vld [vmem:[%s11291_s5 + $0x1c] sm:$0xf] }
 0x234   : > { %v6858_v16 = vor.u32 %v8781_v22, %v6855_v9  ;;  %v2658_v3 = vsel %vm2156_vm0, %v7197_v0, 0  ;;  %v6870_v22 = vor.u32 %v8786_v58, %v6869_v56  ;;  %v6887_v56 = vld [vmem:[%s11287_s1 + $0x258] sm:$0xf0] }
 0x235   : > { %v1465_v60 = vpop.f32.mrf.mxu0  ;;  %2667 = vmatpush.bf16.msrb.mxu3 %v2658_v3 }
 0x236   : > { %v1794_v63 = vpop.f32.mrf.mxu1 }
 0x237   : > { %v1795_v1 = vadd.f32 %v1794_v63, %v1465_v60  ;;  %v6871_v63 = vld [vmem:[%s11287_s1 + $0x238] sm:$0xf0] }
 0x239   : > { %v2041_v2 = vpack.c.bf16 %v1795_v1, %v1795_v1 }
 0x23b   : > { %v2560_v11 = vunpack.c.l.b16 %v2041_v2 }
 0x23d   : > { %v2567_v12 = vpack.c.b16 %v2560_v11, %v2559_v10  ;;  %v1468_v34 = vpop.f32.mrf.mxu0 }
 0x23e   : > { %v1797_v18 = vpop.f32.mrf.mxu1 }
 0x23f   : > { %7193 = vmatmul.msk.bf16.vlgmr.msrb.gmra.mxu2 %vm2143_vm1, %v2567_v12  ;;  %v1798_v20 = vadd.f32 %v1797_v18, %v1468_v34 }
 0x240   : > { %1507 = vmatmul.bf16.gmra.mxu0 %v6854_v14 }
 0x241   : > { %1836 = vmatmul.bf16.gmra.mxu1 %v6858_v16  ;;  %v2042_v25 = vpack.c.bf16 %v1798_v20, %v1798_v20 }
 0x242   : > { %v2447_v19 = vpop.f32.mrf.mxu2 }
 0x243   : > { %v9737_v49 = vadd.f32 %v2447_v19, %v9661_v7  ;;  %v8783_v7 = vld [vmem:[%s11287_s1 + $0x224] sm:$0xf]  ;;  %v2561_v36 = vunpack.c.l.b16 %v2042_v25 }
 0x244   : > { %v6866_v41 = vor.u32 %v8783_v7, %v6863_v33 }
 0x245   : > { %v1470_v23 = vpop.f32.mrf.mxu0 }
 0x246   : > { %v1799_v24 = vpop.f32.mrf.mxu1 }
 0x247   : > { %v1800_v26 = vadd.f32 %v1799_v24, %v1470_v23  ;;  %v6877_v24 = vld [vmem:[%s11287_s1 + $0x240] sm:$0xf] }
 0x249   : > { %v2043_v27 = vpack.c.bf16 %v1800_v26, %v1800_v26  ;;  %v8788_v26 = vld [vmem:[%s11287_s1 + $0x244] sm:$0xf0] }
 0x24a   : > { %v9742_v54 = vpop.f32.mrf.mxu2  ;;  %v6878_v33 = vor.u32 %v8788_v26, %v6877_v24 }
 0x24b   : > { %v2562_v37 = vunpack.c.l.b16 %v2043_v27  ;;  %v6879_v27 = vld [vmem:[%s11287_s1 + $0x248] sm:$0xf0] }
 0x24d   : > { %v2568_v39 = vpack.c.b16 %v2562_v37, %v2561_v36  ;;  %v1473_v43 = vpop.f32.mrf.mxu0 }
 0x24e   : > { %v1802_v61 = vpop.f32.mrf.mxu1 }
 0x24f   : > { %7194 = vmatmul.msk.bf16.gmra.mxu2 %vm2143_vm1, %v2568_v39  ;;  %v1803_v47 = vadd.f32 %v1802_v61, %v1473_v43 }
 0x250   : > { %1512 = vmatmul.bf16.gmra.mxu0 %v6862_v40 }
 0x251   : > { %1841 = vmatmul.bf16.gmra.mxu1 %v6866_v41  ;;  %v2044_v52 = vpack.c.bf16 %v1803_v47, %v1803_v47 }
 0x252   : > { %v2452_v45 = vpop.f32.mrf.mxu2 }
 0x253   : > { %v9755_v48 = vadd.f32 %v2452_v45, %v9679_v8  ;;  %v8785_v8 = vld [vmem:[%s11287_s1 + $0x234] sm:$0xf]  ;;  %v2563_v1 = vunpack.c.l.b16 %v2044_v52  ;;  %v6885_v52 = vld [vmem:[%s11287_s1 + $0x250] sm:$0xf] }
 0x254   : > { %v6874_v9 = vor.u32 %v8785_v8, %v6871_v63 }
 0x255   : > { %v1475_v50 = vpop.f32.mrf.mxu0 }
 0x256   : > { %v1804_v51 = vpop.f32.mrf.mxu1 }
 0x257   : > { %v1805_v55 = vadd.f32 %v1804_v51, %v1475_v50 }
 0x259   : > { %v2045_v13 = vpack.c.bf16 %v1805_v55, %v1805_v55  ;;  %v9800_v55 = vpop.f32.mrf.mxu3 }
 0x25a   : > { %v9763_v60 = vpop.f32.mrf.mxu2 }
 0x25b   : > { %v2564_v2 = vunpack.c.l.b16 %v2045_v13  ;;  %v8790_v13 = vld [vmem:[%s11287_s1 + $0x254] sm:$0xf0] }
 0x25c   : > { %v6886_v0 = vor.u32 %v8790_v13, %v6885_v52  ;;  %v6903_v52 = vld [vmem:[%s11287_s1 + $0x278] sm:$0xf0]  ;;  %v7202_v13 = vld [vmem:[%s11291_s5 + $0x20] sm:$0xf] }
 0x25d   : > { %v2569_v30 = vpack.c.b16 %v2564_v2, %v2563_v1  ;;  %v1478_v10 = vpop.f32.mrf.mxu0 }
 0x25e   : > { %v1807_v11 = vpop.f32.mrf.mxu1 }
 0x25f   : > { %7195 = vmatmul.msk.bf16.gmra.mxu2 %vm2143_vm1, %v2569_v30  ;;  %v1808_v14 = vadd.f32 %v1807_v11, %v1478_v10 }
 0x260   : > { %1517 = vmatmul.bf16.gmra.mxu0 %v6870_v22 }
 0x261   : > { %1846 = vmatmul.bf16.gmra.mxu1 %v6874_v9  ;;  %v2046_v19 = vpack.c.bf16 %v1808_v14, %v1808_v14 }
 0x262   : > { %v2457_v12 = vpop.f32.mrf.mxu2 }
 0x263   : > { %v9777_v16 = vadd.f32 %v2457_v12, %v9701_v32  ;;  %v8787_v32 = vld [vmem:[%s11287_s1 + $0x244] sm:$0xf]  ;;  %v2565_v29 = vunpack.c.l.b16 %v2046_v19 }
 0x264   : > { %v6882_v36 = vor.u32 %v8787_v32, %v6879_v27 }
 0x265   : > { %v1480_v34 = vpop.f32.mrf.mxu0 }
 0x266   : > { %v1809_v18 = vpop.f32.mrf.mxu1 }
 0x267   : > { %v1810_v20 = vadd.f32 %v1809_v18, %v1480_v34  ;;  %v6893_v18 = vld [vmem:[%s11287_s1 + $0x260] sm:$0xf] }
 0x269   : > { %v2047_v23 = vpack.c.bf16 %v1810_v20, %v1810_v20  ;;  %v8792_v20 = vld [vmem:[%s11287_s1 + $0x264] sm:$0xf0] }
 0x26a   : > { %v9782_v25 = vpop.f32.mrf.mxu2  ;;  %v6894_v27 = vor.u32 %v8792_v20, %v6893_v18  ;;  %v6909_v18 = vld [vmem:[%s11287_s1 + $0x280] sm:$0xf] }
 0x26b   : > { %v2566_v31 = vunpack.c.l.b16 %v2047_v23  ;;  %v6895_v23 = vld [vmem:[%s11287_s1 + $0x268] sm:$0xf0] }
 0x26d   : > { %v2570_v7 = vpack.c.b16 %v2566_v31, %v2565_v29  ;;  %v1483_v37 = vpop.f32.mrf.mxu0 }
 0x26e   : > { %v1812_v39 = vpop.f32.mrf.mxu1 }
 0x26f   : > { %7196 = vmatmul.msk.bf16.gmra.mxu2 %vm2143_vm1, %v2570_v7  ;;  %v1813_v41 = vadd.f32 %v1812_v39, %v1483_v37 }
 0x270   : > { %1522 = vmatmul.bf16.gmra.mxu0 %v6878_v33 }
 0x271   : > { %1851 = vmatmul.bf16.gmra.mxu1 %v6882_v36  ;;  %v2048_v47 = vpack.c.bf16 %v1813_v41, %v1813_v41 }
 0x272   : > { %v2462_v40 = vpop.f32.mrf.mxu2 }
 0x273   : > { %v9795_v43 = vadd.f32 %v2462_v40, %v9719_v59  ;;  %v8789_v59 = vld [vmem:[%s11287_s1 + $0x254] sm:$0xf]  ;;  %v2633_v58 = vunpack.c.l.b16 %v2048_v47  ;;  %v6901_v47 = vld [vmem:[%s11287_s1 + $0x270] sm:$0xf] }
 0x274   : > { %v6890_v1 = vor.u32 %v8789_v59, %v6887_v56 }
 0x275   : > { %v1485_v61 = vpop.f32.mrf.mxu0 }
 0x276   : > { %v1814_v45 = vpop.f32.mrf.mxu1 }
 0x277   : > { %v1815_v50 = vadd.f32 %v1814_v45, %v1485_v61 }
 0x279   : > { %v2049_v51 = vpack.c.bf16 %v1815_v50, %v1815_v50  ;;  %v8794_v50 = vld [vmem:[%s11287_s1 + $0x274] sm:$0xf0] }
 0x27b   : > { %v2634_v8 = vunpack.c.l.b16 %v2049_v51 }
 0x27d   : > { %v2641_v63 = vpack.c.b16 %v2634_v8, %v2633_v58  ;;  %v1488_v2 = vpop.f32.mrf.mxu0  ;;  %v2732_v58 = vsel %vm2156_vm0, %v7202_v13, 0  ;;  %v6919_v13 = vld [vmem:[%s11287_s1 + $0x298] sm:$0xf0] }
 0x27e   : > { %v1817_v3 = vpop.f32.mrf.mxu1  ;;  %2741 = vmatpush.bf16.msra.mxu2 %v2732_v58 }
 0x27f   : > { %7198 = vmatmul.msk.bf16.vlgmr.msrb.gmra.mxu3 %vm2143_vm1, %v2641_v63  ;;  %v1818_v22 = vadd.f32 %v1817_v3, %v1488_v2  ;;  %v6902_v63 = vor.u32 %v8794_v50, %v6901_v47  ;;  %v6917_v50 = vld [vmem:[%s11287_s1 + $0x290] sm:$0xf] }
 0x280   : > { %1527 = vmatmul.bf16.gmra.mxu0 %v6886_v0 }
 0x281   : > { %1856 = vmatmul.bf16.gmra.mxu1 %v6890_v1  ;;  %v2050_v12 = vpack.c.bf16 %v1818_v22, %v1818_v22 }
 0x282   : > { %v2521_v30 = vpop.f32.mrf.mxu3 }
 0x283   : > { %v9813_v9 = vadd.f32 %v2521_v30, %v9737_v49  ;;  %v8791_v49 = vld [vmem:[%s11287_s1 + $0x264] sm:$0xf]  ;;  %v2635_v24 = vunpack.c.l.b16 %v2050_v12 }
 0x284   : > { %v6898_v29 = vor.u32 %v8791_v49, %v6895_v23  ;;  %v8796_v49 = vld [vmem:[%s11287_s1 + $0x284] sm:$0xf0]  ;;  %v6911_v23 = vld [vmem:[%s11287_s1 + $0x288] sm:$0xf0] }
 0x285   : > { %v1490_v10 = vpop.f32.mrf.mxu0 }
 0x286   : > { %v1819_v11 = vpop.f32.mrf.mxu1 }
 0x287   : > { %v1820_v14 = vadd.f32 %v1819_v11, %v1490_v10 }
 0x289   : > { %v2051_v34 = vpack.c.bf16 %v1820_v14, %v1820_v14 }
 0x28a   : > { %v9818_v19 = vpop.f32.mrf.mxu3 }
 0x28b   : > { %v2636_v26 = vunpack.c.l.b16 %v2051_v34 }
 0x28d   : > { %v2642_v32 = vpack.c.b16 %v2636_v26, %v2635_v24  ;;  %v1493_v31 = vpop.f32.mrf.mxu0 }
 0x28e   : > { %v1822_v7 = vpop.f32.mrf.mxu1 }
 0x28f   : > { %7199 = vmatmul.msk.bf16.gmra.mxu3 %vm2143_vm1, %v2642_v32  ;;  %v1823_v36 = vadd.f32 %v1822_v7, %v1493_v31 }
 0x290   : > { %1532 = vmatmul.bf16.gmra.mxu0 %v6894_v27  ;;  %v6910_v27 = vor.u32 %v8796_v49, %v6909_v18  ;;  %v6925_v18 = vld [vmem:[%s11287_s1 + $0x2a0] sm:$0xf] }
 0x291   : > { %1861 = vmatmul.bf16.gmra.mxu1 %v6898_v29  ;;  %v2052_v41 = vpack.c.bf16 %v1823_v36, %v1823_v36 }
 0x292   : > { %v2526_v33 = vpop.f32.mrf.mxu3 }
 0x293   : > { %v9831_v37 = vadd.f32 %v2526_v33, %v9755_v48  ;;  %v8793_v48 = vld [vmem:[%s11287_s1 + $0x274] sm:$0xf]  ;;  %v2637_v59 = vunpack.c.l.b16 %v2052_v41 }
 0x294   : > { %v6906_v0 = vor.u32 %v8793_v48, %v6903_v52  ;;  %v9876_v48 = vpop.f32.mrf.mxu2  ;;  %v8798_v52 = vld [vmem:[%s11287_s1 + $0x294] sm:$0xf0] }
 0x295   : > { %v1495_v39 = vpop.f32.mrf.mxu0 }
 0x296   : > { %v1824_v40 = vpop.f32.mrf.mxu1 }
 0x297   : > { %v1825_v61 = vadd.f32 %v1824_v40, %v1495_v39 }
 0x299   : > { %v2053_v45 = vpack.c.bf16 %v1825_v61, %v1825_v61 }
 0x29a   : > { %v9839_v51 = vpop.f32.mrf.mxu3 }
 0x29b   : > { %v2638_v56 = vunpack.c.l.b16 %v2053_v45 }
 0x29d   : > { %v2643_v8 = vpack.c.b16 %v2638_v56, %v2637_v59  ;;  %v1498_v1 = vpop.f32.mrf.mxu0 }
 0x29e   : > { %v1827_v2 = vpop.f32.mrf.mxu1 }
 0x29f   : > { %7200 = vmatmul.msk.bf16.gmra.mxu3 %vm2143_vm1, %v2643_v8  ;;  %v1828_v30 = vadd.f32 %v1827_v2, %v1498_v1  ;;  %v6918_v8 = vor.u32 %v8798_v52, %v6917_v50  ;;  %v6933_v52 = vld [vmem:[%s11287_s1 + $0x2b0] sm:$0xf] }
 0x2a0   : > { %1537 = vmatmul.bf16.gmra.mxu0 %v6902_v63 }
 0x2a1   : > { %1866 = vmatmul.bf16.gmra.mxu1 %v6906_v0  ;;  %v2054_v12 = vpack.c.bf16 %v1828_v30, %v1828_v30 }
 0x2a2   : > { %v2531_v3 = vpop.f32.mrf.mxu3 }
 0x2a3   : > { %v9853_v22 = vadd.f32 %v2531_v3, %v9777_v16  ;;  %v8795_v16 = vld [vmem:[%s11287_s1 + $0x284] sm:$0xf]  ;;  %v2639_v24 = vunpack.c.l.b16 %v2054_v12 }
 0x2a4   : > { %v6914_v29 = vor.u32 %v8795_v16, %v6911_v23  ;;  %v8800_v16 = vld [vmem:[%s11287_s1 + $0x2a4] sm:$0xf0]  ;;  %v6927_v23 = vld [vmem:[%s11287_s1 + $0x2a8] sm:$0xf0] }
 0x2a5   : > { %v1500_v10 = vpop.f32.mrf.mxu0 }
 0x2a6   : > { %v1829_v11 = vpop.f32.mrf.mxu1 }
 0x2a7   : > { %v1830_v14 = vadd.f32 %v1829_v11, %v1500_v10 }
 0x2a9   : > { %v2055_v34 = vpack.c.bf16 %v1830_v14, %v1830_v14 }
 0x2aa   : > { %v9858_v20 = vpop.f32.mrf.mxu3 }
 0x2ab   : > { %v2640_v26 = vunpack.c.l.b16 %v2055_v34 }
 0x2ad   : > { %v2644_v32 = vpack.c.b16 %v2640_v26, %v2639_v24  ;;  %v1503_v31 = vpop.f32.mrf.mxu0 }
 0x2ae   : > { %v1832_v7 = vpop.f32.mrf.mxu1 }
 0x2af   : > { %7201 = vmatmul.msk.bf16.gmra.mxu3 %vm2143_vm1, %v2644_v32  ;;  %v1833_v36 = vadd.f32 %v1832_v7, %v1503_v31 }
 0x2b0   : > { %1542 = vmatmul.bf16.gmra.mxu0 %v6910_v27  ;;  %v6926_v27 = vor.u32 %v8800_v16, %v6925_v18 }
 0x2b1   : > { %1871 = vmatmul.bf16.gmra.mxu1 %v6914_v29  ;;  %v2056_v61 = vpack.c.bf16 %v1833_v36, %v1833_v36 }
 0x2b2   : > { %v2536_v33 = vpop.f32.mrf.mxu3 }
 0x2b3   : > { %v9871_v39 = vadd.f32 %v2536_v33, %v9795_v43  ;;  %v8797_v43 = vld [vmem:[%s11287_s1 + $0x294] sm:$0xf]  ;;  %v2707_v59 = vunpack.c.l.b16 %v2056_v61 }
 0x2b4   : > { %v6922_v63 = vor.u32 %v8797_v43, %v6919_v13  ;;  %v8802_v43 = vld [vmem:[%s11287_s1 + $0x2b4] sm:$0xf0] }
 0x2b5   : > { %v1505_v40 = vpop.f32.mrf.mxu0 }
 0x2b6   : > { %v1834_v41 = vpop.f32.mrf.mxu1 }
 0x2b7   : > { %v1835_v45 = vadd.f32 %v1834_v41, %v1505_v40 }
 0x2b9   : > { %v2057_v47 = vpack.c.bf16 %v1835_v45, %v1835_v45 }
 0x2bb   : > { %v2708_v56 = vunpack.c.l.b16 %v2057_v47 }
 0x2bd   : > { %v2715_v58 = vpack.c.b16 %v2708_v56, %v2707_v59  ;;  %v1508_v0 = vpop.f32.mrf.mxu0  ;;  %v6935_v59 = vld [vmem:[%s11287_s1 + $0x2b8] sm:$0xf0]  ;;  %v7207_v56 = vld [vmem:[%s11291_s5 + $0x24] sm:$0xf] }
 0x2be   : > { %v1837_v1 = vpop.f32.mrf.mxu1 }
 0x2bf   : > { %7203 = vmatmul.msk.bf16.vlgmr.msra.gmra.mxu2 %vm2143_vm1, %v2715_v58  ;;  %v1838_v3 = vadd.f32 %v1837_v1, %v1508_v0  ;;  %v6934_v1 = vor.u32 %v8802_v43, %v6933_v52 }
 0x2c0   : > { %1547 = vmatmul.bf16.gmra.mxu0 %v6918_v8 }
 0x2c1   : > { %1876 = vmatmul.bf16.gmra.mxu1 %v6922_v63  ;;  %v2058_v12 = vpack.c.bf16 %v1838_v3, %v1838_v3  ;;  %v2806_v63 = vsel %vm2156_vm0, %v7207_v56, 0 }
 0x2c2   : > { %v2595_v2 = vpop.f32.mrf.mxu2  ;;  %2815 = vmatpush.bf16.msra.mxu3 %v2806_v63  ;;  %v8806_v63 = vld [vmem:[%s11287_s1 + $0x2d4] sm:$0xf0] }
 0x2c3   : > { %v9889_v30 = vadd.f32 %v2595_v2, %v9813_v9  ;;  %v8799_v9 = vld [vmem:[%s11287_s1 + $0x2a4] sm:$0xf]  ;;  %v2709_v24 = vunpack.c.l.b16 %v2058_v12 }
 0x2c4   : > { %v6930_v29 = vor.u32 %v8799_v9, %v6927_v23 }
 0x2c5   : > { %v1510_v10 = vpop.f32.mrf.mxu0 }
 0x2c6   : > { %v1839_v11 = vpop.f32.mrf.mxu1 }
 0x2c7   : > { %v1840_v14 = vadd.f32 %v1839_v11, %v1510_v10 }
 0x2c9   : > { %v2059_v34 = vpack.c.bf16 %v1840_v14, %v1840_v14 }
 0x2ca   : > { %v9894_v49 = vpop.f32.mrf.mxu2 }
 0x2cb   : > { %v2710_v26 = vunpack.c.l.b16 %v2059_v34 }
 0x2cd   : > { %v2716_v32 = vpack.c.b16 %v2710_v26, %v2709_v24  ;;  %v1513_v31 = vpop.f32.mrf.mxu0  ;;  %v6941_v24 = vld [vmem:[%s11287_s1 + $0x2c0] sm:$0xf] }
 0x2ce   : > { %v1842_v7 = vpop.f32.mrf.mxu1 }
 0x2cf   : > { %7204 = vmatmul.msk.bf16.gmra.mxu2 %vm2143_vm1, %v2716_v32  ;;  %v1843_v36 = vadd.f32 %v1842_v7, %v1513_v31  ;;  %v8804_v32 = vld [vmem:[%s11287_s1 + $0x2c4] sm:$0xf0] }
 0x2d0   : > { %1552 = vmatmul.bf16.gmra.mxu0 %v6926_v27  ;;  %v6943_v27 = vld [vmem:[%s11287_s1 + $0x2c8] sm:$0xf0] }
 0x2d1   : > { %1881 = vmatmul.bf16.gmra.mxu1 %v6930_v29  ;;  %v2060_v45 = vpack.c.bf16 %v1843_v36, %v1843_v36 }
 0x2d2   : > { %v2600_v33 = vpop.f32.mrf.mxu2 }
 0x2d3   : > { %v9907_v40 = vadd.f32 %v2600_v33, %v9831_v37  ;;  %v8801_v37 = vld [vmem:[%s11287_s1 + $0x2b4] sm:$0xf]  ;;  %v2711_v58 = vunpack.c.l.b16 %v2060_v45  ;;  %v6942_v33 = vor.u32 %v8804_v32, %v6941_v24 }
 0x2d4   : > { %v6938_v2 = vor.u32 %v8801_v37, %v6935_v59 }
 0x2d5   : > { %v1515_v41 = vpop.f32.mrf.mxu0 }
 0x2d6   : > { %v1844_v61 = vpop.f32.mrf.mxu1 }
 0x2d7   : > { %v1845_v47 = vadd.f32 %v1844_v61, %v1515_v41 }
 0x2d9   : > { %v2061_v50 = vpack.c.bf16 %v1845_v47, %v1845_v47 }
 0x2da   : > { %v9915_v13 = vpop.f32.mrf.mxu2 }
 0x2db   : > { %v2712_v8 = vunpack.c.l.b16 %v2061_v50 }
 0x2dd   : > { %v2717_v0 = vpack.c.b16 %v2712_v8, %v2711_v58  ;;  %v1518_v3 = vpop.f32.mrf.mxu0  ;;  %v6949_v58 = vld [vmem:[%s11287_s1 + $0x2d0] sm:$0xf]  ;;  %v9952_v8 = vpop.f32.mrf.mxu3 }
 0x2de   : > { %v1847_v10 = vpop.f32.mrf.mxu1 }
 0x2df   : > { %7205 = vmatmul.msk.bf16.gmra.mxu2 %vm2143_vm1, %v2717_v0  ;;  %v1848_v12 = vadd.f32 %v1847_v10, %v1518_v3  ;;  %v6951_v0 = vld [vmem:[%s11287_s1 + $0x2d8] sm:$0xf0]  ;;  %v6950_v10 = vor.u32 %v8806_v63, %v6949_v58 }
 0x2e0   : > { %1557 = vmatmul.bf16.gmra.mxu0 %v6934_v1 }
 0x2e1   : > { %1886 = vmatmul.bf16.gmra.mxu1 %v6938_v2  ;;  %v2062_v16 = vpack.c.bf16 %v1848_v12, %v1848_v12 }
 0x2e2   : > { %v2605_v11 = vpop.f32.mrf.mxu2 }
 0x2e3   : > { %v9929_v14 = vadd.f32 %v2605_v11, %v9853_v22  ;;  %v8803_v22 = vld [vmem:[%s11287_s1 + $0x2c4] sm:$0xf]  ;;  %v2713_v29 = vunpack.c.l.b16 %v2062_v16 }
 0x2e4   : > { %v6946_v36 = vor.u32 %v8803_v22, %v6943_v27 }
 0x2e5   : > { %v1520_v34 = vpop.f32.mrf.mxu0 }
 0x2e6   : > { %v1849_v18 = vpop.f32.mrf.mxu1 }
 0x2e7   : > { %v1850_v9 = vadd.f32 %v1849_v18, %v1520_v34 }
 0x2e9   : > { %v2063_v23 = vpack.c.bf16 %v1850_v9, %v1850_v9 }
 0x2ea   : > { %v9934_v26 = vpop.f32.mrf.mxu2 }
 0x2eb   : > { %v2714_v31 = vunpack.c.l.b16 %v2063_v23 }
 0x2ed   : > { %v2718_v7 = vpack.c.b16 %v2714_v31, %v2713_v29  ;;  %v1523_v41 = vpop.f32.mrf.mxu0  ;;  %v6957_v29 = vld [vmem:[%s11287_s1 + $0x2e0] sm:$0xf] }
 0x2ee   : > { %v1852_v61 = vpop.f32.mrf.mxu1 }
 0x2ef   : > { %7206 = vmatmul.msk.bf16.gmra.mxu2 %vm2143_vm1, %v2718_v7  ;;  %v1853_v47 = vadd.f32 %v1852_v61, %v1523_v41  ;;  %v8808_v7 = vld [vmem:[%s11287_s1 + $0x2e4] sm:$0xf0] }
 0x2f0   : > { %1562 = vmatmul.bf16.gmra.mxu0 %v6942_v33  ;;  %v6959_v33 = vld [vmem:[%s11287_s1 + $0x2e8] sm:$0xf0] }
 0x2f1   : > { %1891 = vmatmul.bf16.gmra.mxu1 %v6946_v36  ;;  %v2064_v37 = vpack.c.bf16 %v1853_v47, %v1853_v47 }
 0x2f2   : > { %v2610_v45 = vpop.f32.mrf.mxu2 }
 0x2f3   : > { %v9947_v50 = vadd.f32 %v2610_v45, %v9871_v39  ;;  %v8805_v39 = vld [vmem:[%s11287_s1 + $0x2d4] sm:$0xf]  ;;  %v2781_v1 = vunpack.c.l.b16 %v2064_v37  ;;  %v6958_v45 = vor.u32 %v8808_v7, %v6957_v29 }
 0x2f4   : > { %v6954_v11 = vor.u32 %v8805_v39, %v6951_v0 }
 0x2f5   : > { %v1525_v52 = vpop.f32.mrf.mxu0 }
 0x2f6   : > { %v1854_v43 = vpop.f32.mrf.mxu1 }
 0x2f7   : > { %v1855_v59 = vadd.f32 %v1854_v43, %v1525_v52 }
 0x2f9   : > { %v2065_v56 = vpack.c.bf16 %v1855_v59, %v1855_v59 }
 0x2fb   : > { %v2782_v2 = vunpack.c.l.b16 %v2065_v56 }
 0x2fd   : > { %v2789_v3 = vpack.c.b16 %v2782_v2, %v2781_v1  ;;  %v1528_v12 = vpop.f32.mrf.mxu0  ;;  %v6965_v2 = vld [vmem:[%s11287_s1 + $0x2f0] sm:$0xf] }
 0x2fe   : > { %v1857_v34 = vpop.f32.mrf.mxu1 }
 0x2ff   : > { %7208 = vmatmul.msk.bf16.vlgmr.msra.gmra.mxu3 %vm2143_vm1, %v2789_v3  ;;  %v1858_v16 = vadd.f32 %v1857_v34, %v1528_v12  ;;  %v8810_v3 = vld [vmem:[%s11287_s1 + $0x2f4] sm:$0xf0]  ;;  %v7212_v12 = vld [vmem:[%s11291_s5 + $0x28] sm:$0xf] }
 0x300   : > { %1567 = vmatmul.bf16.gmra.mxu0 %v6950_v10 }
 0x301   : > { %1896 = vmatmul.bf16.gmra.mxu1 %v6954_v11  ;;  %v2066_v32 = vpack.c.bf16 %v1858_v16, %v1858_v16  ;;  %v6967_v11 = vld [vmem:[%s11287_s1 + $0x2f8] sm:$0xf0]  ;;  %v2880_v16 = vsel %vm2156_vm0, %v7212_v12, 0 }
 0x302   : > { %v2669_v18 = vpop.f32.mrf.mxu3  ;;  %2889 = vmatpush.bf16.msrb.mxu2 %v2880_v16 }
 0x303   : > { %v9965_v9 = vadd.f32 %v2669_v18, %v9889_v30  ;;  %v8807_v30 = vld [vmem:[%s11287_s1 + $0x2e4] sm:$0xf]  ;;  %v2783_v36 = vunpack.c.l.b16 %v2066_v32 }
 0x304   : > { %v6962_v47 = vor.u32 %v8807_v30, %v6959_v33 }
 0x305   : > { %v1530_v23 = vpop.f32.mrf.mxu0 }
 0x306   : > { %v1859_v24 = vpop.f32.mrf.mxu1 }
 0x307   : > { %v1860_v22 = vadd.f32 %v1859_v24, %v1530_v23  ;;  %v6966_v24 = vor.u32 %v8810_v3, %v6965_v2 }
 0x309   : > { %v2067_v27 = vpack.c.bf16 %v1860_v22, %v1860_v22 }
 0x30a   : > { %v9970_v31 = vpop.f32.mrf.mxu3 }
 0x30b   : > { %v2784_v41 = vunpack.c.l.b16 %v2067_v27 }
 0x30d   : > { %v2790_v61 = vpack.c.b16 %v2784_v41, %v2783_v36  ;;  %v1533_v52 = vpop.f32.mrf.mxu0 }
 0x30e   : > { %v1862_v43 = vpop.f32.mrf.mxu1 }
 0x30f   : > { %7209 = vmatmul.msk.bf16.gmra.mxu3 %vm2143_vm1, %v2790_v61  ;;  %v1863_v59 = vadd.f32 %v1862_v43, %v1533_v52  ;;  %v8812_v43 = vld [vmem:[%s11287_s1 + $0x304] sm:$0xf0] }
 0x310   : > { %1572 = vmatmul.bf16.gmra.mxu0 %v6958_v45 }
 0x311   : > { %1901 = vmatmul.bf16.gmra.mxu1 %v6962_v47  ;;  %v2068_v39 = vpack.c.bf16 %v1863_v59, %v1863_v59  ;;  %v6973_v47 = vld [vmem:[%s11287_s1 + $0x300] sm:$0xf] }
 0x312   : > { %v2674_v37 = vpop.f32.mrf.mxu3 }
 0x313   : > { %v9983_v56 = vadd.f32 %v2674_v37, %v9907_v40  ;;  %v8809_v40 = vld [vmem:[%s11287_s1 + $0x2f4] sm:$0xf]  ;;  %v2785_v34 = vunpack.c.l.b16 %v2068_v39  ;;  %v6975_v37 = vld [vmem:[%s11287_s1 + $0x308] sm:$0xf0]  ;;  %v6974_v39 = vor.u32 %v8812_v43, %v6973_v47 }
 0x314   : > { %v6970_v32 = vor.u32 %v8809_v40, %v6967_v11 }
 0x315   : > { %v1535_v58 = vpop.f32.mrf.mxu0 }
 0x316   : > { %v1864_v63 = vpop.f32.mrf.mxu1 }
 0x317   : > { %v1865_v0 = vadd.f32 %v1864_v63, %v1535_v58 }
 0x319   : > { %v2069_v1 = vpack.c.bf16 %v1865_v0, %v1865_v0 }
 0x31a   : > { %v9991_v10 = vpop.f32.mrf.mxu3 }
 0x31b   : > { %v2786_v18 = vunpack.c.l.b16 %v2069_v1 }
 0x31d   : > { %v2791_v23 = vpack.c.b16 %v2786_v18, %v2785_v34  ;;  %v1538_v22 = vpop.f32.mrf.mxu0 }
 0x31e   : > { %v1867_v27 = vpop.f32.mrf.mxu1 }
 0x31f   : > { %7210 = vmatmul.msk.bf16.gmra.mxu3 %vm2143_vm1, %v2791_v23  ;;  %v1868_v7 = vadd.f32 %v1867_v27, %v1538_v22  ;;  %v8814_v22 = vld [vmem:[%s11287_s1 + $0x314] sm:$0xf0]  ;;  %v6983_v27 = vld [vmem:[%s11287_s1 + $0x318] sm:$0xf0] }
 0x320   : > { %1577 = vmatmul.bf16.gmra.mxu0 %v6966_v24  ;;  %v6981_v24 = vld [vmem:[%s11287_s1 + $0x310] sm:$0xf] }
 0x321   : > { %1906 = vmatmul.bf16.gmra.mxu1 %v6970_v32  ;;  %v2070_v41 = vpack.c.bf16 %v1868_v7, %v1868_v7  ;;  %v10028_v32 = vpop.f32.mrf.mxu2 }
 0x322   : > { %v2679_v29 = vpop.f32.mrf.mxu3 }
 0x323   : > { %v10005_v30 = vadd.f32 %v2679_v29, %v9929_v14  ;;  %v8811_v14 = vld [vmem:[%s11287_s1 + $0x304] sm:$0xf]  ;;  %v2787_v59 = vunpack.c.l.b16 %v2070_v41 }
 0x324   : > { %v6978_v0 = vor.u32 %v8811_v14, %v6975_v37 }
 0x325   : > { %v1540_v33 = vpop.f32.mrf.mxu0 }
 0x326   : > { %v1869_v36 = vpop.f32.mrf.mxu1 }
 0x327   : > { %v1870_v61 = vadd.f32 %v1869_v36, %v1540_v33  ;;  %v6982_v36 = vor.u32 %v8814_v22, %v6981_v24 }
 0x329   : > { %v2071_v45 = vpack.c.bf16 %v1870_v61, %v1870_v61 }
 0x32a   : > { %v10010_v52 = vpop.f32.mrf.mxu3 }
 0x32b   : > { %v2788_v58 = vunpack.c.l.b16 %v2071_v45 }
 0x32d   : > { %v2792_v63 = vpack.c.b16 %v2788_v58, %v2787_v59  ;;  %v1543_v1 = vpop.f32.mrf.mxu0 }
 0x32e   : > { %v1872_v2 = vpop.f32.mrf.mxu1 }
 0x32f   : > { %7211 = vmatmul.msk.bf16.gmra.mxu3 %vm2143_vm1, %v2792_v63  ;;  %v1873_v40 = vadd.f32 %v1872_v2, %v1543_v1  ;;  %v8816_v2 = vld [vmem:[%s11287_s1 + $0x324] sm:$0xf0] }
 0x330   : > { %1582 = vmatmul.bf16.gmra.mxu0 %v6974_v39 }
 0x331   : > { %1911 = vmatmul.bf16.gmra.mxu1 %v6978_v0  ;;  %v2072_v18 = vpack.c.bf16 %v1873_v40, %v1873_v40  ;;  %v6989_v0 = vld [vmem:[%s11287_s1 + $0x320] sm:$0xf] }
 0x332   : > { %v2684_v3 = vpop.f32.mrf.mxu3 }
 0x333   : > { %v10023_v11 = vadd.f32 %v2684_v3, %v9947_v50  ;;  %v8813_v50 = vld [vmem:[%s11287_s1 + $0x314] sm:$0xf]  ;;  %v2855_v29 = vunpack.c.l.b16 %v2072_v18  ;;  %v6991_v3 = vld [vmem:[%s11287_s1 + $0x328] sm:$0xf0]  ;;  %v6990_v18 = vor.u32 %v8816_v2, %v6989_v0 }
 0x334   : > { %v6986_v41 = vor.u32 %v8813_v50, %v6983_v27 }
 0x335   : > { %v1545_v12 = vpop.f32.mrf.mxu0 }
 0x336   : > { %v1874_v34 = vpop.f32.mrf.mxu1 }
 0x337   : > { %v1875_v16 = vadd.f32 %v1874_v34, %v1545_v12 }
 0x339   : > { %v2073_v23 = vpack.c.bf16 %v1875_v16, %v1875_v16 }
 0x33b   : > { %v2856_v7 = vunpack.c.l.b16 %v2073_v23 }
 0x33d   : > { %v2863_v33 = vpack.c.b16 %v2856_v7, %v2855_v29  ;;  %v1548_v61 = vpop.f32.mrf.mxu0 }
 0x33e   : > { %v1877_v45 = vpop.f32.mrf.mxu1 }
 0x33f   : > { %7213 = vmatmul.msk.bf16.vlgmr.msrb.gmra.mxu2 %vm2143_vm1, %v2863_v33  ;;  %v1878_v43 = vadd.f32 %v1877_v45, %v1548_v61  ;;  %v6997_v61 = vld [vmem:[%s11287_s1 + $0x330] sm:$0xf]  ;;  %v8818_v45 = vld [vmem:[%s11287_s1 + $0x334] sm:$0xf0] }
 0x340   : > { %1587 = vmatmul.bf16.gmra.mxu0 %v6982_v36  ;;  %v6998_v0 = vor.u32 %v8818_v45, %v6997_v61 }
 0x341   : > { %1916 = vmatmul.bf16.gmra.mxu1 %v6986_v41  ;;  %v2074_v58 = vpack.c.bf16 %v1878_v43, %v1878_v43  ;;  %v6999_v43 = vld [vmem:[%s11287_s1 + $0x338] sm:$0xf0] }
 0x342   : > { %v2743_v47 = vpop.f32.mrf.mxu2 }
 0x343   : > { %v10041_v14 = vadd.f32 %v2743_v47, %v9965_v9  ;;  %v8815_v9 = vld [vmem:[%s11287_s1 + $0x324] sm:$0xf]  ;;  %v2857_v40 = vunpack.c.l.b16 %v2074_v58 }
 0x344   : > { %v6994_v16 = vor.u32 %v8815_v9, %v6991_v3 }
 0x345   : > { %v1550_v37 = vpop.f32.mrf.mxu0 }
 0x346   : > { %v1879_v59 = vpop.f32.mrf.mxu1 }
 0x347   : > { %v1880_v63 = vadd.f32 %v1879_v59, %v1550_v37  ;;  %v7217_v37 = vld [vmem:[%s11291_s5 + $0x2c] sm:$0xf] }
 0x349   : > { %v2075_v39 = vpack.c.bf16 %v1880_v63, %v1880_v63  ;;  %v2954_v63 = vsel %vm2156_vm0, %v7217_v37, 0 }
 0x34a   : > { %v10046_v1 = vpop.f32.mrf.mxu2  ;;  %2963 = vmatpush.bf16.msrb.mxu3 %v2954_v63 }
 0x34b   : > { %v2858_v12 = vunpack.c.l.b16 %v2075_v39 }
 0x34d   : > { %v2864_v34 = vpack.c.b16 %v2858_v12, %v2857_v40  ;;  %v1553_v23 = vpop.f32.mrf.mxu0 }
 0x34e   : > { %v1882_v24 = vpop.f32.mrf.mxu1 }
 0x34f   : > { %7214 = vmatmul.msk.bf16.gmra.mxu2 %vm2143_vm1, %v2864_v34  ;;  %v1883_v50 = vadd.f32 %v1882_v24, %v1553_v23 }
 0x350   : > { %1592 = vmatmul.bf16.gmra.mxu0 %v6990_v18 }
 0x351   : > { %1921 = vmatmul.bf16.gmra.mxu1 %v6994_v16  ;;  %v2076_v33 = vpack.c.bf16 %v1883_v50, %v1883_v50  ;;  %v7005_v50 = vld [vmem:[%s11287_s1 + $0x340] sm:$0xf] }
 0x352   : > { %v2748_v22 = vpop.f32.mrf.mxu2 }
 0x353   : > { %v10059_v27 = vadd.f32 %v2748_v22, %v9983_v56  ;;  %v8817_v56 = vld [vmem:[%s11287_s1 + $0x334] sm:$0xf]  ;;  %v2859_v59 = vunpack.c.l.b16 %v2076_v33  ;;  %v7007_v33 = vld [vmem:[%s11287_s1 + $0x348] sm:$0xf0] }
 0x354   : > { %v7002_v2 = vor.u32 %v8817_v56, %v6999_v43 }
 0x355   : > { %v1555_v29 = vpop.f32.mrf.mxu0 }
 0x356   : > { %v1884_v7 = vpop.f32.mrf.mxu1 }
 0x357   : > { %v1885_v36 = vadd.f32 %v1884_v7, %v1555_v29  ;;  %v8820_v7 = vld [vmem:[%s11287_s1 + $0x344] sm:$0xf0] }
 0x358   : > { %v7006_v45 = vor.u32 %v8820_v7, %v7005_v50 }
 0x359   : > { %v2077_v41 = vpack.c.bf16 %v1885_v36, %v1885_v36 }
 0x35a   : > { %v10067_v47 = vpop.f32.mrf.mxu2 }
 0x35b   : > { %v2860_v58 = vunpack.c.l.b16 %v2077_v41 }
 0x35d   : > { %v2865_v39 = vpack.c.b16 %v2860_v58, %v2859_v59  ;;  %v1558_v9 = vpop.f32.mrf.mxu0 }
 0x35e   : > { %v1887_v3 = vpop.f32.mrf.mxu1 }
 0x35f   : > { %7215 = vmatmul.msk.bf16.gmra.mxu2 %vm2143_vm1, %v2865_v39  ;;  %v1888_v12 = vadd.f32 %v1887_v3, %v1558_v9 }
 0x360   : > { %1597 = vmatmul.bf16.gmra.mxu0 %v6998_v0 }
 0x361   : > { %1926 = vmatmul.bf16.gmra.mxu1 %v7002_v2  ;;  %v2078_v23 = vpack.c.bf16 %v1888_v12, %v1888_v12  ;;  %v10104_v12 = vpop.f32.mrf.mxu3 }
 0x362   : > { %v2753_v40 = vpop.f32.mrf.mxu2 }
 0x363   : > { %v10081_v34 = vadd.f32 %v2753_v40, %v10005_v30  ;;  %v8819_v30 = vld [vmem:[%s11287_s1 + $0x344] sm:$0xf]  ;;  %v2861_v36 = vunpack.c.l.b16 %v2078_v23  ;;  %v7013_v40 = vld [vmem:[%s11287_s1 + $0x350] sm:$0xf] }
 0x364   : > { %v7010_v56 = vor.u32 %v8819_v30, %v7007_v33 }
 0x365   : > { %v1560_v18 = vpop.f32.mrf.mxu0 }
 0x366   : > { %v1889_v16 = vpop.f32.mrf.mxu1 }
 0x367   : > { %v1890_v24 = vadd.f32 %v1889_v16, %v1560_v18  ;;  %v8822_v18 = vld [vmem:[%s11287_s1 + $0x354] sm:$0xf0]  ;;  %v7015_v16 = vld [vmem:[%s11287_s1 + $0x358] sm:$0xf0] }
 0x368   : > { %v7014_v50 = vor.u32 %v8822_v18, %v7013_v40 }
 0x369   : > { %v2079_v22 = vpack.c.bf16 %v1890_v24, %v1890_v24 }
 0x36a   : > { %v10086_v29 = vpop.f32.mrf.mxu2 }
 0x36b   : > { %v2862_v41 = vunpack.c.l.b16 %v2079_v22 }
 0x36d   : > { %v2866_v61 = vpack.c.b16 %v2862_v41, %v2861_v36  ;;  %v1563_v43 = vpop.f32.mrf.mxu0 }
 0x36e   : > { %v1892_v37 = vpop.f32.mrf.mxu1 }
 0x36f   : > { %7216 = vmatmul.msk.bf16.gmra.mxu2 %vm2143_vm1, %v2866_v61  ;;  %v1893_v58 = vadd.f32 %v1892_v37, %v1563_v43 }
 0x370   : > { %1602 = vmatmul.bf16.gmra.mxu0 %v7006_v45 }
 0x371   : > { %1931 = vmatmul.bf16.gmra.mxu1 %v7010_v56  ;;  %v2080_v2 = vpack.c.bf16 %v1893_v58, %v1893_v58  ;;  %v7021_v58 = vld [vmem:[%s11287_s1 + $0x360] sm:$0xf] }
 0x372   : > { %v2758_v59 = vpop.f32.mrf.mxu2 }
 0x373   : > { %v10099_v63 = vadd.f32 %v2758_v59, %v10023_v11  ;;  %v8821_v11 = vld [vmem:[%s11287_s1 + $0x354] sm:$0xf]  ;;  %v2929_v23 = vunpack.c.l.b16 %v2080_v2  ;;  %v7023_v2 = vld [vmem:[%s11287_s1 + $0x368] sm:$0xf0] }
 0x374   : > { %v7018_v7 = vor.u32 %v8821_v11, %v7015_v16 }
 0x375   : > { %v1565_v39 = vpop.f32.mrf.mxu0 }
 0x376   : > { %v1894_v0 = vpop.f32.mrf.mxu1 }
 0x377   : > { %v1895_v9 = vadd.f32 %v1894_v0, %v1565_v39  ;;  %v8824_v0 = vld [vmem:[%s11287_s1 + $0x364] sm:$0xf0] }
 0x378   : > { %v7022_v18 = vor.u32 %v8824_v0, %v7021_v58 }
 0x379   : > { %v2081_v3 = vpack.c.bf16 %v1895_v9, %v1895_v9 }
 0x37b   : > { %v2930_v24 = vunpack.c.l.b16 %v2081_v3 }
 0x37d   : > { %v2937_v22 = vpack.c.b16 %v2930_v24, %v2929_v23  ;;  %v1568_v30 = vpop.f32.mrf.mxu0 }
 0x37e   : > { %v1897_v33 = vpop.f32.mrf.mxu1 }
 0x37f   : > { %7218 = vmatmul.msk.bf16.vlgmr.msrb.gmra.mxu3 %vm2143_vm1, %v2937_v22  ;;  %v1898_v41 = vadd.f32 %v1897_v33, %v1568_v30 }
 0x380   : > { %1607 = vmatmul.bf16.gmra.mxu0 %v7014_v50 }
 0x381   : > { %1936 = vmatmul.bf16.gmra.mxu1 %v7018_v7  ;;  %v2082_v43 = vpack.c.bf16 %v1898_v41, %v1898_v41 }
 0x382   : > { %v2817_v36 = vpop.f32.mrf.mxu3 }
 0x383   : > { %v10117_v61 = vadd.f32 %v2817_v36, %v10041_v14  ;;  %v8823_v14 = vld [vmem:[%s11287_s1 + $0x364] sm:$0xf]  ;;  %v2931_v9 = vunpack.c.l.b16 %v2082_v43 }
 0x384   : > { %v7026_v11 = vor.u32 %v8823_v14, %v7023_v2 }
 0x385   : > { %v1570_v45 = vpop.f32.mrf.mxu0 }
 0x386   : > { %v1899_v56 = vpop.f32.mrf.mxu1 }
 0x387   : > { %v1900_v37 = vadd.f32 %v1899_v56, %v1570_v45  ;;  %v7029_v45 = vld [vmem:[%s11287_s1 + $0x370] sm:$0xf]  ;;  %v8826_v56 = vld [vmem:[%s11287_s1 + $0x374] sm:$0xf0] }
 0x389   : > { %v2083_v59 = vpack.c.bf16 %v1900_v37, %v1900_v37  ;;  %v7031_v37 = vld [vmem:[%s11287_s1 + $0x378] sm:$0xf0] }
 0x38a   : > { %v10122_v39 = vpop.f32.mrf.mxu3 }
 0x38b   : > { %11300 = vst [vmem:[#allocation2_spill] sm:$0xff] %v10122_v39  ;;  %v2932_v3 = vunpack.c.l.b16 %v2083_v59  ;;  %v7222_v59 = vld [vmem:[%s11291_s5 + $0x30] sm:$0xf] }
 0x38c   : > { %v3028_v14 = vsel %vm2156_vm0, %v7222_v59, 0 }
 0x38d   : > { %v2938_v40 = vpack.c.b16 %v2932_v3, %v2931_v9  ;;  %v1573_v16 = vpop.f32.mrf.mxu0  ;;  %3037 = vmatpush.bf16.msra.mxu2 %v3028_v14  ;;  %v7030_v9 = vor.u32 %v8826_v56, %v7029_v45  ;;  %v8828_v45 = vld [vmem:[%s11287_s1 + $0x384] sm:$0xf0]  ;;  %v7039_v56 = vld [vmem:[%s11287_s1 + $0x388] sm:$0xf0] }
 0x38e   : > { %v1902_v23 = vpop.f32.mrf.mxu1 }
 0x38f   : > { %7219 = vmatmul.msk.bf16.gmra.mxu3 %vm2143_vm1, %v2938_v40  ;;  %v1903_v22 = vadd.f32 %v1902_v23, %v1573_v16 }
 0x390   : > { %1612 = vmatmul.bf16.gmra.mxu0 %v7022_v18 }
 0x391   : > { %1941 = vmatmul.bf16.gmra.mxu1 %v7026_v11  ;;  %v2084_v33 = vpack.c.bf16 %v1903_v22, %v1903_v22 }
 0x392   : > { %v2822_v24 = vpop.f32.mrf.mxu3 }
 0x393   : > { %v10135_v50 = vadd.f32 %v2822_v24, %v10059_v27  ;;  %v8825_v27 = vld [vmem:[%s11287_s1 + $0x374] sm:$0xf]  ;;  %v2933_v58 = vunpack.c.l.b16 %v2084_v33 }
 0x394   : > { %v7034_v3 = vor.u32 %v8825_v27, %v7031_v37 }
 0x395   : > { %v1575_v7 = vpop.f32.mrf.mxu0 }
 0x396   : > { %v1904_v30 = vpop.f32.mrf.mxu1 }
 0x397   : > { %v1905_v36 = vadd.f32 %v1904_v30, %v1575_v7 }
 0x399   : > { %v2085_v41 = vpack.c.bf16 %v1905_v36, %v1905_v36  ;;  %v7037_v36 = vld [vmem:[%s11287_s1 + $0x380] sm:$0xf] }
 0x39a   : > { %v10143_v43 = vpop.f32.mrf.mxu3 }
 0x39b   : > { %v2934_v0 = vunpack.c.l.b16 %v2085_v41 }
 0x39d   : > { %v2939_v2 = vpack.c.b16 %v2934_v0, %v2933_v58  ;;  %v1578_v40 = vpop.f32.mrf.mxu0  ;;  %v7038_v58 = vor.u32 %v8828_v45, %v7037_v36  ;;  %v7047_v36 = vld [vmem:[%s11287_s1 + $0x398] sm:$0xf0] }
 0x39e   : > { %v1907_v18 = vpop.f32.mrf.mxu1 }
 0x39f   : > { %7220 = vmatmul.msk.bf16.gmra.mxu3 %vm2143_vm1, %v2939_v2  ;;  %v1908_v16 = vadd.f32 %v1907_v18, %v1578_v40 }
 0x3a0   : > { %1617 = vmatmul.bf16.gmra.mxu0 %v7030_v9 }
 0x3a1   : > { %1946 = vmatmul.bf16.gmra.mxu1 %v7034_v3  ;;  %v2086_v7 = vpack.c.bf16 %v1908_v16, %v1908_v16 }
 0x3a2   : > { %v2827_v11 = vpop.f32.mrf.mxu3 }
 0x3a3   : > { %v10157_v23 = vadd.f32 %v2827_v11, %v10081_v34  ;;  %v8827_v34 = vld [vmem:[%s11287_s1 + $0x384] sm:$0xf]  ;;  %v2935_v27 = vunpack.c.l.b16 %v2086_v7  ;;  %v7045_v7 = vld [vmem:[%s11287_s1 + $0x390] sm:$0xf] }
 0x3a4   : > { %v7042_v0 = vor.u32 %v8827_v34, %v7039_v56 }
 0x3a5   : > { %v1580_v24 = vpop.f32.mrf.mxu0 }
 0x3a6   : > { %v1909_v22 = vpop.f32.mrf.mxu1 }
 0x3a7   : > { %v1910_v30 = vadd.f32 %v1909_v22, %v1580_v24 }
 0x3a9   : > { %v2087_v33 = vpack.c.bf16 %v1910_v30, %v1910_v30  ;;  %v10180_v30 = vpop.f32.mrf.mxu2 }
 0x3aa   : > { %v10162_v41 = vpop.f32.mrf.mxu3 }
 0x3ab   : > { %v2936_v37 = vunpack.c.l.b16 %v2087_v33  ;;  %v8830_v33 = vld [vmem:[%s11287_s1 + $0x394] sm:$0xf0] }
 0x3ad   : > { %v2940_v59 = vpack.c.b16 %v2936_v37, %v2935_v27  ;;  %v1583_v14 = vpop.f32.mrf.mxu0  ;;  %v7046_v27 = vor.u32 %v8830_v33, %v7045_v7  ;;  %v8832_v7 = vld [vmem:[%s11287_s1 + $0x3a4] sm:$0xf0]  ;;  %v7055_v33 = vld [vmem:[%s11287_s1 + $0x3a8] sm:$0xf0] }
 0x3ae   : > { %v1912_v2 = vpop.f32.mrf.mxu1 }
 0x3af   : > { %7221 = vmatmul.msk.bf16.gmra.mxu3 %vm2143_vm1, %v2940_v59  ;;  %v1913_v3 = vadd.f32 %v1912_v2, %v1583_v14 }
 0x3b0   : > { %1622 = vmatmul.bf16.gmra.mxu0 %v7038_v58 }
 0x3b1   : > { %1951 = vmatmul.bf16.gmra.mxu1 %v7042_v0  ;;  %v2088_v16 = vpack.c.bf16 %v1913_v3, %v1913_v3 }
 0x3b2   : > { %v2832_v9 = vpop.f32.mrf.mxu3 }
 0x3b3   : > { %v10175_v40 = vadd.f32 %v2832_v9, %v10099_v63  ;;  %v8829_v63 = vld [vmem:[%s11287_s1 + $0x394] sm:$0xf]  ;;  %v3003_v45 = vunpack.c.l.b16 %v2088_v16 }
 0x3b4   : > { %v7050_v37 = vor.u32 %v8829_v63, %v7047_v36 }
 0x3b5   : > { %v1585_v18 = vpop.f32.mrf.mxu0 }
 0x3b6   : > { %v1914_v11 = vpop.f32.mrf.mxu1 }
 0x3b7   : > { %v1915_v24 = vadd.f32 %v1914_v11, %v1585_v18 }
 0x3b9   : > { %v2089_v22 = vpack.c.bf16 %v1915_v24, %v1915_v24  ;;  %v7053_v24 = vld [vmem:[%s11287_s1 + $0x3a0] sm:$0xf] }
 0x3bb   : > { %v3004_v34 = vunpack.c.l.b16 %v2089_v22 }
 0x3bd   : > { %v3011_v56 = vpack.c.b16 %v3004_v34, %v3003_v45  ;;  %v1588_v59 = vpop.f32.mrf.mxu0  ;;  %v7054_v34 = vor.u32 %v8832_v7, %v7053_v24  ;;  %v8834_v24 = vld [vmem:[%s11287_s1 + $0x3b4] sm:$0xf0] }
 0x3be   : > { %v1917_v58 = vpop.f32.mrf.mxu1 }
 0x3bf   : > { %7223 = vmatmul.msk.bf16.vlgmr.msra.gmra.mxu2 %vm2143_vm1, %v3011_v56  ;;  %v1918_v14 = vadd.f32 %v1917_v58, %v1588_v59 }
 0x3c0   : > { %1627 = vmatmul.bf16.gmra.mxu0 %v7046_v27 }
 0x3c1   : > { %1956 = vmatmul.bf16.gmra.mxu1 %v7050_v37  ;;  %v2090_v18 = vpack.c.bf16 %v1918_v14, %v1918_v14 }
 0x3c2   : > { %v2891_v0 = vpop.f32.mrf.mxu2 }
 0x3c3   : > { %v10193_v2 = vadd.f32 %v2891_v0, %v10117_v61  ;;  %v8831_v61 = vld [vmem:[%s11287_s1 + $0x3a4] sm:$0xf]  ;;  %v3005_v63 = vunpack.c.l.b16 %v2090_v18 }
 0x3c4   : > { %v7058_v56 = vor.u32 %v8831_v61, %v7055_v33  ;;  %v7063_v61 = vld [vmem:[%s11287_s1 + $0x3b8] sm:$0xf0]  ;;  %v7227_v33 = vld [vmem:[%s11291_s5 + $0x34] sm:$0xf] }
 0x3c5   : > { %v1590_v9 = vpop.f32.mrf.mxu0 }
 0x3c6   : > { %v1919_v3 = vpop.f32.mrf.mxu1 }
 0x3c7   : > { %v1920_v11 = vadd.f32 %v1919_v3, %v1590_v9 }
 0x3c9   : > { %v2091_v16 = vpack.c.bf16 %v1920_v11, %v1920_v11 }
 0x3ca   : > { %v10198_v22 = vpop.f32.mrf.mxu2 }
 0x3cb   : > { %11301 = vst [vmem:[#allocation3_spill] sm:$0xff] %v10198_v22  ;;  %v3006_v36 = vunpack.c.l.b16 %v2091_v16  ;;  %v7061_v16 = vld [vmem:[%s11287_s1 + $0x3b0] sm:$0xf] }
 0x3cd   : > { %v3012_v45 = vpack.c.b16 %v3006_v36, %v3005_v63  ;;  %v1593_v27 = vpop.f32.mrf.mxu0 }
 0x3ce   : > { %v1922_v37 = vpop.f32.mrf.mxu1 }
 0x3cf   : > { %7224 = vmatmul.msk.bf16.gmra.mxu2 %vm2143_vm1, %v3012_v45  ;;  %v1923_v58 = vadd.f32 %v1922_v37, %v1593_v27  ;;  %v3102_v45 = vsel %vm2156_vm0, %v7227_v33, 0 }
 0x3d0   : > { %1632 = vmatmul.bf16.gmra.mxu0 %v7054_v34  ;;  %3111 = vmatpush.bf16.msra.mxu3 %v3102_v45 }
 0x3d1   : > { %1961 = vmatmul.bf16.gmra.mxu1 %v7058_v56  ;;  %v2092_v3 = vpack.c.bf16 %v1923_v58, %v1923_v58  ;;  %v7062_v56 = vor.u32 %v8834_v24, %v7061_v16  ;;  %v7069_v16 = vld [vmem:[%s11287_s1 + $0x3c0] sm:$0xf] }
 0x3d2   : > { %v2896_v59 = vpop.f32.mrf.mxu2 }
 0x3d3   : > { %v10211_v0 = vadd.f32 %v2896_v59, %v10135_v50  ;;  %v8833_v50 = vld [vmem:[%s11287_s1 + $0x3b4] sm:$0xf]  ;;  %v3007_v63 = vunpack.c.l.b16 %v2092_v3 }
 0x3d4   : > { %v7066_v27 = vor.u32 %v8833_v50, %v7063_v61  ;;  %v8836_v50 = vld [vmem:[%s11287_s1 + $0x3c4] sm:$0xf0]  ;;  %v7071_v61 = vld [vmem:[%s11287_s1 + $0x3c8] sm:$0xf0] }
 0x3d5   : > { %v1595_v14 = vpop.f32.mrf.mxu0  ;;  %v7070_v45 = vor.u32 %v8836_v50, %v7069_v16  ;;  %v10256_v16 = vpop.f32.mrf.mxu3  ;;  %v8838_v50 = vld [vmem:[%s11287_s1 + $0x3d4] sm:$0xf0] }
 0x3d6   : > { %v1924_v9 = vpop.f32.mrf.mxu1 }
 0x3d7   : > { %v1925_v11 = vadd.f32 %v1924_v9, %v1595_v14 }
 0x3d9   : > { %v2093_v18 = vpack.c.bf16 %v1925_v11, %v1925_v11 }
 0x3da   : > { %v10219_v7 = vpop.f32.mrf.mxu2 }
 0x3db   : > { %11302 = vst [vmem:[#allocation4_spill] sm:$0xff] %v10219_v7  ;;  %v3008_v36 = vunpack.c.l.b16 %v2093_v18 }
 0x3dd   : > { %v3013_v34 = vpack.c.b16 %v3008_v36, %v3007_v63  ;;  %v1598_v37 = vpop.f32.mrf.mxu0 }
 0x3de   : > { %v1927_v59 = vpop.f32.mrf.mxu1 }
 0x3df   : > { %7225 = vmatmul.msk.bf16.gmra.mxu2 %vm2143_vm1, %v3013_v34  ;;  %v1928_v14 = vadd.f32 %v1927_v59, %v1598_v37 }
 0x3e0   : > { %1637 = vmatmul.bf16.gmra.mxu0 %v7062_v56 }
 0x3e1   : > { %1966 = vmatmul.bf16.gmra.mxu1 %v7066_v27  ;;  %v2094_v18 = vpack.c.bf16 %v1928_v14, %v1928_v14 }
 0x3e2   : > { %v2901_v58 = vpop.f32.mrf.mxu2 }
 0x3e3   : > { %v10233_v9 = vadd.f32 %v2901_v58, %v10157_v23  ;;  %v8835_v23 = vld [vmem:[%s11287_s1 + $0x3c4] sm:$0xf]  ;;  %v3009_v63 = vunpack.c.l.b16 %v2094_v18 }
 0x3e4   : > { %v7074_v34 = vor.u32 %v8835_v23, %v7071_v61  ;;  %v7079_v23 = vld [vmem:[%s11287_s1 + $0x3d8] sm:$0xf0] }
 0x3e5   : > { %v1600_v11 = vpop.f32.mrf.mxu0 }
 0x3e6   : > { %v1929_v3 = vpop.f32.mrf.mxu1 }
 0x3e7   : > { %v1930_v22 = vadd.f32 %v1929_v3, %v1600_v11 }
 0x3e9   : > { %v2095_v33 = vpack.c.bf16 %v1930_v22, %v1930_v22 }
 0x3ea   : > { %v10238_v24 = vpop.f32.mrf.mxu2 }
 0x3eb   : > { %v3010_v22 = vunpack.c.l.b16 %v2095_v33  ;;  %v7077_v33 = vld [vmem:[%s11287_s1 + $0x3d0] sm:$0xf] }
 0x3ed   : > { %v3014_v36 = vpack.c.b16 %v3010_v22, %v3009_v63  ;;  %v1603_v56 = vpop.f32.mrf.mxu0  ;;  %v7078_v22 = vor.u32 %v8838_v50, %v7077_v33  ;;  %v8840_v50 = vld [vmem:[%s11287_s1 + $0x3e4] sm:$0xf0] }
 0x3ee   : > { %v1932_v27 = vpop.f32.mrf.mxu1 }
 0x3ef   : > { %7226 = vmatmul.msk.bf16.gmra.mxu2 %vm2143_vm1, %v3014_v36  ;;  %v1933_v59 = vadd.f32 %v1932_v27, %v1603_v56 }
 0x3f0   : > { %1642 = vmatmul.bf16.gmra.mxu0 %v7070_v45 }
 0x3f1   : > { %1971 = vmatmul.bf16.gmra.mxu1 %v7074_v34  ;;  %v2096_v3 = vpack.c.bf16 %v1933_v59, %v1933_v59 }
 0x3f2   : > { %v2906_v37 = vpop.f32.mrf.mxu2 }
 0x3f3   : > { %v10251_v58 = vadd.f32 %v2906_v37, %v10175_v40  ;;  %v8837_v40 = vld [vmem:[%s11287_s1 + $0x3d4] sm:$0xf]  ;;  %v3077_v61 = vunpack.c.l.b16 %v2096_v3 }
 0x3f4   : > { %v7082_v36 = vor.u32 %v8837_v40, %v7079_v23  ;;  %v7087_v40 = vld [vmem:[%s11287_s1 + $0x3e8] sm:$0xf0] }
 0x3f5   : > { %v1605_v14 = vpop.f32.mrf.mxu0 }
 0x3f6   : > { %v1934_v11 = vpop.f32.mrf.mxu1 }
 0x3f7   : > { %v1935_v39 = vadd.f32 %v1934_v11, %v1605_v14 }
 0x3f9   : > { %v2097_v18 = vpack.c.bf16 %v1935_v39, %v1935_v39 }
 0x3fb   : > { %v3078_v39 = vunpack.c.l.b16 %v2097_v18  ;;  %v7085_v18 = vld [vmem:[%s11287_s1 + $0x3e0] sm:$0xf] }
 0x3fd   : > { %v3085_v63 = vpack.c.b16 %v3078_v39, %v3077_v61  ;;  %v1608_v45 = vpop.f32.mrf.mxu0  ;;  %v7086_v39 = vor.u32 %v8840_v50, %v7085_v18  ;;  %v8842_v18 = vld [vmem:[%s11287_s1 + $0x3f4] sm:$0xf0] }
 0x3fe   : > { %v1937_v34 = vpop.f32.mrf.mxu1 }
 0x3ff   : > { %7228 = vmatmul.msk.bf16.vlgmr.msra.gmra.mxu3 %vm2143_vm1, %v3085_v63  ;;  %v1938_v27 = vadd.f32 %v1937_v34, %v1608_v45 }
 0x400   : > { %1647 = vmatmul.bf16.gmra.mxu0 %v7078_v22 }
 0x401   : > { %1976 = vmatmul.bf16.gmra.mxu1 %v7082_v36  ;;  %v2098_v11 = vpack.c.bf16 %v1938_v27, %v1938_v27 }
 0x402   : > { %v2965_v56 = vpop.f32.mrf.mxu3 }
 0x403   : > { %v10269_v37 = vadd.f32 %v2965_v56, %v10193_v2  ;;  %v8839_v2 = vld [vmem:[%s11287_s1 + $0x3e4] sm:$0xf]  ;;  %v3079_v23 = vunpack.c.l.b16 %v2098_v11 }
 0x404   : > { %v7090_v63 = vor.u32 %v8839_v2, %v7087_v40  ;;  %v7095_v2 = vld [vmem:[%s11287_s1 + $0x3f8] sm:$0xf0] }
 0x405   : > { %v1610_v59 = vpop.f32.mrf.mxu0 }
 0x406   : > { %v1939_v14 = vpop.f32.mrf.mxu1 }
 0x407   : > { %v1940_v7 = vadd.f32 %v1939_v14, %v1610_v59 }
 0x409   : > { %v2099_v3 = vpack.c.bf16 %v1940_v7, %v1940_v7 }
 0x40a   : > { %v10274_v33 = vpop.f32.mrf.mxu3 }
 0x40b   : > { %11303 = vst [vmem:[#allocation5_spill] sm:$0xff] %v10274_v33  ;;  %v3080_v7 = vunpack.c.l.b16 %v2099_v3  ;;  %v7093_v3 = vld [vmem:[%s11287_s1 + $0x3f0] sm:$0xf] }
 0x40d   : > { %v3086_v61 = vpack.c.b16 %v3080_v7, %v3079_v23  ;;  %v1613_v22 = vpop.f32.mrf.mxu0 }
 0x40e   : > { %v1942_v36 = vpop.f32.mrf.mxu1 }
 0x40f   : > { %7229 = vmatmul.msk.bf16.gmra.mxu3 %vm2143_vm1, %v3086_v61  ;;  %v1943_v34 = vadd.f32 %v1942_v36, %v1613_v22 }
 0x410   : > { %1652 = vmatmul.bf16.gmra.mxu0 %v7086_v39  ;;  %v7094_v39 = vor.u32 %v8842_v18, %v7093_v3 }
 0x411   : > { %1981 = vmatmul.bf16.gmra.mxu1 %v7090_v63  ;;  %v2100_v14 = vpack.c.bf16 %v1943_v34, %v1943_v34 }
 0x412   : > { %v2970_v45 = vpop.f32.mrf.mxu3 }
 0x413   : > { %v10287_v56 = vadd.f32 %v2970_v45, %v10211_v0  ;;  %v8841_v0 = vld [vmem:[%s11287_s1 + $0x3f4] sm:$0xf]  ;;  %v3081_v40 = vunpack.c.l.b16 %v2100_v14 }
 0x414   : > { %v7098_v63 = vor.u32 %v8841_v0, %v7095_v2 }
 0x415   : > { %v1615_v27 = vpop.f32.mrf.mxu0 }
 0x416   : > { %v1944_v59 = vpop.f32.mrf.mxu1 }
 0x417   : > { %v1945_v33 = vadd.f32 %v1944_v59, %v1615_v27 }
 0x419   : > { %v2101_v11 = vpack.c.bf16 %v1945_v33, %v1945_v33  ;;  %v7232_v33 = vld [vmem:[%s11291_s5 + $0x38] sm:$0xf] }
 0x41a   : > { %v10295_v50 = vpop.f32.mrf.mxu3  ;;  %v3176_v7 = vsel %vm2156_vm0, %v7232_v33, 0 }
 0x41b   : > { %11304 = vst [vmem:[#allocation6_spill] sm:$0xff] %v10295_v50  ;;  %v3082_v23 = vunpack.c.l.b16 %v2101_v11  ;;  %3185 = vmatpush.bf16.msrb.mxu2 %v3176_v7 }
 0x41d   : > { %v3087_v61 = vpack.c.b16 %v3082_v23, %v3081_v40  ;;  %v1618_v22 = vpop.f32.mrf.mxu0 }
 0x41e   : > { %v1947_v36 = vpop.f32.mrf.mxu1 }
 0x41f   : > { %7230 = vmatmul.msk.bf16.gmra.mxu3 %vm2143_vm1, %v3087_v61  ;;  %v1948_v34 = vadd.f32 %v1947_v36, %v1618_v22 }
 0x420   : > { %1657 = vmatmul.bf16.gmra.mxu0 %v7094_v39 }
 0x421   : > { %1986 = vmatmul.bf16.gmra.mxu1 %v7098_v63  ;;  %v2102_v11 = vpack.c.bf16 %v1948_v34, %v1948_v34 }
 0x422   : > { %v2975_v45 = vpop.f32.mrf.mxu3 }
 0x423   : > { %v10309_v27 = vadd.f32 %v2975_v45, %v10233_v9  ;;  %v3083_v3 = vunpack.c.l.b16 %v2102_v11 }
 0x425   : > { %v1620_v59 = vpop.f32.mrf.mxu0 }
 0x426   : > { %v1949_v14 = vpop.f32.mrf.mxu1 }
 0x427   : > { %v1950_v50 = vadd.f32 %v1949_v14, %v1620_v59 }
 0x429   : > { %v2103_v33 = vpack.c.bf16 %v1950_v50, %v1950_v50  ;;  %v10317_v50 = vpop.f32.mrf.mxu2 }
 0x42a   : > { %v10311_v7 = vpop.f32.mrf.mxu3  ;;  %11305 = vst [vmem:[#allocation7_spill] sm:$0xff] %v10317_v50 }
 0x42b   : > { %v3084_v18 = vunpack.c.l.b16 %v2103_v33 }
 0x42d   : > { %v3088_v0 = vpack.c.b16 %v3084_v18, %v3083_v3  ;;  %v1623_v2 = vpop.f32.mrf.mxu0 }
 0x42e   : > { %v1952_v40 = vpop.f32.mrf.mxu1 }
 0x42f   : > { %7231 = vmatmul.msk.bf16.gmra.mxu3 %vm2143_vm1, %v3088_v0  ;;  %v1953_v61 = vadd.f32 %v1952_v40, %v1623_v2 }
 0x431   : > { %v2104_v22 = vpack.c.bf16 %v1953_v61, %v1953_v61 }
 0x432   : > { %v2980_v23 = vpop.f32.mrf.mxu3 }
 0x433   : > { %v10315_v39 = vadd.f32 %v2980_v23, %v10251_v58  ;;  %v3151_v34 = vunpack.c.l.b16 %v2104_v22 }
 0x435   : > { %v1625_v9 = vpop.f32.mrf.mxu0 }
 0x436   : > { %v1954_v63 = vpop.f32.mrf.mxu1 }
 0x437   : > { %v1955_v36 = vadd.f32 %v1954_v63, %v1625_v9 }
 0x439   : > { %v2105_v45 = vpack.c.bf16 %v1955_v36, %v1955_v36 }
 0x43b   : > { %v3152_v59 = vunpack.c.l.b16 %v2105_v45 }
 0x43d   : > { %v3159_v14 = vpack.c.b16 %v3152_v59, %v3151_v34  ;;  %v1628_v11 = vpop.f32.mrf.mxu0 }
 0x43e   : > { %v1957_v33 = vpop.f32.mrf.mxu1 }
 0x43f   : > { %7233 = vmatmul.msk.bf16.vlgmr.msrb.gmra.mxu2 %vm2143_vm1, %v3159_v14  ;;  %v1958_v18 = vadd.f32 %v1957_v33, %v1628_v11 }
 0x441   : > { %v2106_v40 = vpack.c.bf16 %v1958_v18, %v1958_v18 }
 0x442   : > { %v3039_v3 = vpop.f32.mrf.mxu2 }
 0x443   : > { %v10321_v0 = vadd.f32 %v3039_v3, %v10269_v37  ;;  %v3153_v63 = vunpack.c.l.b16 %v2106_v40  ;;  %v7237_v40 = vld [vmem:[%s11291_s5 + $0x3c] sm:$0xf] }
 0x445   : > { %v1630_v58 = vpop.f32.mrf.mxu0 }
 0x446   : > { %v1959_v2 = vpop.f32.mrf.mxu1 }
 0x447   : > { %v1960_v23 = vadd.f32 %v1959_v2, %v1630_v58 }
 0x449   : > { %v2107_v61 = vpack.c.bf16 %v1960_v23, %v1960_v23 }
 0x44a   : > { %v10323_v9 = vpop.f32.mrf.mxu2 }
 0x44b   : > { %11306 = vst [vmem:[#allocation8_spill] sm:$0xff] %v10323_v9  ;;  %v3154_v22 = vunpack.c.l.b16 %v2107_v61 }
 0x44d   : > { %v3160_v36 = vpack.c.b16 %v3154_v22, %v3153_v63  ;;  %v1633_v45 = vpop.f32.mrf.mxu0  ;;  %v3250_v63 = vsel %vm2156_vm0, %v7237_v40, 0 }
 0x44e   : > { %v1962_v34 = vpop.f32.mrf.mxu1  ;;  %3259 = vmatpush.bf16.msrb.mxu3 %v3250_v63 }
 0x44f   : > { %7234 = vmatmul.msk.bf16.gmra.mxu2 %vm2143_vm1, %v3160_v36  ;;  %v1963_v14 = vadd.f32 %v1962_v34, %v1633_v45 }
 0x451   : > { %v2108_v3 = vpack.c.bf16 %v1963_v14, %v1963_v14 }
 0x452   : > { %v3044_v59 = vpop.f32.mrf.mxu2 }
 0x453   : > { %v10327_v11 = vadd.f32 %v3044_v59, %v10287_v56  ;;  %v3155_v23 = vunpack.c.l.b16 %v2108_v3 }
 0x455   : > { %v1635_v37 = vpop.f32.mrf.mxu0 }
 0x456   : > { %v1964_v33 = vpop.f32.mrf.mxu1 }
 0x457   : > { %v1965_v18 = vadd.f32 %v1964_v33, %v1635_v37 }
 0x459   : > { %v2109_v58 = vpack.c.bf16 %v1965_v18, %v1965_v18 }
 0x45a   : > { %v10329_v2 = vpop.f32.mrf.mxu2 }
 0x45b   : > { %11307 = vst [vmem:[#allocation9_spill] sm:$0xff] %v10329_v2  ;;  %v3156_v61 = vunpack.c.l.b16 %v2109_v58 }
 0x45d   : > { %v3161_v22 = vpack.c.b16 %v3156_v61, %v3155_v23  ;;  %v1638_v36 = vpop.f32.mrf.mxu0 }
 0x45e   : > { %v1967_v56 = vpop.f32.mrf.mxu1 }
 0x45f   : > { %7235 = vmatmul.msk.bf16.gmra.mxu2 %vm2143_vm1, %v3161_v22  ;;  %v1968_v34 = vadd.f32 %v1967_v56, %v1638_v36 }
 0x461   : > { %v2110_v33 = vpack.c.bf16 %v1968_v34, %v1968_v34 }
 0x462   : > { %v3049_v45 = vpop.f32.mrf.mxu2 }
 0x463   : > { %v3063_v59 = vadd.f32 %v3049_v45, %v10309_v27  ;;  %v3157_v3 = vunpack.c.l.b16 %v2110_v33 }
 0x465   : > { %v1640_v14 = vpop.f32.mrf.mxu0 }
 0x466   : > { %v1969_v37 = vpop.f32.mrf.mxu1 }
 0x467   : > { %v1970_v18 = vadd.f32 %v1969_v37, %v1640_v14  ;;  %v10341_v14 = vpop.f32.mrf.mxu3 }
 0x469   : > { %v2111_v9 = vpack.c.bf16 %v1970_v18, %v1970_v18 }
 0x46a   : > { %v10337_v2 = vpop.f32.mrf.mxu2 }
 0x46b   : > { %11308 = vst [vmem:[#allocation10_spill] sm:$0xff] %v10337_v2  ;;  %v3158_v58 = vunpack.c.l.b16 %v2111_v9 }
 0x46d   : > { %v3162_v40 = vpack.c.b16 %v3158_v58, %v3157_v3  ;;  %v1643_v63 = vpop.f32.mrf.mxu0 }
 0x46e   : > { %v1972_v23 = vpop.f32.mrf.mxu1 }
 0x46f   : > { %7236 = vmatmul.msk.bf16.gmra.mxu2 %vm2143_vm1, %v3162_v40  ;;  %v1973_v22 = vadd.f32 %v1972_v23, %v1643_v63 }
 0x471   : > { %v2112_v45 = vpack.c.bf16 %v1973_v22, %v1973_v22 }
 0x472   : > { %v3054_v61 = vpop.f32.mrf.mxu2 }
 0x473   : > { %v3065_v36 = vadd.f32 %v3054_v61, %v10315_v39  ;;  %v3225_v37 = vunpack.c.l.b16 %v2112_v45 }
 0x475   : > { %v1645_v56 = vpop.f32.mrf.mxu0 }
 0x476   : > { %v1974_v27 = vpop.f32.mrf.mxu1 }
 0x477   : > { %v1975_v50 = vadd.f32 %v1974_v27, %v1645_v56 }
 0x479   : > { %v2113_v34 = vpack.c.bf16 %v1975_v50, %v1975_v50 }
 0x47b   : > { %v3226_v18 = vunpack.c.l.b16 %v2113_v34 }
 0x47d   : > { %v3233_v33 = vpack.c.b16 %v3226_v18, %v3225_v37  ;;  %v1648_v9 = vpop.f32.mrf.mxu0 }
 0x47e   : > { %v1977_v3 = vpop.f32.mrf.mxu1 }
 0x47f   : > { %7238 = vmatmul.msk.bf16.vlgmr.msrb.gmra.mxu3 %vm2143_vm1, %v3233_v33  ;;  %v1978_v40 = vadd.f32 %v1977_v3, %v1648_v9 }
 0x481   : > { %v2114_v61 = vpack.c.bf16 %v1978_v40, %v1978_v40 }
 0x482   : > { %v3113_v58 = vpop.f32.mrf.mxu3 }
 0x483   : > { %v3133_v63 = vadd.f32 %v3113_v58, %v10321_v0  ;;  %v3227_v50 = vunpack.c.l.b16 %v2114_v61 }
 0x485   : > { %v1650_v23 = vpop.f32.mrf.mxu0 }
 0x486   : > { %v1979_v39 = vpop.f32.mrf.mxu1 }
 0x487   : > { %v1980_v2 = vadd.f32 %v1979_v39, %v1650_v23 }
 0x489   : > { %v2115_v22 = vpack.c.bf16 %v1980_v2, %v1980_v2 }
 0x48a   : > { %v10345_v56 = vpop.f32.mrf.mxu3 }
 0x48b   : > { %11309 = vst [vmem:[#allocation11_spill] sm:$0xff] %v10345_v56  ;;  %v3228_v27 = vunpack.c.l.b16 %v2115_v22 }
 0x48d   : > { %v3234_v45 = vpack.c.b16 %v3228_v27, %v3227_v50  ;;  %v1653_v34 = vpop.f32.mrf.mxu0 }
 0x48e   : > { %v1982_v37 = vpop.f32.mrf.mxu1 }
 0x48f   : > { %7239 = vmatmul.msk.bf16.gmra.mxu3 %vm2143_vm1, %v3234_v45  ;;  %v1983_v33 = vadd.f32 %v1982_v37, %v1653_v34 }
 0x491   : > { %v2116_v58 = vpack.c.bf16 %v1983_v33, %v1983_v33 }
 0x492   : > { %v3118_v18 = vpop.f32.mrf.mxu3 }
 0x493   : > { %v10349_v9 = vadd.f32 %v3118_v18, %v10327_v11  ;;  %v3229_v39 = vunpack.c.l.b16 %v2116_v58 }
 0x495   : > { %11310 = vst [vmem:[#allocation12_spill] sm:$0xff] %v10349_v9  ;;  %v1655_v0 = vpop.f32.mrf.mxu0 }
 0x496   : > { %v1984_v3 = vpop.f32.mrf.mxu1 }
 0x497   : > { %v1985_v40 = vadd.f32 %v1984_v3, %v1655_v0 }
 0x499   : > { %v2117_v23 = vpack.c.bf16 %v1985_v40, %v1985_v40 }
 0x49a   : > { %v10351_v2 = vpop.f32.mrf.mxu3 }
 0x49b   : > { %v3230_v61 = vunpack.c.l.b16 %v2117_v23 }
 0x49d   : > { %v3235_v22 = vpack.c.b16 %v3230_v61, %v3229_v39  ;;  %v1658_v50 = vpop.f32.mrf.mxu0  ;;  %v10361_v61 = vpop.f32.mrf.mxu2 }
 0x49e   : > { %v1987_v27 = vpop.f32.mrf.mxu1 }
 0x49f   : > { %7240 = vmatmul.msk.bf16.gmra.mxu3 %vm2143_vm1, %v3235_v22  ;;  %v1988_v56 = vadd.f32 %v1987_v27, %v1658_v50 }
 0x4a1   : > { %v2118_v18 = vpack.c.bf16 %v1988_v56, %v1988_v56 }
 0x4a2   : > { %v3123_v45 = vpop.f32.mrf.mxu3 }
 0x4a3   : > { %v10354_v34 = vadd.f32 %v3123_v45, %v3063_v59  ;;  %v3231_v3 = vunpack.c.l.b16 %v2118_v18 }
 0x4a5   : > { %v1660_v11 = vpop.f32.mrf.mxu0 }
 0x4a6   : > { %v1989_v37 = vpop.f32.mrf.mxu1 }
 0x4a7   : > { %v1990_v9 = vadd.f32 %v1989_v37, %v1660_v11 }
 0x4a9   : > { %v2119_v33 = vpack.c.bf16 %v1990_v9, %v1990_v9 }
 0x4aa   : > { %v10356_v0 = vpop.f32.mrf.mxu3 }
 0x4ab   : > { %v3232_v40 = vunpack.c.l.b16 %v2119_v33 }
 0x4ad   : > { %v3236_v58 = vpack.c.b16 %v3232_v40, %v3231_v3  ;;  %v2241_v40 = vadd.f32 %v9525_v5, %v9535_v15 }
 0x4af   : > { %7241 = vmatmul.msk.bf16.gmra.mxu3 %vm2143_vm1, %v3236_v58  ;;  %v2251_v58 = vadd.f32 %v9648_v28, %v9572_v62 }
 0x4b2   : > { %v3128_v23 = vpop.f32.mrf.mxu3 }
 0x4b3   : > { %v10359_v39 = vadd.f32 %v3128_v23, %v3065_v36 }
 0x4ba   : > { %v10363_v50 = vpop.f32.mrf.mxu3 }
 0x4c2   : > { %v3187_v22 = vpop.f32.mrf.mxu2 }
 0x4c3   : > { %v3207_v59 = vadd.f32 %v3187_v22, %v3133_v63  ;;  %v2246_v63 = vadd.f32 %v9550_v35, %v9555_v38  ;;  %v2322_v22 = vadd.f32 %v9611_v44, %v2241_v40  ;;  %v11314_v40 = vld [vmem:[#allocation10_spill] sm:$0xff] }
 0x4c5   : > { %v2324_v3 = vadd.f32 %v9630_v6, %v2246_v63  ;;  %v2396_v6 = vadd.f32 %v9687_v17, %v2322_v22 }
 0x4c7   : > { %v2398_v23 = vadd.f32 %v9706_v42, %v2324_v3  ;;  %v2470_v28 = vadd.f32 %v9763_v60, %v2396_v6 }
 0x4ca   : > { %v10365_v27 = vpop.f32.mrf.mxu2 }
 0x4d2   : > { %v10369_v45 = vpop.f32.mrf.mxu2 }
 0x4da   : > { %v10373_v37 = vpop.f32.mrf.mxu2 }
 0x4e2   : > { %v3197_v36 = vpop.f32.mrf.mxu2 }
 0x4ea   : > { %v3199_v35 = vpop.f32.mrf.mxu2 }
 0x502   : > { %v3261_v56 = vpop.f32.mrf.mxu3 }
 0x503   : > { %v10367_v9 = vadd.f32 %v3261_v56, %v3207_v59  ;;  %v2326_v59 = vadd.f32 %v9724_v4, %v2251_v58  ;;  %v2472_v56 = vadd.f32 %v9782_v25, %v2398_v23  ;;  %v11315_v58 = vld [vmem:[#allocation2_spill] sm:$0xff] }
 0x505   : > { %11311 = vst [vmem:[#allocation13_spill] sm:$0xff] %v10367_v9  ;;  %v2236_v9 = vadd.f32 %v9505_v46, %v9513_v57  ;;  %v2400_v5 = vadd.f32 %v9800_v55, %v2326_v59  ;;  %v2546_v15 = vadd.f32 %v9858_v20, %v2472_v56  ;;  %v2544_v46 = vadd.f32 %v9839_v51, %v2470_v28 }
 0x507   : > { %v2320_v62 = vadd.f32 %v9590_v21, %v2236_v9  ;;  %v2474_v44 = vadd.f32 %v9876_v48, %v2400_v5  ;;  %v2620_v42 = vadd.f32 %v9934_v26, %v2546_v15  ;;  %v2618_v55 = vadd.f32 %v9915_v13, %v2544_v46  ;;  %v11320_v46 = vld [vmem:[#allocation8_spill] sm:$0xff] }
 0x509   : > { %v2394_v4 = vadd.f32 %v9666_v53, %v2320_v62  ;;  %v2548_v57 = vadd.f32 %v9952_v8, %v2474_v44  ;;  %v2694_v17 = vadd.f32 %v10010_v52, %v2620_v42  ;;  %v2692_v26 = vadd.f32 %v9991_v10, %v2618_v55  ;;  %v3202_v52 = vpop.f32.mrf.mxu2  ;;  %v11319_v62 = vld [vmem:[#allocation5_spill] sm:$0xff]  ;;  %v11321_v55 = vld [vmem:[#allocation11_spill] sm:$0xff] }
 0x50a   : > { %v10371_v11 = vpop.f32.mrf.mxu3 }
 0x50b   : > { %v2468_v25 = vadd.f32 %v9742_v54, %v2394_v4  ;;  %v2622_v21 = vadd.f32 %v10028_v32, %v2548_v57  ;;  %v2768_v60 = vadd.f32 %v10086_v29, %v2694_v17  ;;  %v2766_v54 = vadd.f32 %v10067_v47, %v2692_v26 }
 0x50d   : > { %v2542_v20 = vadd.f32 %v9818_v19, %v2468_v25  ;;  %v2696_v53 = vadd.f32 %v10104_v12, %v2622_v21  ;;  %v2842_v51 = vadd.f32 %v10162_v41, %v2768_v60  ;;  %v2840_v19 = vadd.f32 %v10143_v43, %v2766_v54  ;;  %v11312_v41 = vld [vmem:[#allocation4_spill] sm:$0xff] }
 0x50f   : > { %v2616_v8 = vadd.f32 %v9894_v49, %v2542_v20  ;;  %v2770_v13 = vadd.f32 %v10180_v30, %v2696_v53  ;;  %v2916_v32 = vadd.f32 %v10238_v24, %v2842_v51  ;;  %v2914_v63 = vadd.f32 %v11312_v41, %v2840_v19  ;;  %v11313_v49 = vld [vmem:[#allocation7_spill] sm:$0xff]  ;;  %v11316_v24 = vld [vmem:[#allocation6_spill] sm:$0xff] }
 0x511   : > { %v2690_v29 = vadd.f32 %v9970_v31, %v2616_v8  ;;  %v2844_v9 = vadd.f32 %v10256_v16, %v2770_v13  ;;  %v2990_v10 = vadd.f32 %v10311_v7, %v2916_v32  ;;  %v2988_v22 = vadd.f32 %v11316_v24, %v2914_v63  ;;  %v11317_v7 = vld [vmem:[#allocation3_spill] sm:$0xff]  ;;  %v3204_v44 = vpop.f32.mrf.mxu2  ;;  %v8843_v24 = vld [vmem:[%s11288_s2] sm:$0xff] }
 0x512   : > { %v10375_v18 = vpop.f32.mrf.mxu3  ;;  %v3213_v16 = vadd.f32 %v3202_v52, %v10359_v39 }
 0x513   : > { %v2764_v12 = vadd.f32 %v10046_v1, %v2690_v29  ;;  %v2918_v3 = vadd.f32 %v11313_v49, %v2844_v9  ;;  %v3064_v47 = vadd.f32 %v11314_v40, %v2990_v10  ;;  %v11318_v1 = vld [vmem:[#allocation9_spill] sm:$0xff] }
 0x514   : > { %v3062_v56 = vadd.f32 %v11318_v1, %v2988_v22  ;;  %v8844_v22 = vld [vmem:[%s11288_s2 + $0x8] sm:$0xff]  ;;  %v8850_v1 = vld [vmem:[%s11288_s2 + $0x38] sm:$0xff] }
 0x515   : > { %v2838_v30 = vadd.f32 %v11315_v58, %v2764_v12  ;;  %v2992_v31 = vadd.f32 %v10341_v14, %v2918_v3  ;;  %v3138_v43 = vadd.f32 %v10356_v0, %v3064_v47  ;;  %v3211_v14 = vadd.f32 %v3197_v36, %v10354_v34  ;;  %v9096_v0 = vld [vmem:[%s11295_s9] ss:$0 sm:$0xff]  ;;  %v11323_v12 = vld [vmem:[#allocation13_spill] sm:$0xff] }
 0x516   : > { %v3136_v42 = vadd.f32 %v10351_v2, %v3062_v56  ;;  %v11322_v2 = vld [vmem:[#allocation12_spill] sm:$0xff]  ;;  %v8862_v56 = vld [vmem:[%s11292_s6 + $0x18] sm:$0xff] }
 0x517   : > { %v2912_v59 = vadd.f32 %v11317_v7, %v2838_v30  ;;  %v3066_v6 = vadd.f32 %v10361_v61, %v2992_v31  ;;  %v3212_v5 = vadd.f32 %v3199_v35, %v3138_v43  ;;  %v8845_v31 = vld [vmem:[%s11288_s2 + $0x10] sm:$0xff]  ;;  %v8846_v43 = vld [vmem:[%s11288_s2 + $0x18] sm:$0xff]  ;;  %v8848_v7 = vld [vmem:[%s11288_s2 + $0x28] sm:$0xff]  ;;  %3639 = vmatpush.bf16.msra.mxu3 %v8862_v56 }
 0x518   : > { %v3210_v61 = vadd.f32 %v10373_v37, %v3136_v42  ;;  %v8852_v42 = vld [vmem:[%s11288_s2 + $0x48] sm:$0xff]  ;;  %v8858_v56 = vld [vmem:[%s11288_s2 + $0x78] sm:$0xff] }
 0x519   : > { %v2986_v28 = vadd.f32 %v11319_v62, %v2912_v59  ;;  %v3140_v4 = vadd.f32 %v10363_v50, %v3066_v6  ;;  %v3209_v50 = vadd.f32 %v10369_v45, %v11322_v2  ;;  %v8849_v59 = vld [vmem:[%s11288_s2 + $0x30] sm:$0xff]  ;;  %v8851_v6 = vld [vmem:[%s11288_s2 + $0x40] sm:$0xff]  ;;  %v8860_v62 = vld [vmem:[%s11292_s6 + $0x8] sm:$0xff] }
 0x51a   : > { %v10377_v33 = vpop.f32.mrf.mxu3 }
 0x51b   : > { %v3060_v57 = vadd.f32 %v11320_v46, %v2986_v28  ;;  %v3214_v35 = vadd.f32 %v3204_v44, %v3140_v4  ;;  %v3284_v34 = vadd.f32 %v10377_v33, %v3210_v61  ;;  %v8859_v28 = vld [vmem:[%s11292_s6] sm:$0xff]  ;;  %v8853_v46 = vld [vmem:[%s11288_s2 + $0x50] sm:$0xff] }
 0x51d   : > { %v3134_v21 = vadd.f32 %v11321_v55, %v3060_v57  ;;  %v3296_v8 = vadd.f32 %v9096_v0, %v3284_v34  ;;  %v8863_v55 = vld [vmem:[%s11292_s6 + $0x20] sm:$0xff]  ;;  %v8854_v34 = vld [vmem:[%s11288_s2 + $0x58] sm:$0xff] }
 0x51f   : > { %v3208_v26 = vadd.f32 %v10365_v27, %v3134_v21  ;;  %v3304_v33 = vmul.f32 0.2, %v3296_v8  ;;  %v3293_v27 = vadd.f32 %v9096_v0, %v11323_v12 }
 0x521   : > { %v3312_v49 = vmax.f32 %v3296_v8, %v3304_v33 }
 0x522   : > { %v3271_v38 = vpop.f32.mrf.mxu3 }
 0x523   : > { %v3285_v17 = vadd.f32 %v3271_v38, %v3211_v14  ;;  %v3282_v38 = vadd.f32 %v10371_v11, %v3208_v26  ;;  %v3301_v11 = vmul.f32 0.2, %v3293_v27 }
 0x525   : > { %v3297_v53 = vadd.f32 %v9096_v0, %v3285_v17  ;;  %v3294_v19 = vadd.f32 %v9096_v0, %v3282_v38  ;;  %v3309_v30 = vmax.f32 %v3293_v27, %v3301_v11  ;;  %v8856_v27 = vld [vmem:[%s11288_s2 + $0x68] sm:$0xff] }
 0x527   : > { %v3305_v32 = vmul.f32 0.2, %v3297_v53  ;;  %v3302_v63 = vmul.f32 0.2, %v3294_v19 }
 0x529   : > { %v3310_v47 = vmax.f32 %v3294_v19, %v3302_v63 }
 0x52a   : > { %v3273_v48 = vpop.f32.mrf.mxu3 }
 0x52b   : > { %v3286_v39 = vadd.f32 %v3273_v48, %v3212_v5  ;;  %v3283_v48 = vadd.f32 %v10375_v18, %v3209_v50  ;;  %v3313_v18 = vmax.f32 %v3297_v53, %v3305_v32  ;;  %v8861_v5 = vld [vmem:[%s11292_s6 + $0x10] sm:$0xff] }
 0x52c   : > { %3640 = vmatpush.bf16.msra.mxu3 %v8861_v5  ;;  %v8865_v53 = vld [vmem:[%s11292_s6 + $0x30] sm:$0xff] }
 0x52d   : > { %v3298_v36 = vadd.f32 %v9096_v0, %v3286_v39  ;;  %v3295_v13 = vadd.f32 %v9096_v0, %v3283_v48 }
 0x52f   : > { %v3306_v52 = vmul.f32 0.2, %v3298_v36  ;;  %v3303_v41 = vmul.f32 0.2, %v3295_v13 }
 0x530   : > { %3673 = vmatpush.bf16.msrb.mxu3 %v8860_v62  ;;  %v8873_v62 = vld [vmem:[%s11292_s6 + $0x70] sm:$0xff] }
 0x531   : > { %v3314_v9 = vmax.f32 %v3298_v36, %v3306_v52  ;;  %v3311_v40 = vmax.f32 %v3295_v13, %v3303_v41  ;;  %v8868_v13 = vld [vmem:[%s11292_s6 + $0x48] sm:$0xff]  ;;  %v8870_v41 = vld [vmem:[%s11292_s6 + $0x58] sm:$0xff] }
 0x532   : > { %v3276_v23 = vpop.f32.mrf.mxu3 }
 0x533   : > { %v3287_v15 = vadd.f32 %v3276_v23, %v3213_v16  ;;  %v3319_v3 = vpack.c.bf16 %v3314_v9, %v3313_v18  ;;  %v3318_v58 = vpack.c.bf16 %v3312_v49, %v3311_v40  ;;  %v3317_v23 = vpack.c.bf16 %v3310_v47, %v3309_v30  ;;  %v8847_v16 = vld [vmem:[%s11288_s2 + $0x20] sm:$0xff]  ;;  %v8869_v49 = vld [vmem:[%s11292_s6 + $0x50] sm:$0xff] }
 0x534   : > { %3674 = vmatpush.bf16.msrb.mxu3 %v8859_v28  ;;  %v8857_v30 = vld [vmem:[%s11288_s2 + $0x70] sm:$0xff] }
 0x535   : > { %v3299_v25 = vadd.f32 %v9096_v0, %v3287_v15 }
 0x537   : > { %v3307_v51 = vmul.f32 0.2, %v3299_v25 }
 0x539   : > { %v3315_v29 = vmax.f32 %v3299_v25, %v3307_v51 }
 0x53a   : > { %v3278_v60 = vpop.f32.mrf.mxu3 }
 0x53b   : > { %v3288_v20 = vadd.f32 %v3278_v60, %v3214_v35  ;;  %v8864_v35 = vld [vmem:[%s11292_s6 + $0x28] sm:$0xff] }
 0x53d   : > { %v3300_v37 = vadd.f32 %v9096_v0, %v3288_v20  ;;  %v8866_v20 = vld [vmem:[%s11292_s6 + $0x38] sm:$0xff] }
 0x53f   : > { %v3308_v54 = vmul.f32 0.2, %v3300_v37 }
 0x541   : > { %v3316_v45 = vmax.f32 %v3300_v37, %v3308_v54  ;;  %v8855_v54 = vld [vmem:[%s11288_s2 + $0x60] sm:$0xff] }
 0x543   : > { %v3320_v10 = vpack.c.bf16 %v3316_v45, %v3315_v29  ;;  %v8867_v45 = vld [vmem:[%s11292_s6 + $0x40] sm:$0xff] }
 0x545   : > { %3486 = vmatpush.bf16.msra.mxu2 %v3320_v10 }
 0x549   : > { %3487 = vmatpush.bf16.msra.mxu2 %v3319_v3 }
 0x54d   : > { %3488 = vmatpush.bf16.msra.mxu2 %v3318_v58 }
 0x551   : > { %3489 = vmatpush.bf16.msra.mxu2 %v3317_v23  ;;  %v8872_v23 = vld [vmem:[%s11292_s6 + $0x68] sm:$0xff] }
 0x554   : > { %7306 = vmatmul.msk.bf16.vlgmr.msra.gmra.mxu2 %vm3433_vm2, %v8843_v24 }
 0x564   : > { %7307 = vmatmul.msk.bf16.gmra.mxu2 %vm3433_vm2, %v8844_v22 }
 0x574   : > { %7308 = vmatmul.msk.bf16.gmra.mxu2 %vm3433_vm2, %v8845_v31  ;;  %v8871_v31 = vld [vmem:[%s11292_s6 + $0x60] sm:$0xff] }
 0x584   : > { %7309 = vmatmul.msk.bf16.gmra.mxu2 %vm3433_vm2, %v8846_v43 }
 0x594   : > { %7310 = vmatmul.msk.bf16.gmra.mxu2 %vm3433_vm2, %v8847_v16 }
 0x5a4   : > { %7311 = vmatmul.msk.bf16.gmra.mxu2 %vm3433_vm2, %v8848_v7 }
 0x5b4   : > { %7312 = vmatmul.msk.bf16.gmra.mxu2 %vm3433_vm2, %v8849_v59 }
 0x5c4   : > { %7313 = vmatmul.msk.bf16.gmra.mxu2 %vm3433_vm2, %v8850_v1 }
 0x5d4   : > { %7314 = vmatmul.msk.bf16.gmra.mxu2 %vm3433_vm2, %v8851_v6  ;;  %v8874_v6 = vld [vmem:[%s11292_s6 + $0x78] sm:$0xff] }
 0x5d7   : > { %v3491_v15 = vpop.f32.mrf.mxu2 }
 0x5d8   : > { %v3571_v60 = vpack.c.bf16 %v3491_v15, %v3491_v15 }
 0x5da   : > { %v3649_v36 = vunpack.c.l.b16 %v3571_v60 }
 0x5df   : > { %v3493_v44 = vpop.f32.mrf.mxu2 }
 0x5e0   : > { %v3572_v21 = vpack.c.bf16 %v3493_v44, %v3493_v44 }
 0x5e2   : > { %v3650_v50 = vunpack.c.l.b16 %v3572_v21  ;;  %v8878_v21 = vld [vmem:[%s11292_s6 + $0x98] sm:$0xff] }
 0x5e4   : > { %7315 = vmatmul.msk.bf16.gmra.mxu2 %vm3433_vm2, %v8852_v42  ;;  %v3651_v26 = vpack.c.b16 %v3650_v50, %v3649_v36  ;;  %v8877_v50 = vld [vmem:[%s11292_s6 + $0x90] sm:$0xff] }
 0x5e7   : > { %v3496_v4 = vpop.f32.mrf.mxu2 }
 0x5e8   : > { %v3573_v14 = vpack.c.bf16 %v3496_v4, %v3496_v4 }
 0x5ea   : > { %v3614_v57 = vunpack.c.l.b16 %v3573_v14 }
 0x5ef   : > { %v3498_v0 = vpop.f32.mrf.mxu2 }
 0x5f0   : > { %v3574_v39 = vpack.c.bf16 %v3498_v0, %v3498_v0  ;;  %v8876_v0 = vld [vmem:[%s11292_s6 + $0x88] sm:$0xff] }
 0x5f2   : > { %v3615_v61 = vunpack.c.l.b16 %v3574_v39 }
 0x5f4   : > { %v3616_v17 = vpack.c.b16 %v3615_v61, %v3614_v57  ;;  %7316 = vmatmul.msk.bf16.gmra.mxu2 %vm3433_vm2, %v8853_v46  ;;  %v8875_v57 = vld [vmem:[%s11292_s6 + $0x80] sm:$0xff] }
 0x5f6   : > { %7334 = vmatmul.msk.bf16.vlgmr.msra.gmra.mxu3 %vm3629_vm3, %v3616_v17 }
 0x5f7   : > { %v3501_v25 = vpop.f32.mrf.mxu2  ;;  %3712 = vmatpush.bf16.msra.mxu3 %v8864_v35 }
 0x5f8   : > { %v3575_v51 = vpack.c.bf16 %v3501_v25, %v3501_v25 }
 0x5fa   : > { %v3688_v8 = vunpack.c.l.b16 %v3575_v51 }
 0x5fb   : > { %3713 = vmatpush.bf16.msra.mxu3 %v8863_v55 }
 0x5ff   : > { %v3503_v2 = vpop.f32.mrf.mxu2 }
 0x600   : > { %v3576_v37 = vpack.c.bf16 %v3503_v2, %v3503_v2 }
 0x602   : > { %v3689_v52 = vunpack.c.l.b16 %v3576_v37 }
 0x604   : > { %7317 = vmatmul.msk.bf16.gmra.mxu2 %vm3433_vm2, %v8854_v34  ;;  %v3690_v32 = vpack.c.b16 %v3689_v52, %v3688_v8 }
 0x606   : > { %7343 = vmatmul.msk.bf16.vlgmr.msrb.gmra.mxu3 %vm3629_vm3, %v3651_v26 }
 0x607   : > { %v3506_v48 = vpop.f32.mrf.mxu2  ;;  %3753 = vmatpush.bf16.msrb.mxu3 %v8866_v20 }
 0x608   : > { %v3577_v19 = vpack.c.bf16 %v3506_v48, %v3506_v48 }
 0x60a   : > { %v3729_v10 = vunpack.c.l.b16 %v3577_v19  ;;  %v8882_v19 = vld [vmem:[%s11292_s6 + $0xb8] sm:$0xff] }
 0x60b   : > { %3754 = vmatpush.bf16.msrb.mxu3 %v8865_v53  ;;  %v8880_v53 = vld [vmem:[%s11292_s6 + $0xa8] sm:$0xff] }
 0x60f   : > { %v3508_v38 = vpop.f32.mrf.mxu2 }
 0x610   : > { %v3578_v33 = vpack.c.bf16 %v3508_v38, %v3508_v38  ;;  %v8879_v38 = vld [vmem:[%s11292_s6 + $0xa0] sm:$0xff] }
 0x612   : > { %v3730_v12 = vunpack.c.l.b16 %v3578_v33 }
 0x614   : > { %7318 = vmatmul.msk.bf16.gmra.mxu2 %vm3433_vm2, %v8855_v54  ;;  %v3731_v18 = vpack.c.b16 %v3730_v12, %v3729_v10  ;;  %v8881_v10 = vld [vmem:[%s11292_s6 + $0xb0] sm:$0xff] }
 0x616   : > { %7356 = vmatmul.msk.bf16.vlgmr.msra.gmra.mxu3 %vm3629_vm3, %v3690_v32 }
 0x617   : > { %v3511_v29 = vpop.f32.mrf.mxu2  ;;  %3794 = vmatpush.bf16.msra.mxu3 %v8868_v13 }
 0x618   : > { %v3579_v3 = vpack.c.bf16 %v3511_v29, %v3511_v29 }
 0x61a   : > { %v3770_v47 = vunpack.c.l.b16 %v3579_v3 }
 0x61b   : > { %3795 = vmatpush.bf16.msra.mxu3 %v8867_v45 }
 0x61f   : > { %v3513_v9 = vpop.f32.mrf.mxu2 }
 0x620   : > { %v3580_v11 = vpack.c.bf16 %v3513_v9, %v3513_v9 }
 0x622   : > { %v3771_v58 = vunpack.c.l.b16 %v3580_v11 }
 0x624   : > { %7319 = vmatmul.msk.bf16.gmra.mxu2 %vm3433_vm2, %v8856_v27  ;;  %v3772_v24 = vpack.c.b16 %v3771_v58, %v3770_v47  ;;  %v8884_v47 = vld [vmem:[%s11292_s6 + $0xc8] sm:$0xff] }
 0x626   : > { %7369 = vmatmul.msk.bf16.vlgmr.msrb.gmra.mxu3 %vm3629_vm3, %v3731_v18 }
 0x627   : > { %v3516_v63 = vpop.f32.mrf.mxu2  ;;  %3835 = vmatpush.bf16.msrb.mxu3 %v8870_v41 }
 0x628   : > { %v3581_v43 = vpack.c.bf16 %v3516_v63, %v3516_v63 }
 0x62a   : > { %v3811_v59 = vunpack.c.l.b16 %v3581_v43 }
 0x62b   : > { %3836 = vmatpush.bf16.msrb.mxu3 %v8869_v49 }
 0x62f   : > { %v3518_v40 = vpop.f32.mrf.mxu2 }
 0x630   : > { %v3582_v16 = vpack.c.bf16 %v3518_v40, %v3518_v40 }
 0x632   : > { %v3812_v1 = vunpack.c.l.b16 %v3582_v16 }
 0x634   : > { %7320 = vmatmul.msk.bf16.gmra.mxu2 %vm3433_vm2, %v8857_v30  ;;  %v3813_v5 = vpack.c.b16 %v3812_v1, %v3811_v59 }
 0x636   : > { %7382 = vmatmul.msk.bf16.vlgmr.msra.gmra.mxu3 %vm3629_vm3, %v3772_v24 }
 0x637   : > { %v3521_v22 = vpop.f32.mrf.mxu2  ;;  %3876 = vmatpush.bf16.msra.mxu3 %v8872_v23  ;;  %v8883_v23 = vld [vmem:[%s11292_s6 + $0xc0] sm:$0xff] }
 0x638   : > { %v3583_v28 = vpack.c.bf16 %v3521_v22, %v3521_v22 }
 0x63a   : > { %v3852_v4 = vunpack.c.l.b16 %v3583_v28 }
 0x63b   : > { %3877 = vmatpush.bf16.msra.mxu3 %v8871_v31 }
 0x63f   : > { %v3523_v7 = vpop.f32.mrf.mxu2 }
 0x640   : > { %v3584_v44 = vpack.c.bf16 %v3523_v7, %v3523_v7 }
 0x642   : > { %v3853_v14 = vunpack.c.l.b16 %v3584_v44 }
 0x644   : > { %7321 = vmatmul.msk.bf16.gmra.mxu2 %vm3433_vm2, %v8858_v56  ;;  %v3854_v39 = vpack.c.b16 %v3853_v14, %v3852_v4 }
 0x646   : > { %7395 = vmatmul.msk.bf16.vlgmr.msrb.gmra.mxu3 %vm3629_vm3, %v3813_v5 }
 0x647   : > { %v3526_v15 = vpop.f32.mrf.mxu2  ;;  %3917 = vmatpush.bf16.msrb.mxu3 %v8874_v6  ;;  %v8886_v6 = vld [vmem:[%s11292_s6 + $0xd8] sm:$0xff] }
 0x648   : > { %v3585_v61 = vpack.c.bf16 %v3526_v15, %v3526_v15 }
 0x64a   : > { %v3893_v25 = vunpack.c.l.b16 %v3585_v61  ;;  %v8888_v61 = vld [vmem:[%s11292_s6 + $0xe8] sm:$0xff] }
 0x64b   : > { %3918 = vmatpush.bf16.msrb.mxu3 %v8873_v62  ;;  %v8885_v62 = vld [vmem:[%s11292_s6 + $0xd0] sm:$0xff] }
 0x64f   : > { %v3528_v42 = vpop.f32.mrf.mxu2 }
 0x650   : > { %v3586_v35 = vpack.c.bf16 %v3528_v42, %v3528_v42 }
 0x652   : > { %v3894_v55 = vunpack.c.l.b16 %v3586_v35 }
 0x654   : > { %v3895_v60 = vpack.c.b16 %v3894_v55, %v3893_v25 }
 0x656   : > { %7408 = vmatmul.msk.bf16.vlgmr.msra.gmra.mxu3 %vm3629_vm3, %v3854_v39 }
 0x657   : > { %v3531_v46 = vpop.f32.mrf.mxu2  ;;  %3958 = vmatpush.bf16.msra.mxu3 %v8876_v0 }
 0x658   : > { %v3587_v34 = vpack.c.bf16 %v3531_v46, %v3531_v46 }
 0x65a   : > { %v3934_v26 = vunpack.c.l.b16 %v3587_v34 }
 0x65b   : > { %3959 = vmatpush.bf16.msra.mxu3 %v8875_v57 }
 0x65f   : > { %v3533_v17 = vpop.f32.mrf.mxu2 }
 0x660   : > { %v3588_v36 = vpack.c.bf16 %v3533_v17, %v3533_v17  ;;  %v8887_v17 = vld [vmem:[%s11292_s6 + $0xe0] sm:$0xff] }
 0x662   : > { %v3935_v48 = vunpack.c.l.b16 %v3588_v36 }
 0x664   : > { %v3936_v51 = vpack.c.b16 %v3935_v48, %v3934_v26 }
 0x666   : > { %7421 = vmatmul.msk.bf16.vlgmr.msrb.gmra.mxu3 %vm3629_vm3, %v3895_v60 }
 0x667   : > { %v3536_v2 = vpop.f32.mrf.mxu2  ;;  %3999 = vmatpush.bf16.msrb.mxu3 %v8878_v21 }
 0x668   : > { %v3589_v52 = vpack.c.bf16 %v3536_v2, %v3536_v2 }
 0x66a   : > { %v3975_v32 = vunpack.c.l.b16 %v3589_v52 }
 0x66b   : > { %4000 = vmatpush.bf16.msrb.mxu3 %v8877_v50 }
 0x66f   : > { %v3538_v20 = vpop.f32.mrf.mxu2 }
 0x670   : > { %v3590_v54 = vpack.c.bf16 %v3538_v20, %v3538_v20  ;;  %v8890_v20 = vld [vmem:[%s11292_s6 + $0xf8] sm:$0xff] }
 0x672   : > { %v3976_v29 = vunpack.c.l.b16 %v3590_v54 }
 0x674   : > { %v3977_v33 = vpack.c.b16 %v3976_v29, %v3975_v32 }
 0x676   : > { %7434 = vmatmul.msk.bf16.vlgmr.msra.gmra.mxu3 %vm3629_vm3, %v3936_v51 }
 0x677   : > { %v3541_v37 = vpop.f32.mrf.mxu2  ;;  %4040 = vmatpush.bf16.msra.mxu3 %v8880_v53  ;;  %v8889_v53 = vld [vmem:[%s11292_s6 + $0xf0] sm:$0xff] }
 0x678   : > { %v3591_v41 = vpack.c.bf16 %v3541_v37, %v3541_v37 }
 0x679   : > { %v3642_v8 = vpop.f32.mrf.mxu3 }
 0x67a   : > { %v4016_v49 = vunpack.c.l.b16 %v3591_v41 }
 0x67b   : > { %4041 = vmatpush.bf16.msra.mxu3 %v8879_v38  ;;  %v9023_v38 = vld [vmem:[%s11294_s8 + $0x1f8] sm:$0xff] }
 0x67c   : > { %5846 = vmatpush.bf16.msrb.mxu0 %v9023_v38 }
 0x67f   : > { %v3543_v13 = vpop.f32.mrf.mxu2 }
 0x680   : > { %v3592_v18 = vpack.c.bf16 %v3543_v13, %v3543_v13 }
 0x681   : > { %v3644_v45 = vpop.f32.mrf.mxu3 }
 0x682   : > { %v4017_v3 = vunpack.c.l.b16 %v3592_v18 }
 0x684   : > { %v4018_v58 = vpack.c.b16 %v4017_v3, %v4016_v49 }
 0x686   : > { %7447 = vmatmul.msk.bf16.vlgmr.msrb.gmra.mxu3 %vm3629_vm3, %v3977_v33 }
 0x687   : > { %v3546_v9 = vpop.f32.mrf.mxu2  ;;  %4081 = vmatpush.bf16.msrb.mxu3 %v8882_v19 }
 0x688   : > { %v3593_v31 = vpack.c.bf16 %v3546_v9, %v3546_v9 }
 0x689   : > { %v3676_v12 = vpop.f32.mrf.mxu3 }
 0x68a   : > { %v3677_v27 = vadd.f32 %v3676_v12, %v3642_v8  ;;  %v4057_v7 = vunpack.c.l.b16 %v3593_v31 }
 0x68b   : > { %4082 = vmatpush.bf16.msrb.mxu3 %v8881_v10 }
 0x68f   : > { %v3548_v63 = vpop.f32.mrf.mxu2 }
 0x690   : > { %v3594_v43 = vpack.c.bf16 %v3548_v63, %v3548_v63 }
 0x691   : > { %v3678_v11 = vpop.f32.mrf.mxu3 }
 0x692   : > { %v3679_v40 = vadd.f32 %v3678_v11, %v3644_v45  ;;  %v4058_v59 = vunpack.c.l.b16 %v3594_v43  ;;  %v9031_v45 = vld [vmem:[%s11294_s8 + $0x238] sm:$0xff] }
 0x693   : > { %5925 = vmatpush.bf16.msrb.mxu1 %v9031_v45  ;;  %v8892_v45 = vld [vmem:[%s11289_s3 + $0x8] sm:$0xff] }
 0x694   : > { %v4059_v5 = vpack.c.b16 %v4058_v59, %v4057_v7 }
 0x696   : > { %7460 = vmatmul.msk.bf16.vlgmr.msra.gmra.mxu3 %vm3629_vm3, %v4018_v58 }
 0x697   : > { %v3551_v30 = vpop.f32.mrf.mxu2  ;;  %4122 = vmatpush.bf16.msra.mxu3 %v8884_v47 }
 0x698   : > { %v3595_v42 = vpack.c.bf16 %v3551_v30, %v3551_v30 }
 0x699   : > { %v3715_v24 = vpop.f32.mrf.mxu3 }
 0x69a   : > { %v3720_v22 = vadd.f32 %v3715_v24, %v3677_v27  ;;  %v4098_v14 = vunpack.c.l.b16 %v3595_v42 }
 0x69b   : > { %4123 = vmatpush.bf16.msra.mxu3 %v8883_v23 }
 0x69f   : > { %v3553_v16 = vpop.f32.mrf.mxu2 }
 0x6a0   : > { %v3596_v4 = vpack.c.bf16 %v3553_v16, %v3553_v16 }
 0x6a1   : > { %v3717_v1 = vpop.f32.mrf.mxu3 }
 0x6a2   : > { %v3721_v56 = vadd.f32 %v3717_v1, %v3679_v40  ;;  %v4099_v0 = vunpack.c.l.b16 %v3596_v4 }
 0x6a4   : > { %v4100_v35 = vpack.c.b16 %v4099_v0, %v4098_v14  ;;  %v9021_v14 = vld [vmem:[%s11294_s8 + $0x1e8] sm:$0xff] }
 0x6a5   : > { %v9029_v0 = vld [vmem:[%s11294_s8 + $0x228] sm:$0xff] }
 0x6a6   : > { %7473 = vmatmul.msk.bf16.vlgmr.msrb.gmra.mxu3 %vm3629_vm3, %v4059_v5 }
 0x6a7   : > { %v3556_v15 = vpop.f32.mrf.mxu2  ;;  %4163 = vmatpush.bf16.msrb.mxu3 %v8886_v6 }
 0x6a8   : > { %v3597_v60 = vpack.c.bf16 %v3556_v15, %v3556_v15  ;;  %v9022_v15 = vld [vmem:[%s11294_s8 + $0x1f0] sm:$0xff] }
 0x6a9   : > { %v3756_v28 = vpop.f32.mrf.mxu3  ;;  %5847 = vmatpush.bf16.msrb.mxu0 %v9022_v15  ;;  %v8903_v15 = vld [vmem:[%s11293_s7 + $0x40] sm:$0xff] }
 0x6aa   : > { %v3761_v44 = vadd.f32 %v3756_v28, %v3720_v22  ;;  %v4139_v50 = vunpack.c.l.b16 %v3597_v60  ;;  %v9030_v28 = vld [vmem:[%s11294_s8 + $0x230] sm:$0xff] }
 0x6ab   : > { %4164 = vmatpush.bf16.msrb.mxu3 %v8885_v62  ;;  %5926 = vmatpush.bf16.msrb.mxu1 %v9030_v28  ;;  %v8910_v28 = vld [vmem:[%s11293_s7 + $0x78] sm:$0xff] }
 0x6ad   : > { %5848 = vmatpush.bf16.msrb.mxu0 %v9021_v14 }
 0x6af   : > { %v3558_v46 = vpop.f32.mrf.mxu2  ;;  %5927 = vmatpush.bf16.msrb.mxu1 %v9029_v0  ;;  %v8908_v0 = vld [vmem:[%s11293_s7 + $0x68] sm:$0xff] }
 0x6b0   : > { %v3598_v2 = vpack.c.bf16 %v3558_v46, %v3558_v46 }
 0x6b1   : > { %v3758_v39 = vpop.f32.mrf.mxu3 }
 0x6b2   : > { %v10608_v57 = vadd.f32 %v3758_v39, %v3721_v56  ;;  %v4140_v34 = vunpack.c.l.b16 %v3598_v2 }
 0x6b4   : > { %v4141_v26 = vpack.c.b16 %v4140_v34, %v4139_v50 }
 0x6b6   : > { %7486 = vmatmul.msk.bf16.vlgmr.msra.gmra.mxu3 %vm3629_vm3, %v4100_v35 }
 0x6b7   : > { %4204 = vmatpush.bf16.msra.mxu3 %v8888_v61  ;;  %v3561_v21 = vpop.f32.mrf.mxu2 }
 0x6b8   : > { %v3599_v8 = vpack.c.bf16 %v3561_v21, %v3561_v21 }
 0x6b9   : > { %v3797_v25 = vpop.f32.mrf.mxu3 }
 0x6ba   : > { %v3802_v55 = vadd.f32 %v3797_v25, %v3761_v44  ;;  %v4180_v13 = vunpack.c.l.b16 %v3599_v8 }
 0x6bb   : > { %4205 = vmatpush.bf16.msra.mxu3 %v8887_v17 }
 0x6bf   : > { %v3563_v48 = vpop.f32.mrf.mxu2 }
 0x6c0   : > { %v3600_v52 = vpack.c.bf16 %v3563_v48, %v3563_v48 }
 0x6c1   : > { %v3799_v36 = vpop.f32.mrf.mxu3 }
 0x6c2   : > { %v4181_v32 = vunpack.c.l.b16 %v3600_v52  ;;  %v3803_v42 = vadd.f32 %v3799_v36, %v10608_v57  ;;  %v9097_v36 = vld [vmem:[%s11296_s10] ss:$0 sm:$0xff] }
 0x6c4   : > { %v4182_v19 = vpack.c.b16 %v4181_v32, %v4180_v13  ;;  %v8891_v32 = vld [vmem:[%s11289_s3] sm:$0xff] }
 0x6c6   : > { %7499 = vmatmul.msk.bf16.vlgmr.msrb.gmra.mxu3 %vm3629_vm3, %v4141_v26 }
 0x6c7   : > { %4245 = vmatpush.bf16.msrb.mxu3 %v8890_v20  ;;  %v3566_v54 = vpop.f32.mrf.mxu2 }
 0x6c8   : > { %v3601_v12 = vpack.c.bf16 %v3566_v54, %v3566_v54 }
 0x6c9   : > { %v3838_v51 = vpop.f32.mrf.mxu3 }
 0x6ca   : > { %v3843_v37 = vadd.f32 %v3838_v51, %v3802_v55  ;;  %v4221_v41 = vunpack.c.l.b16 %v3601_v12  ;;  %v8899_v12 = vld [vmem:[%s11293_s7 + $0x20] sm:$0xff] }
 0x6cb   : > { %4246 = vmatpush.bf16.msrb.mxu3 %v8889_v53 }
 0x6cf   : > { %v3568_v33 = vpop.f32.mrf.mxu2 }
 0x6d0   : > { %v3602_v27 = vpack.c.bf16 %v3568_v33, %v3568_v33  ;;  %v8893_v33 = vld [vmem:[%s11289_s3 + $0x10] sm:$0xff] }
 0x6d1   : > { %v3840_v29 = vpop.f32.mrf.mxu3 }
 0x6d2   : > { %v4222_v18 = vunpack.c.l.b16 %v3602_v27  ;;  %v3844_v4 = vadd.f32 %v3840_v29, %v3803_v42  ;;  %v8902_v29 = vld [vmem:[%s11293_s7 + $0x38] sm:$0xff]  ;;  %v8909_v42 = vld [vmem:[%s11293_s7 + $0x70] sm:$0xff] }
 0x6d3   : > { %v8898_v27 = vld [vmem:[%s11293_s7 + $0x18] sm:$0xff] }
 0x6d4   : > { %v4223_v49 = vpack.c.b16 %v4222_v18, %v4221_v41  ;;  %v8897_v41 = vld [vmem:[%s11293_s7 + $0x10] sm:$0xff]  ;;  %v8896_v18 = vld [vmem:[%s11293_s7 + $0x8] sm:$0xff] }
 0x6d6   : > { %7512 = vmatmul.msk.bf16.vlgmr.msra.gmra.mxu3 %vm3629_vm3, %v4182_v19  ;;  %v8901_v19 = vld [vmem:[%s11293_s7 + $0x30] sm:$0xff] }
 0x6d7   : > { %4396 = vmatpush.bf16.msra.mxu3 %v8902_v29 }
 0x6d9   : > { %v3879_v9 = vpop.f32.mrf.mxu3 }
 0x6da   : > { %v3884_v10 = vadd.f32 %v3879_v9, %v3843_v37  ;;  %v8894_v9 = vld [vmem:[%s11289_s3 + $0x18] sm:$0xff] }
 0x6db   : > { %4397 = vmatpush.bf16.msra.mxu3 %v8901_v19  ;;  %v8923_v19 = vld [vmem:[%s11293_s7 + $0xe0] sm:$0xff] }
 0x6e1   : > { %v3881_v63 = vpop.f32.mrf.mxu3 }
 0x6e2   : > { %v3885_v39 = vadd.f32 %v3881_v63, %v3844_v4  ;;  %v8895_v63 = vld [vmem:[%s11293_s7] sm:$0xff]  ;;  %v8930_v4 = vld [vmem:[%s11293_s7 + $0x118] sm:$0xff] }
 0x6e6   : > { %7525 = vmatmul.msk.bf16.vlgmr.msrb.gmra.mxu3 %vm3629_vm3, %v4223_v49  ;;  %v9020_v49 = vld [vmem:[%s11294_s8 + $0x1e0] sm:$0xff] }
 0x6e7   : > { %5849 = vmatpush.bf16.msrb.mxu0 %v9020_v49  ;;  %v8953_v49 = vld [vmem:[%s11293_s7 + $0x1d0] sm:$0xff] }
 0x6e9   : > { %v3920_v3 = vpop.f32.mrf.mxu3 }
 0x6ea   : > { %v3925_v11 = vadd.f32 %v3920_v3, %v3884_v10  ;;  %v8900_v10 = vld [vmem:[%s11293_s7 + $0x28] sm:$0xff]  ;;  %v9028_v3 = vld [vmem:[%s11294_s8 + $0x220] sm:$0xff] }
 0x6eb   : > { %4398 = vmatpush.bf16.msra.mxu3 %v8900_v10  ;;  %5928 = vmatpush.bf16.msrb.mxu1 %v9028_v3  ;;  %v8934_v10 = vld [vmem:[%s11293_s7 + $0x138] sm:$0xff] }
 0x6ef   : > { %4399 = vmatpush.bf16.msra.mxu3 %v8899_v12  ;;  %v8943_v12 = vld [vmem:[%s11293_s7 + $0x180] sm:$0xff] }
 0x6f1   : > { %v3922_v40 = vpop.f32.mrf.mxu3 }
 0x6f2   : > { %v3926_v61 = vadd.f32 %v3922_v40, %v3885_v39  ;;  %v8913_v40 = vld [vmem:[%s11293_s7 + $0x90] sm:$0xff] }
 0x6f3   : > { %4436 = vmatpush.bf16.msrb.mxu3 %v8898_v27  ;;  %v8929_v39 = vld [vmem:[%s11293_s7 + $0x110] sm:$0xff] }
 0x6f4   : > { %v8933_v27 = vld [vmem:[%s11293_s7 + $0x130] sm:$0xff] }
 0x6f7   : > { %4437 = vmatpush.bf16.msrb.mxu3 %v8897_v41  ;;  %v8954_v41 = vld [vmem:[%s11293_s7 + $0x1d8] sm:$0xff] }
 0x6f9   : > { %v3961_v47 = vpop.f32.mrf.mxu3 }
 0x6fa   : > { %v3966_v58 = vadd.f32 %v3961_v47, %v3925_v11  ;;  %v8914_v11 = vld [vmem:[%s11293_s7 + $0x98] sm:$0xff] }
 0x6fb   : > { %4438 = vmatpush.bf16.msrb.mxu3 %v8896_v18 }
 0x6ff   : > { %4439 = vmatpush.bf16.msrb.mxu3 %v8895_v63  ;;  %v8932_v63 = vld [vmem:[%s11293_s7 + $0x128] sm:$0xff] }
 0x701   : > { %v3963_v30 = vpop.f32.mrf.mxu3 }
 0x702   : > { %v3967_v35 = vadd.f32 %v3963_v30, %v3926_v61  ;;  %v8912_v30 = vld [vmem:[%s11293_s7 + $0x88] sm:$0xff]  ;;  %v8907_v61 = vld [vmem:[%s11293_s7 + $0x60] sm:$0xff] }
 0x709   : > { %v4002_v23 = vpop.f32.mrf.mxu3 }
 0x70a   : > { %v4007_v24 = vadd.f32 %v4002_v23, %v3966_v58 }
 0x711   : > { %v4004_v22 = vpop.f32.mrf.mxu3 }
 0x712   : > { %v4008_v17 = vadd.f32 %v4004_v22, %v3967_v35  ;;  %v8906_v22 = vld [vmem:[%s11293_s7 + $0x58] sm:$0xff]  ;;  %v8928_v35 = vld [vmem:[%s11293_s7 + $0x108] sm:$0xff] }
 0x719   : > { %v4043_v31 = vpop.f32.mrf.mxu3 }
 0x71a   : > { %v4048_v43 = vadd.f32 %v4043_v31, %v4007_v24  ;;  %v8911_v31 = vld [vmem:[%s11293_s7 + $0x80] sm:$0xff] }
 0x721   : > { %v4045_v16 = vpop.f32.mrf.mxu3 }
 0x722   : > { %v4049_v55 = vadd.f32 %v4045_v16, %v4008_v17  ;;  %v8918_v17 = vld [vmem:[%s11293_s7 + $0xb8] sm:$0xff] }
 0x729   : > { %v4084_v7 = vpop.f32.mrf.mxu3 }
 0x72a   : > { %v4089_v59 = vadd.f32 %v4084_v7, %v4048_v43  ;;  %v8905_v7 = vld [vmem:[%s11293_s7 + $0x50] sm:$0xff] }
 0x731   : > { %v4086_v1 = vpop.f32.mrf.mxu3 }
 0x732   : > { %v4090_v60 = vadd.f32 %v4086_v1, %v4049_v55  ;;  %v8904_v1 = vld [vmem:[%s11293_s7 + $0x48] sm:$0xff] }
 0x739   : > { %v4125_v56 = vpop.f32.mrf.mxu3 }
 0x73a   : > { %v4130_v25 = vadd.f32 %v4125_v56, %v4089_v59  ;;  %v8922_v59 = vld [vmem:[%s11293_s7 + $0xd8] sm:$0xff]  ;;  %v8921_v56 = vld [vmem:[%s11293_s7 + $0xd0] sm:$0xff] }
 0x741   : > { %v4127_v6 = vpop.f32.mrf.mxu3 }
 0x742   : > { %v4131_v50 = vadd.f32 %v4127_v6, %v4090_v60 }
 0x749   : > { %v4166_v5 = vpop.f32.mrf.mxu3 }
 0x74a   : > { %v4171_v21 = vadd.f32 %v4166_v5, %v4130_v25  ;;  %v8927_v25 = vld [vmem:[%s11293_s7 + $0x100] sm:$0xff] }
 0x751   : > { %v4168_v62 = vpop.f32.mrf.mxu3 }
 0x752   : > { %v4172_v20 = vadd.f32 %v4168_v62, %v4131_v50  ;;  %v8920_v62 = vld [vmem:[%s11293_s7 + $0xc8] sm:$0xff]  ;;  %v8937_v50 = vld [vmem:[%s11293_s7 + $0x150] sm:$0xff] }
 0x759   : > { %v4207_v44 = vpop.f32.mrf.mxu3 }
 0x75a   : > { %v4212_v2 = vadd.f32 %v4207_v44, %v4171_v21  ;;  %v8919_v44 = vld [vmem:[%s11293_s7 + $0xc0] sm:$0xff]  ;;  %v8917_v21 = vld [vmem:[%s11293_s7 + $0xb0] sm:$0xff] }
 0x761   : > { %v4209_v46 = vpop.f32.mrf.mxu3 }
 0x762   : > { %v4213_v26 = vadd.f32 %v4209_v46, %v4172_v20  ;;  %v8915_v20 = vld [vmem:[%s11293_s7 + $0xa0] sm:$0xff] }
 0x769   : > { %v4248_v57 = vpop.f32.mrf.mxu3 }
 0x76a   : > { %v4253_v34 = vadd.f32 %v4248_v57, %v4212_v2  ;;  %v8938_v57 = vld [vmem:[%s11293_s7 + $0x158] sm:$0xff]  ;;  %v8916_v2 = vld [vmem:[%s11293_s7 + $0xa8] sm:$0xff] }
 0x76c   : > { %v4259_v48 = vadd.f32 %v9097_v36, %v4253_v34 }
 0x76e   : > { %v4261_v37 = vmul.f32 0.2, %v4259_v48 }
 0x770   : > { %v4263_v52 = vmax.f32 %v4259_v48, %v4261_v37 }
 0x771   : > { %v4250_v53 = vpop.f32.mrf.mxu3 }
 0x772   : > { %v4254_v51 = vadd.f32 %v4250_v53, %v4213_v26  ;;  %v8936_v26 = vld [vmem:[%s11293_s7 + $0x148] sm:$0xff]  ;;  %v8926_v53 = vld [vmem:[%s11293_s7 + $0xf8] sm:$0xff] }
 0x774   : > { %v4260_v38 = vadd.f32 %v9097_v36, %v4254_v51  ;;  %v8935_v51 = vld [vmem:[%s11293_s7 + $0x140] sm:$0xff] }
 0x776   : > { %v4262_v8 = vmul.f32 0.2, %v4260_v38 }
 0x778   : > { %v4264_v54 = vmax.f32 %v4260_v38, %v4262_v8  ;;  %v8925_v38 = vld [vmem:[%s11293_s7 + $0xf0] sm:$0xff]  ;;  %v8946_v8 = vld [vmem:[%s11293_s7 + $0x198] sm:$0xff] }
 0x77a   : > { %v4265_v13 = vpack.c.bf16 %v4264_v54, %v4263_v52 }
 0x77c   : > { %4314 = vmatpush.bf16.msrb.mxu2 %v4265_v13  ;;  %v8924_v13 = vld [vmem:[%s11293_s7 + $0xe8] sm:$0xff] }
 0x77f   : > { %7542 = vmatmul.msk.bf16.vlgmr.msrb.gmra.mxu2 %vm4294_vm4, %v8891_v32  ;;  %v8945_v32 = vld [vmem:[%s11293_s7 + $0x190] sm:$0xff] }
 0x780   : > { %4589 = vmatpush.bf16.msra.mxu2 %v8914_v11 }
 0x784   : > { %4590 = vmatpush.bf16.msra.mxu2 %v8913_v40  ;;  %v8931_v40 = vld [vmem:[%s11293_s7 + $0x120] sm:$0xff] }
 0x788   : > { %4591 = vmatpush.bf16.msra.mxu2 %v8912_v30  ;;  %v8942_v30 = vld [vmem:[%s11293_s7 + $0x178] sm:$0xff] }
 0x78c   : > { %4592 = vmatpush.bf16.msra.mxu2 %v8911_v31 }
 0x78f   : > { %7543 = vmatmul.msk.bf16.gmra.mxu2 %vm4294_vm4, %v8892_v45 }
 0x790   : > { %4693 = vmatpush.bf16.msrb.mxu2 %v8922_v59 }
 0x794   : > { %4694 = vmatpush.bf16.msrb.mxu2 %v8921_v56 }
 0x798   : > { %4695 = vmatpush.bf16.msrb.mxu2 %v8920_v62 }
 0x79c   : > { %4696 = vmatpush.bf16.msrb.mxu2 %v8919_v44 }
 0x79f   : > { %7544 = vmatmul.msk.bf16.gmra.mxu2 %vm4294_vm4, %v8893_v33  ;;  %v8944_v33 = vld [vmem:[%s11293_s7 + $0x188] sm:$0xff] }
 0x7af   : > { %7545 = vmatmul.msk.bf16.gmra.mxu2 %vm4294_vm4, %v8894_v9 }
 0x802   : > { %v4316_v47 = vpop.f32.mrf.mxu2 }
 0x803   : > { %v4336_v58 = vpack.c.bf16 %v4316_v47, %v4316_v47  ;;  %v8952_v47 = vld [vmem:[%s11293_s7 + $0x1c8] sm:$0xff] }
 0x805   : > { %v4362_v23 = vunpack.c.l.b16 %v4336_v58 }
 0x807   : > { %v4363_v24 = vpack.c.b16 %v4362_v23, %v4362_v23  ;;  %v8951_v23 = vld [vmem:[%s11293_s7 + $0x1c0] sm:$0xff] }
 0x809   : > { %v4364_v43 = vrot.slane %v4363_v24, 2 }
 0x80a   : > { %v4318_v16 = vpop.f32.mrf.mxu2 }
 0x80b   : > { %7570 = vmatmul.msk.bf16.vlgmr.msra.gmra.mxu3 %vm3433_vm2, %v4364_v43  ;;  %v4337_v55 = vpack.c.bf16 %v4318_v16, %v4318_v16  ;;  %v8940_v16 = vld [vmem:[%s11293_s7 + $0x168] sm:$0xff] }
 0x80c   : > { %4485 = vmatpush.bf16.msra.mxu3 %v8906_v22  ;;  %v8941_v22 = vld [vmem:[%s11293_s7 + $0x170] sm:$0xff] }
 0x80d   : > { %v4505_v34 = vunpack.c.l.b16 %v4337_v55 }
 0x80f   : > { %v4506_v48 = vpack.c.b16 %v4505_v34, %v4505_v34 }
 0x810   : > { %4486 = vmatpush.bf16.msra.mxu3 %v8905_v7 }
 0x811   : > { %v4507_v37 = vrot.slane %v4506_v48, 2 }
 0x812   : > { %v4321_v6 = vpop.f32.mrf.mxu2 }
 0x813   : > { %v10718_v5 = vpack.c.bf16 %v4321_v6, %v4321_v6  ;;  %v8950_v6 = vld [vmem:[%s11293_s7 + $0x1b8] sm:$0xff] }
 0x814   : > { %4487 = vmatpush.bf16.msra.mxu3 %v8904_v1  ;;  %v8939_v1 = vld [vmem:[%s11293_s7 + $0x160] sm:$0xff] }
 0x815   : > { %7662 = vmatmul.msk.bf16.vlgmr.msra.gmra.mxu2 %vm3433_vm2, %v10718_v5  ;;  %v4609_v54 = vunpack.c.l.b16 %v10718_v5  ;;  %v8949_v5 = vld [vmem:[%s11293_s7 + $0x1b0] sm:$0xff] }
 0x816   : > { %4797 = vmatpush.bf16.msra.mxu2 %v8930_v4 }
 0x817   : > { %v4610_v45 = vpack.c.b16 %v4609_v54, %v4609_v54 }
 0x818   : > { %4488 = vmatpush.bf16.msra.mxu3 %v8903_v15  ;;  %v8948_v15 = vld [vmem:[%s11293_s7 + $0x1a8] sm:$0xff] }
 0x819   : > { %v4611_v9 = vrot.slane %v4610_v45, 2 }
 0x81a   : > { %v4323_v14 = vpop.f32.mrf.mxu2  ;;  %4798 = vmatpush.bf16.msra.mxu2 %v8929_v39  ;;  %v9019_v39 = vld [vmem:[%s11294_s8 + $0x1d8] sm:$0xff] }
 0x81b   : > { %7587 = vmatmul.msk.bf16.vlgmr.msrb.gmra.mxu3 %vm3433_vm2, %v4336_v58  ;;  %v10747_v46 = vpack.c.bf16 %v4323_v14, %v4323_v14  ;;  %v8957_v14 = vld [vmem:[%s11293_s7 + $0x1f0] sm:$0xff]  ;;  %5850 = vmatpush.bf16.msrb.mxu0 %v9019_v39 }
 0x81c   : > { %4539 = vmatpush.bf16.msrb.mxu3 %v8910_v28  ;;  %v8947_v28 = vld [vmem:[%s11293_s7 + $0x1a0] sm:$0xff] }
 0x81d   : > { %v4713_v3 = vunpack.c.l.b16 %v10747_v46 }
 0x81e   : > { %4799 = vmatpush.bf16.msra.mxu2 %v8928_v35  ;;  %v8955_v35 = vld [vmem:[%s11293_s7 + $0x1e0] sm:$0xff] }
 0x81f   : > { %v4714_v58 = vpack.c.b16 %v4713_v3, %v4713_v3 }
 0x820   : > { %4540 = vmatpush.bf16.msrb.mxu3 %v8909_v42  ;;  %v8958_v42 = vld [vmem:[%s11293_s7 + $0x1f8] sm:$0xff] }
 0x821   : > { %v4715_v24 = vrot.slane %v4714_v58, 2 }
 0x822   : > { %4800 = vmatpush.bf16.msra.mxu2 %v8927_v25  ;;  %v4326_v60 = vpop.f32.mrf.mxu2 }
 0x823   : > { %v10776_v36 = vpack.c.bf16 %v4326_v60, %v4326_v60 }
 0x824   : > { %4541 = vmatpush.bf16.msrb.mxu3 %v8908_v0 }
 0x825   : > { %7712 = vmatmul.msk.bf16.vlgmr.msrb.gmra.mxu2 %vm3433_vm2, %v10747_v46  ;;  %v4817_v43 = vunpack.c.l.b16 %v10776_v36  ;;  %v8956_v46 = vld [vmem:[%s11293_s7 + $0x1e8] sm:$0xff] }
 0x826   : > { %4901 = vmatpush.bf16.msrb.mxu2 %v8938_v57 }
 0x827   : > { %v4818_v59 = vpack.c.b16 %v4817_v43, %v4817_v43 }
 0x828   : > { %4542 = vmatpush.bf16.msrb.mxu3 %v8907_v61 }
 0x829   : > { %v4819_v56 = vrot.slane %v4818_v59, 2  ;;  %v8975_v59 = vld [vmem:[%s11294_s8 + $0x78] sm:$0xff] }
 0x82a   : > { %4902 = vmatpush.bf16.msrb.mxu2 %v8937_v50  ;;  %v4328_v52 = vpop.f32.mrf.mxu2 }
 0x82b   : > { %7612 = vmatmul.msk.bf16.vlgmr.msra.gmra.mxu3 %vm3433_vm2, %v4337_v55  ;;  %v4341_v29 = vpack.c.bf16 %v4328_v52, %v4328_v52 }
 0x82c   : > { %4643 = vmatpush.bf16.msra.mxu3 %v8918_v17  ;;  %v9027_v17 = vld [vmem:[%s11294_s8 + $0x218] sm:$0xff] }
 0x82d   : > { %v4921_v62 = vunpack.c.l.b16 %v4341_v29  ;;  %5929 = vmatpush.bf16.msrb.mxu1 %v9027_v17  ;;  %v8969_v17 = vld [vmem:[%s11294_s8 + $0x48] sm:$0xff] }
 0x82e   : > { %4903 = vmatpush.bf16.msrb.mxu2 %v8936_v26 }
 0x82f   : > { %v4922_v44 = vpack.c.b16 %v4921_v62, %v4921_v62  ;;  %v8972_v62 = vld [vmem:[%s11294_s8 + $0x60] sm:$0xff] }
 0x830   : > { %4644 = vmatpush.bf16.msra.mxu3 %v8917_v21 }
 0x831   : > { %v4923_v4 = vrot.slane %v4922_v44, 2  ;;  %v8971_v44 = vld [vmem:[%s11294_s8 + $0x58] sm:$0xff] }
 0x832   : > { %4904 = vmatpush.bf16.msrb.mxu2 %v8935_v51  ;;  %v4331_v18 = vpop.f32.mrf.mxu2 }
 0x833   : > { %v4342_v11 = vpack.c.bf16 %v4331_v18, %v4331_v18 }
 0x834   : > { %4645 = vmatpush.bf16.msra.mxu3 %v8916_v2 }
 0x835   : > { %7762 = vmatmul.msk.bf16.vlgmr.msra.gmra.mxu2 %vm3433_vm2, %v10776_v36  ;;  %v5025_v0 = vunpack.c.l.b16 %v4342_v11 }
 0x836   : > { %5005 = vmatpush.bf16.msra.mxu2 %v8946_v8 }
 0x837   : > { %v5026_v61 = vpack.c.b16 %v5025_v0, %v5025_v0 }
 0x838   : > { %4646 = vmatpush.bf16.msra.mxu3 %v8915_v20 }
 0x839   : > { %v5027_v25 = vrot.slane %v5026_v61, 2 }
 0x83a   : > { %5006 = vmatpush.bf16.msra.mxu2 %v8945_v32  ;;  %v4333_v31 = vpop.f32.mrf.mxu2 }
 0x83b   : > { %7637 = vmatmul.msk.bf16.vlgmr.msrb.gmra.mxu3 %vm3433_vm2, %v4507_v37  ;;  %v4343_v7 = vpack.c.bf16 %v4333_v31, %v4333_v31 }
 0x83c   : > { %4747 = vmatpush.bf16.msrb.mxu3 %v8926_v53 }
 0x83d   : > { %v5129_v21 = vunpack.c.l.b16 %v4343_v7 }
 0x83e   : > { %5007 = vmatpush.bf16.msra.mxu2 %v8944_v33 }
 0x83f   : > { %v5130_v57 = vpack.c.b16 %v5129_v21, %v5129_v21 }
 0x840   : > { %4748 = vmatpush.bf16.msrb.mxu3 %v8925_v38 }
 0x841   : > { %v5131_v50 = vrot.slane %v5130_v57, 2  ;;  %v8967_v57 = vld [vmem:[%s11294_s8 + $0x38] sm:$0xff] }
 0x842   : > { %5008 = vmatpush.bf16.msra.mxu2 %v8943_v12 }
 0x844   : > { %4749 = vmatpush.bf16.msrb.mxu3 %v8924_v13 }
 0x845   : > { %7812 = vmatmul.msk.bf16.vlgmr.msrb.gmra.mxu2 %vm3433_vm2, %v4341_v29 }
 0x846   : > { %5109 = vmatpush.bf16.msrb.mxu2 %v8954_v41 }
 0x848   : > { %4750 = vmatpush.bf16.msrb.mxu3 %v8923_v19 }
 0x84a   : > { %5110 = vmatpush.bf16.msrb.mxu2 %v8953_v49 }
 0x84b   : > { %7687 = vmatmul.msk.bf16.vlgmr.msra.gmra.mxu3 %vm3433_vm2, %v4611_v9 }
 0x84c   : > { %4851 = vmatpush.bf16.msra.mxu3 %v8934_v10 }
 0x84e   : > { %5111 = vmatpush.bf16.msrb.mxu2 %v8952_v47 }
 0x850   : > { %4852 = vmatpush.bf16.msra.mxu3 %v8933_v27 }
 0x852   : > { %5112 = vmatpush.bf16.msrb.mxu2 %v8951_v23 }
 0x854   : > { %4853 = vmatpush.bf16.msra.mxu3 %v8932_v63 }
 0x855   : > { %7862 = vmatmul.msk.bf16.vlgmr.msra.gmra.mxu2 %vm3433_vm2, %v4342_v11 }
 0x858   : > { %4854 = vmatpush.bf16.msra.mxu3 %v8931_v40 }
 0x85b   : > { %7737 = vmatmul.msk.bf16.vlgmr.msrb.gmra.mxu3 %vm3433_vm2, %v4715_v24 }
 0x85c   : > { %4955 = vmatpush.bf16.msrb.mxu3 %v8942_v30 }
 0x860   : > { %4956 = vmatpush.bf16.msrb.mxu3 %v8941_v22 }
 0x864   : > { %4957 = vmatpush.bf16.msrb.mxu3 %v8940_v16  ;;  %v9018_v16 = vld [vmem:[%s11294_s8 + $0x1d0] sm:$0xff] }
 0x865   : > { %7912 = vmatmul.msk.bf16.vlgmr.msrb.gmra.mxu2 %vm3433_vm2, %v4343_v7  ;;  %5851 = vmatpush.bf16.msrb.mxu0 %v9018_v16  ;;  %v9026_v7 = vld [vmem:[%s11294_s8 + $0x210] sm:$0xff]  ;;  %v9059_v16 = vld [vmem:[%s11294_s8 + $0x318] sm:$0xff] }
 0x866   : > { %5930 = vmatpush.bf16.msrb.mxu1 %v9026_v7  ;;  %v9058_v7 = vld [vmem:[%s11294_s8 + $0x310] sm:$0xff] }
 0x868   : > { %4958 = vmatpush.bf16.msrb.mxu3 %v8939_v1 }
 0x86b   : > { %7787 = vmatmul.msk.bf16.vlgmr.msra.gmra.mxu3 %vm3433_vm2, %v4819_v56  ;;  %v8974_v56 = vld [vmem:[%s11294_s8 + $0x70] sm:$0xff] }
 0x86c   : > { %5059 = vmatpush.bf16.msra.mxu3 %v8950_v6  ;;  %v9017_v6 = vld [vmem:[%s11294_s8 + $0x1c8] sm:$0xff] }
 0x86d   : > { %5852 = vmatpush.bf16.msrb.mxu0 %v9017_v6  ;;  %v9007_v6 = vld [vmem:[%s11294_s8 + $0x178] sm:$0xff] }
 0x870   : > { %5060 = vmatpush.bf16.msra.mxu3 %v8949_v5  ;;  %v8973_v5 = vld [vmem:[%s11294_s8 + $0x68] sm:$0xff] }
 0x874   : > { %5061 = vmatpush.bf16.msra.mxu3 %v8948_v15 }
 0x878   : > { %5062 = vmatpush.bf16.msra.mxu3 %v8947_v28 }
 0x87b   : > { %7837 = vmatmul.msk.bf16.vlgmr.msrb.gmra.mxu3 %vm3433_vm2, %v4923_v4 }
 0x87c   : > { %5163 = vmatpush.bf16.msrb.mxu3 %v8958_v42  ;;  %v9025_v42 = vld [vmem:[%s11294_s8 + $0x208] sm:$0xff] }
 0x87d   : > { %5931 = vmatpush.bf16.msrb.mxu1 %v9025_v42 }
 0x880   : > { %5164 = vmatpush.bf16.msrb.mxu3 %v8957_v14  ;;  %v9098_v14 = vld [vmem:[%s11297_s11] ss:$0 sm:$0xff] }
 0x884   : > { %5165 = vmatpush.bf16.msrb.mxu3 %v8956_v46  ;;  %v8970_v46 = vld [vmem:[%s11294_s8 + $0x50] sm:$0xff] }
 0x888   : > { %5166 = vmatpush.bf16.msrb.mxu3 %v8955_v35 }
 0x88b   : > { %7887 = vmatmul.msk.bf16.vlgmr.msra.gmra.mxu3 %vm3433_vm2, %v5027_v25 }
 0x88c   : > { %5300 = vmatpush.bf16.msra.mxu3 %v8975_v59  ;;  %v9057_v59 = vld [vmem:[%s11294_s8 + $0x308] sm:$0xff] }
 0x88e   : > { %v4401_v55 = vpop.f32.mrf.mxu3 }
 0x890   : > { %5301 = vmatpush.bf16.msra.mxu3 %v8974_v56 }
 0x894   : > { %5302 = vmatpush.bf16.msra.mxu3 %v8973_v5 }
 0x896   : > { %v4403_v60 = vpop.f32.mrf.mxu3 }
 0x897   : > { %v8968_v60 = vld [vmem:[%s11294_s8 + $0x40] sm:$0xff] }
 0x898   : > { %v4594_v2 = vpop.f32.mrf.mxu2  ;;  %5303 = vmatpush.bf16.msra.mxu3 %v8972_v62  ;;  %v9006_v62 = vld [vmem:[%s11294_s8 + $0x170] sm:$0xff] }
 0x89b   : > { %7937 = vmatmul.msk.bf16.vlgmr.msrb.gmra.mxu3 %vm3433_vm2, %v5131_v50 }
 0x89c   : > { %5304 = vmatpush.bf16.msra.mxu3 %v8971_v44  ;;  %v8999_v44 = vld [vmem:[%s11294_s8 + $0x138] sm:$0xff] }
 0x89e   : > { %v4441_v34 = vpop.f32.mrf.mxu3 }
 0x89f   : > { %v4442_v36 = vadd.f32 %v4441_v34, %v4401_v55  ;;  %v8959_v34 = vld [vmem:[%s11290_s4] sm:$0xff] }
 0x8a0   : > { %v4596_v20 = vpop.f32.mrf.mxu2  ;;  %5305 = vmatpush.bf16.msra.mxu3 %v8970_v46 }
 0x8a1   : > { %v8982_v20 = vld [vmem:[%s11294_s8 + $0xb0] sm:$0xff] }
 0x8a4   : > { %5306 = vmatpush.bf16.msra.mxu3 %v8969_v17  ;;  %v9086_v17 = vld [vmem:[%s11294_s8 + $0x3f0] sm:$0xff] }
 0x8a6   : > { %v4443_v26 = vpop.f32.mrf.mxu3 }
 0x8a7   : > { %v8965_v26 = vld [vmem:[%s11294_s8 + $0x28] sm:$0xff] }
 0x8a8   : > { %v4698_v48 = vpop.f32.mrf.mxu2  ;;  %5307 = vmatpush.bf16.msra.mxu3 %v8968_v60 }
 0x8ae   : > { %v4490_v53 = vpop.f32.mrf.mxu3 }
 0x8af   : > { %v4494_v51 = vadd.f32 %v4490_v53, %v4442_v36  ;;  %v8966_v36 = vld [vmem:[%s11294_s8 + $0x30] sm:$0xff]  ;;  %v8964_v53 = vld [vmem:[%s11294_s8 + $0x20] sm:$0xff] }
 0x8b0   : > { %v4700_v37 = vpop.f32.mrf.mxu2 }
 0x8b1   : > { %v8963_v37 = vld [vmem:[%s11294_s8 + $0x18] sm:$0xff] }
 0x8b6   : > { %v4492_v38 = vpop.f32.mrf.mxu3 }
 0x8b7   : > { %v8979_v38 = vld [vmem:[%s11294_s8 + $0x98] sm:$0xff] }
 0x8b8   : > { %v4802_v8 = vpop.f32.mrf.mxu2 }
 0x8be   : > { %v4544_v52 = vpop.f32.mrf.mxu3 }
 0x8bf   : > { %v4548_v54 = vadd.f32 %v4544_v52, %v4494_v51  ;;  %v8980_v51 = vld [vmem:[%s11294_s8 + $0xa0] sm:$0xff]  ;;  %v8961_v52 = vld [vmem:[%s11294_s8 + $0x8] sm:$0xff] }
 0x8c0   : > { %v4804_v13 = vpop.f32.mrf.mxu2 }
 0x8c1   : > { %v4598_v32 = vadd.f32 %v4594_v2, %v4548_v54  ;;  %v8983_v2 = vld [vmem:[%s11294_s8 + $0xb8] sm:$0xff]  ;;  %v8960_v54 = vld [vmem:[%s11294_s8] sm:$0xff] }
 0x8c2   : > { %5441 = vmatpush.bf16.msrb.mxu3 %v8983_v2  ;;  %v8991_v13 = vld [vmem:[%s11294_s8 + $0xf8] sm:$0xff] }
 0x8c6   : > { %v4546_v29 = vpop.f32.mrf.mxu3  ;;  %5442 = vmatpush.bf16.msrb.mxu3 %v8982_v20 }
 0x8c7   : > { %v8989_v29 = vld [vmem:[%s11294_s8 + $0xe8] sm:$0xff] }
 0x8c8   : > { %v4906_v45 = vpop.f32.mrf.mxu2 }
 0x8ce   : > { %v4648_v19 = vpop.f32.mrf.mxu3 }
 0x8cf   : > { %v4652_v33 = vadd.f32 %v4648_v19, %v4598_v32  ;;  %v8990_v32 = vld [vmem:[%s11294_s8 + $0xf0] sm:$0xff]  ;;  %v9055_v19 = vld [vmem:[%s11294_s8 + $0x2f8] sm:$0xff] }
 0x8d0   : > { %v4908_v9 = vpop.f32.mrf.mxu2 }
 0x8d1   : > { %v4702_v10 = vadd.f32 %v4698_v48, %v4652_v33  ;;  %v8981_v48 = vld [vmem:[%s11294_s8 + $0xa8] sm:$0xff]  ;;  %v8988_v33 = vld [vmem:[%s11294_s8 + $0xe0] sm:$0xff]  ;;  %v9054_v9 = vld [vmem:[%s11294_s8 + $0x2f0] sm:$0xff] }
 0x8d2   : > { %5443 = vmatpush.bf16.msrb.mxu3 %v8981_v48 }
 0x8d6   : > { %v4650_v12 = vpop.f32.mrf.mxu3  ;;  %5444 = vmatpush.bf16.msrb.mxu3 %v8980_v51  ;;  %v9083_v51 = vld [vmem:[%s11294_s8 + $0x3d8] sm:$0xff] }
 0x8d7   : > { %v9053_v12 = vld [vmem:[%s11294_s8 + $0x2e8] sm:$0xff] }
 0x8d8   : > { %v5010_v27 = vpop.f32.mrf.mxu2 }
 0x8da   : > { %5445 = vmatpush.bf16.msrb.mxu3 %v8979_v38 }
 0x8de   : > { %v4752_v41 = vpop.f32.mrf.mxu3 }
 0x8df   : > { %v4756_v18 = vadd.f32 %v4752_v41, %v4702_v10  ;;  %v8987_v10 = vld [vmem:[%s11294_s8 + $0xd8] sm:$0xff]  ;;  %v9052_v41 = vld [vmem:[%s11294_s8 + $0x2e0] sm:$0xff] }
 0x8e0   : > { %v5012_v63 = vpop.f32.mrf.mxu2 }
 0x8e1   : > { %v4806_v49 = vadd.f32 %v4802_v8, %v4756_v18  ;;  %v8962_v8 = vld [vmem:[%s11294_s8 + $0x10] sm:$0xff]  ;;  %v9024_v18 = vld [vmem:[%s11294_s8 + $0x200] sm:$0xff]  ;;  %v9063_v63 = vld [vmem:[%s11294_s8 + $0x338] sm:$0xff] }
 0x8e2   : > { %5932 = vmatpush.bf16.msrb.mxu1 %v9024_v18  ;;  %v9036_v18 = vld [vmem:[%s11294_s8 + $0x260] sm:$0xff] }
 0x8e6   : > { %v4754_v3 = vpop.f32.mrf.mxu3  ;;  %6254 = vmatpush.bf16.msra.mxu1 %v9063_v63 }
 0x8e7   : > { %v8978_v3 = vld [vmem:[%s11294_s8 + $0x90] sm:$0xff] }
 0x8e8   : > { %v5114_v11 = vpop.f32.mrf.mxu2  ;;  %5446 = vmatpush.bf16.msrb.mxu3 %v8978_v3  ;;  %v9035_v3 = vld [vmem:[%s11294_s8 + $0x258] sm:$0xff] }
 0x8ee   : > { %v4856_v40 = vpop.f32.mrf.mxu3 }
 0x8ef   : > { %v4860_v47 = vadd.f32 %v4856_v40, %v4806_v49  ;;  %v8985_v49 = vld [vmem:[%s11294_s8 + $0xc8] sm:$0xff]  ;;  %v9062_v40 = vld [vmem:[%s11294_s8 + $0x330] sm:$0xff] }
 0x8f0   : > { %v5116_v58 = vpop.f32.mrf.mxu2  ;;  %6255 = vmatpush.bf16.msra.mxu1 %v9062_v40  ;;  %v9034_v40 = vld [vmem:[%s11294_s8 + $0x250] sm:$0xff] }
 0x8f1   : > { %v4910_v30 = vadd.f32 %v4906_v45, %v4860_v47  ;;  %v9016_v45 = vld [vmem:[%s11294_s8 + $0x1c0] sm:$0xff]  ;;  %v8977_v58 = vld [vmem:[%s11294_s8 + $0x88] sm:$0xff] }
 0x8f2   : > { %5853 = vmatpush.bf16.msrb.mxu0 %v9016_v45  ;;  %v8984_v47 = vld [vmem:[%s11294_s8 + $0xc0] sm:$0xff]  ;;  %5447 = vmatpush.bf16.msrb.mxu3 %v8977_v58  ;;  %v9038_v45 = vld [vmem:[%s11294_s8 + $0x270] sm:$0xff]  ;;  %v9033_v58 = vld [vmem:[%s11294_s8 + $0x248] sm:$0xff] }
 0x8f6   : > { %v4858_v23 = vpop.f32.mrf.mxu3  ;;  %6173 = vmatpush.bf16.msra.mxu0 %v9055_v19 }
 0x8f7   : > { %v9061_v23 = vld [vmem:[%s11294_s8 + $0x328] sm:$0xff] }
 0x8f8   : > { %6256 = vmatpush.bf16.msra.mxu1 %v9061_v23  ;;  %v9032_v23 = vld [vmem:[%s11294_s8 + $0x240] sm:$0xff] }
 0x8fa   : > { %6174 = vmatpush.bf16.msra.mxu0 %v9054_v9  ;;  %v9015_v9 = vld [vmem:[%s11294_s8 + $0x1b8] sm:$0xff] }
 0x8fe   : > { %v4960_v24 = vpop.f32.mrf.mxu3  ;;  %6175 = vmatpush.bf16.msra.mxu0 %v9053_v12  ;;  %v9037_v12 = vld [vmem:[%s11294_s8 + $0x268] sm:$0xff] }
 0x8ff   : > { %v4964_v22 = vadd.f32 %v4960_v24, %v4910_v30  ;;  %v9050_v30 = vld [vmem:[%s11294_s8 + $0x2d0] sm:$0xff]  ;;  %v8976_v24 = vld [vmem:[%s11294_s8 + $0x80] sm:$0xff] }
 0x900   : > { %5448 = vmatpush.bf16.msrb.mxu3 %v8976_v24  ;;  %v9071_v24 = vld [vmem:[%s11294_s8 + $0x378] sm:$0xff] }
 0x901   : > { %v5014_v31 = vadd.f32 %v5010_v27, %v4964_v22  ;;  %v8986_v27 = vld [vmem:[%s11294_s8 + $0xd0] sm:$0xff]  ;;  %v9049_v22 = vld [vmem:[%s11294_s8 + $0x2c8] sm:$0xff] }
 0x902   : > { %6176 = vmatpush.bf16.msra.mxu0 %v9052_v41  ;;  %v9014_v41 = vld [vmem:[%s11294_s8 + $0x1b0] sm:$0xff] }
 0x906   : > { %v4962_v43 = vpop.f32.mrf.mxu3 }
 0x907   : > { %v9048_v43 = vld [vmem:[%s11294_s8 + $0x2c0] sm:$0xff] }
 0x90e   : > { %v5064_v1 = vpop.f32.mrf.mxu3 }
 0x90f   : > { %v5068_v28 = vadd.f32 %v5064_v1, %v5014_v31  ;;  %v9060_v31 = vld [vmem:[%s11294_s8 + $0x320] sm:$0xff] }
 0x910   : > { %6257 = vmatpush.bf16.msra.mxu1 %v9060_v31  ;;  %v9056_v1 = vld [vmem:[%s11294_s8 + $0x300] sm:$0xff]  ;;  %v9070_v31 = vld [vmem:[%s11294_s8 + $0x370] sm:$0xff] }
 0x911   : > { %v5118_v4 = vadd.f32 %v5114_v11, %v5068_v28  ;;  %v9051_v11 = vld [vmem:[%s11294_s8 + $0x2d8] sm:$0xff] }
 0x912   : > { %6177 = vmatpush.bf16.msra.mxu0 %v9051_v11  ;;  %v9012_v11 = vld [vmem:[%s11294_s8 + $0x1a0] sm:$0xff] }
 0x914   : > { %6258 = vmatpush.bf16.msra.mxu1 %v9059_v16  ;;  %v9047_v16 = vld [vmem:[%s11294_s8 + $0x2b8] sm:$0xff] }
 0x916   : > { %v5066_v15 = vpop.f32.mrf.mxu3  ;;  %6178 = vmatpush.bf16.msra.mxu0 %v9050_v30  ;;  %v9010_v30 = vld [vmem:[%s11294_s8 + $0x190] sm:$0xff] }
 0x918   : > { %6259 = vmatpush.bf16.msra.mxu1 %v9058_v7  ;;  %v9069_v7 = vld [vmem:[%s11294_s8 + $0x368] sm:$0xff] }
 0x91a   : > { %6179 = vmatpush.bf16.msra.mxu0 %v9049_v22  ;;  %v9009_v22 = vld [vmem:[%s11294_s8 + $0x188] sm:$0xff] }
 0x91c   : > { %6260 = vmatpush.bf16.msra.mxu1 %v9057_v59 }
 0x91e   : > { %v5168_v0 = vpop.f32.mrf.mxu3  ;;  %6180 = vmatpush.bf16.msra.mxu0 %v9048_v43  ;;  %v9008_v43 = vld [vmem:[%s11294_s8 + $0x180] sm:$0xff] }
 0x91f   : > { %v5172_v39 = vadd.f32 %v5168_v0, %v5118_v4  ;;  %v9005_v4 = vld [vmem:[%s11294_s8 + $0x168] sm:$0xff]  ;;  %v9087_v0 = vld [vmem:[%s11294_s8 + $0x3f8] sm:$0xff] }
 0x920   : > { %6261 = vmatpush.bf16.msra.mxu1 %v9056_v1  ;;  %v9046_v1 = vld [vmem:[%s11294_s8 + $0x2b0] sm:$0xff] }
 0x921   : > { %v5177_v61 = vadd.f32 %v9098_v14, %v5172_v39 }
 0x923   : > { %v5178_v35 = vmul.f32 0.2, %v5177_v61 }
 0x925   : > { %v5179_v25 = vmax.f32 %v5177_v61, %v5178_v35  ;;  %v8998_v61 = vld [vmem:[%s11294_s8 + $0x130] sm:$0xff]  ;;  %v9004_v35 = vld [vmem:[%s11294_s8 + $0x160] sm:$0xff] }
 0x926   : > { %v5170_v55 = vpop.f32.mrf.mxu3 }
 0x927   : > { %v5180_v21 = vpack.c.bf16 %v5179_v25, %v5179_v25  ;;  %v8997_v55 = vld [vmem:[%s11294_s8 + $0x128] sm:$0xff] }
 0x929   : > { %v5194_v50 = vsel %vm5192_vm5, %v5180_v21, 0  ;;  %v9003_v21 = vld [vmem:[%s11294_s8 + $0x158] sm:$0xff] }
 0x92a   : > { %5203 = vmatpush.bf16.msra.mxu2 %v5194_v50  ;;  %v8996_v50 = vld [vmem:[%s11294_s8 + $0x120] sm:$0xff] }
 0x92d   : > { %7942 = vmatmul.msk.bf16.vlgmr.msra.gmra.mxu2 %vm5188_vm6, %v8959_v34  ;;  %v9002_v34 = vld [vmem:[%s11294_s8 + $0x150] sm:$0xff] }
 0x92e   : > { %5361 = vmatpush.bf16.msrb.mxu2 %v8967_v57  ;;  %v9085_v57 = vld [vmem:[%s11294_s8 + $0x3e8] sm:$0xff] }
 0x932   : > { %5362 = vmatpush.bf16.msrb.mxu2 %v8966_v36  ;;  %v9084_v36 = vld [vmem:[%s11294_s8 + $0x3e0] sm:$0xff] }
 0x936   : > { %5363 = vmatpush.bf16.msrb.mxu2 %v8965_v26  ;;  %v8995_v26 = vld [vmem:[%s11294_s8 + $0x118] sm:$0xff] }
 0x93a   : > { %5364 = vmatpush.bf16.msrb.mxu2 %v8964_v53  ;;  %v9001_v53 = vld [vmem:[%s11294_s8 + $0x148] sm:$0xff] }
 0x93e   : > { %5365 = vmatpush.bf16.msrb.mxu2 %v8963_v37 }
 0x942   : > { %5366 = vmatpush.bf16.msrb.mxu2 %v8962_v8  ;;  %v8994_v8 = vld [vmem:[%s11294_s8 + $0x110] sm:$0xff] }
 0x946   : > { %5367 = vmatpush.bf16.msrb.mxu2 %v8961_v52  ;;  %v9000_v52 = vld [vmem:[%s11294_s8 + $0x140] sm:$0xff] }
 0x94a   : > { %5368 = vmatpush.bf16.msrb.mxu2 %v8960_v54  ;;  %v9082_v54 = vld [vmem:[%s11294_s8 + $0x3d0] sm:$0xff] }
 0x94e   : > { %5522 = vmatpush.bf16.msra.mxu2 %v8991_v13  ;;  %v9039_v13 = vld [vmem:[%s11294_s8 + $0x278] sm:$0xff] }
 0x952   : > { %5523 = vmatpush.bf16.msra.mxu2 %v8990_v32  ;;  %v8993_v32 = vld [vmem:[%s11294_s8 + $0x108] sm:$0xff] }
 0x956   : > { %5524 = vmatpush.bf16.msra.mxu2 %v8989_v29  ;;  %v9081_v29 = vld [vmem:[%s11294_s8 + $0x3c8] sm:$0xff] }
 0x95a   : > { %5525 = vmatpush.bf16.msra.mxu2 %v8988_v33  ;;  %v8992_v33 = vld [vmem:[%s11294_s8 + $0x100] sm:$0xff] }
 0x95e   : > { %5526 = vmatpush.bf16.msra.mxu2 %v8987_v10  ;;  %v9080_v10 = vld [vmem:[%s11294_s8 + $0x3c0] sm:$0xff] }
 0x962   : > { %5527 = vmatpush.bf16.msra.mxu2 %v8986_v27 }
 0x966   : > { %5528 = vmatpush.bf16.msra.mxu2 %v8985_v49  ;;  %v9013_v49 = vld [vmem:[%s11294_s8 + $0x1a8] sm:$0xff] }
 0x96a   : > { %5529 = vmatpush.bf16.msra.mxu2 %v8984_v47  ;;  %v9011_v47 = vld [vmem:[%s11294_s8 + $0x198] sm:$0xff] }
 0x9b0   : > { %v5205_v56 = vpop.f32.mrf.mxu2 }
 0x9b1   : > { %v5210_v5 = vpack.c.bf16 %v5205_v56, %v5205_v56  ;;  %v9068_v56 = vld [vmem:[%s11294_s8 + $0x360] sm:$0xff] }
 0x9b3   : > { %v5246_v15 = vunpack.c.l.b16 %v5210_v5  ;;  %5369 = vmatmul.bf16.vlgmr.msrb.gmra.mxu2 %v5210_v5  ;;  %v9067_v5 = vld [vmem:[%s11294_s8 + $0x358] sm:$0xff] }
 0x9b4   : > { %5684 = vmatpush.bf16.msrb.mxu2 %v9007_v6  ;;  %v9045_v6 = vld [vmem:[%s11294_s8 + $0x2a8] sm:$0xff] }
 0x9b5   : > { %v11066_v28 = vpack.c.b16 %v5246_v15, %v5246_v15  ;;  %v9044_v15 = vld [vmem:[%s11294_s8 + $0x2a0] sm:$0xff] }
 0x9b7   : > { %v11072_v42 = vshrl.u32 %v11066_v28, 16  ;;  %v5391_v48 = vrot.slane %v11066_v28, 1  ;;  %v5553_v27 = vrot.slane %v11066_v28, 2  ;;  %v5715_v59 = vrot.slane %v11066_v28, 3  ;;  %v9043_v28 = vld [vmem:[%s11294_s8 + $0x298] sm:$0xff] }
 0x9b8   : > { %5685 = vmatpush.bf16.msrb.mxu2 %v9006_v62  ;;  %v5207_v14 = vpop.f32.mrf.mxu2  ;;  %v9066_v62 = vld [vmem:[%s11294_s8 + $0x350] sm:$0xff] }
 0x9b9   : > { %5308 = vmatmul.bf16.vlgmr.msra.gmra.mxu3 %v11072_v42  ;;  %v5211_v39 = vpack.c.bf16 %v5207_v14, %v5207_v14  ;;  %v5796_v46 = vrot.slane %v11072_v42, 3  ;;  %v5472_v60 = vrot.slane %v11072_v42, 1  ;;  %v5634_v19 = vrot.slane %v11072_v42, 2  ;;  %v9042_v42 = vld [vmem:[%s11294_s8 + $0x290] sm:$0xff]  ;;  %v9041_v14 = vld [vmem:[%s11294_s8 + $0x288] sm:$0xff] }
 0x9ba   : > { %5603 = vmatpush.bf16.msra.mxu3 %v8999_v44  ;;  %v9065_v44 = vld [vmem:[%s11294_s8 + $0x348] sm:$0xff] }
 0x9bb   : > { %5854 = vmatmul.bf16.vlgmr.msrb.gmra.mxu0 %v5796_v46  ;;  %5933 = vmatmul.bf16.vlgmr.msrb.gmra.mxu1 %v5211_v39  ;;  %v5957_v25 = vunpack.c.l.b16 %v5211_v39  ;;  %v9040_v39 = vld [vmem:[%s11294_s8 + $0x280] sm:$0xff]  ;;  %v9079_v46 = vld [vmem:[%s11294_s8 + $0x3b8] sm:$0xff] }
 0x9bc   : > { %5686 = vmatpush.bf16.msrb.mxu2 %v9005_v4  ;;  %6497 = vmatpush.bf16.msrb.mxu0 %v9087_v0  ;;  %v9064_v4 = vld [vmem:[%s11294_s8 + $0x340] sm:$0xff] }
 0x9bd   : > { %v11101_v2 = vpack.c.b16 %v5957_v25, %v5957_v25  ;;  %v9076_v25 = vld [vmem:[%s11294_s8 + $0x3a0] sm:$0xff] }
 0x9be   : > { %5604 = vmatpush.bf16.msra.mxu3 %v8998_v61 }
 0x9bf   : > { %v11113_v20 = vshrl.u32 %v11101_v2, 16  ;;  %v6204_v37 = vrot.slane %v11101_v2, 2  ;;  %v6042_v61 = vrot.slane %v11101_v2, 1 }
 0x9c0   : > { %5687 = vmatpush.bf16.msrb.mxu2 %v9004_v35  ;;  %6498 = vmatpush.bf16.msrb.mxu0 %v9086_v17  ;;  %v9078_v35 = vld [vmem:[%s11294_s8 + $0x3b0] sm:$0xff]  ;;  %v9077_v17 = vld [vmem:[%s11294_s8 + $0x3a8] sm:$0xff] }
 0x9c1   : > { %v6123_v38 = vrot.slane %v11113_v20, 1  ;;  %v6447_v63 = vrot.slane %v11113_v20, 3  ;;  %v6285_v0 = vrot.slane %v11113_v20, 2 }
 0x9c2   : > { %5605 = vmatpush.bf16.msra.mxu3 %v8997_v55  ;;  %v9075_v55 = vld [vmem:[%s11294_s8 + $0x398] sm:$0xff] }
 0x9c3   : > { %5530 = vmatmul.bf16.vlgmr.msra.gmra.mxu2 %v5472_v60  ;;  %v9072_v60 = vld [vmem:[%s11294_s8 + $0x380] sm:$0xff] }
 0x9c4   : > { %5688 = vmatpush.bf16.msrb.mxu2 %v9003_v21  ;;  %6499 = vmatpush.bf16.msrb.mxu0 %v9085_v57  ;;  %v9074_v21 = vld [vmem:[%s11294_s8 + $0x390] sm:$0xff]  ;;  %v9073_v57 = vld [vmem:[%s11294_s8 + $0x388] sm:$0xff] }
 0x9c6   : > { %5606 = vmatpush.bf16.msra.mxu3 %v8996_v50  ;;  %v6366_v50 = vrot.slane %v11101_v2, 3 }
 0x9c8   : > { %5689 = vmatpush.bf16.msrb.mxu2 %v9002_v34  ;;  %6500 = vmatpush.bf16.msrb.mxu0 %v9084_v36 }
 0x9c9   : > { %5449 = vmatmul.bf16.vlgmr.msrb.gmra.mxu3 %v5391_v48 }
 0x9ca   : > { %5607 = vmatpush.bf16.msra.mxu3 %v8995_v26 }
 0x9cb   : > { %6181 = vmatmul.bf16.vlgmr.msra.gmra.mxu0 %v6123_v38  ;;  %6262 = vmatmul.bf16.vlgmr.msra.gmra.mxu1 %v6204_v37 }
 0x9cc   : > { %5690 = vmatpush.bf16.msrb.mxu2 %v9001_v53  ;;  %6501 = vmatpush.bf16.msrb.mxu0 %v9083_v51 }
 0x9ce   : > { %5608 = vmatpush.bf16.msra.mxu3 %v8994_v8 }
 0x9d0   : > { %5691 = vmatpush.bf16.msrb.mxu2 %v9000_v52  ;;  %6502 = vmatpush.bf16.msrb.mxu0 %v9082_v54 }
 0x9d2   : > { %5609 = vmatpush.bf16.msra.mxu3 %v8993_v32 }
 0x9d3   : > { %5692 = vmatmul.bf16.vlgmr.msrb.gmra.mxu2 %v5634_v19 }
 0x9d4   : > { %6011 = vmatpush.bf16.msra.mxu2 %v9039_v13  ;;  %6503 = vmatpush.bf16.msrb.mxu0 %v9081_v29 }
 0x9d6   : > { %5610 = vmatpush.bf16.msra.mxu3 %v8992_v33 }
 0x9d8   : > { %6012 = vmatpush.bf16.msra.mxu2 %v9038_v45  ;;  %6504 = vmatpush.bf16.msrb.mxu0 %v9080_v10 }
 0x9d9   : > { %5611 = vmatmul.bf16.vlgmr.msra.gmra.mxu3 %v5553_v27 }
 0x9da   : > { %5765 = vmatpush.bf16.msrb.mxu3 %v9015_v9 }
 0x9db   : > { %6505 = vmatmul.bf16.vlgmr.msrb.gmra.mxu0 %v6447_v63 }
 0x9dc   : > { %6013 = vmatpush.bf16.msra.mxu2 %v9037_v12 }
 0x9de   : > { %5766 = vmatpush.bf16.msrb.mxu3 %v9014_v41 }
 0x9e0   : > { %6014 = vmatpush.bf16.msra.mxu2 %v9036_v18 }
 0x9e2   : > { %5767 = vmatpush.bf16.msrb.mxu3 %v9013_v49 }
 0x9e4   : > { %6015 = vmatpush.bf16.msra.mxu2 %v9035_v3 }
 0x9e6   : > { %5768 = vmatpush.bf16.msrb.mxu3 %v9012_v11 }
 0x9e8   : > { %6016 = vmatpush.bf16.msra.mxu2 %v9034_v40 }
 0x9ea   : > { %5769 = vmatpush.bf16.msrb.mxu3 %v9011_v47 }
 0x9ec   : > { %6017 = vmatpush.bf16.msra.mxu2 %v9033_v58 }
 0x9ee   : > { %5770 = vmatpush.bf16.msrb.mxu3 %v9010_v30 }
 0x9f0   : > { %6018 = vmatpush.bf16.msra.mxu2 %v9032_v23 }
 0x9f2   : > { %5771 = vmatpush.bf16.msrb.mxu3 %v9009_v22 }
 0x9f3   : > { %6019 = vmatmul.bf16.vlgmr.msra.gmra.mxu2 %v11113_v20 }
 0x9f4   : > { %6335 = vmatpush.bf16.msrb.mxu2 %v9071_v24 }
 0x9f6   : > { %5772 = vmatpush.bf16.msrb.mxu3 %v9008_v43 }
 0x9f8   : > { %6336 = vmatpush.bf16.msrb.mxu2 %v9070_v31 }
 0x9f9   : > { %5773 = vmatmul.bf16.vlgmr.msrb.gmra.mxu3 %v5715_v59 }
 0x9fa   : > { %6092 = vmatpush.bf16.msra.mxu3 %v9047_v16 }
 0x9fc   : > { %6337 = vmatpush.bf16.msrb.mxu2 %v9069_v7 }
 0x9fe   : > { %6093 = vmatpush.bf16.msra.mxu3 %v9046_v1 }
 0xa00   : > { %6338 = vmatpush.bf16.msrb.mxu2 %v9068_v56 }
 0xa02   : > { %6094 = vmatpush.bf16.msra.mxu3 %v9045_v6 }
 0xa04   : > { %6339 = vmatpush.bf16.msrb.mxu2 %v9067_v5 }
 0xa06   : > { %6095 = vmatpush.bf16.msra.mxu3 %v9044_v15  ;;  %v6511_v15 = vld [vmem:[%s11298_s12] sm:$0x1] }
 0xa08   : > { %6340 = vmatpush.bf16.msrb.mxu2 %v9066_v62 }
 0xa0a   : > { %6096 = vmatpush.bf16.msra.mxu3 %v9043_v28 }
 0xa0c   : > { %6341 = vmatpush.bf16.msrb.mxu2 %v9065_v44 }
 0xa0e   : > { %6097 = vmatpush.bf16.msra.mxu3 %v9042_v42 }
 0xa10   : > { %6342 = vmatpush.bf16.msrb.mxu2 %v9064_v4 }
 0xa12   : > { %6098 = vmatpush.bf16.msra.mxu3 %v9041_v14 }
 0xa13   : > { %6343 = vmatmul.bf16.vlgmr.msrb.gmra.mxu2 %v6285_v0 }
 0xa16   : > { %6099 = vmatpush.bf16.msra.mxu3 %v9040_v39 }
 0xa19   : > { %6100 = vmatmul.bf16.vlgmr.msra.gmra.mxu3 %v6042_v61 }
 0xa1a   : > { %6416 = vmatpush.bf16.msrb.mxu3 %v9079_v46 }
 0xa1e   : > { %6417 = vmatpush.bf16.msrb.mxu3 %v9078_v35 }
 0xa22   : > { %6418 = vmatpush.bf16.msrb.mxu3 %v9077_v17 }
 0xa26   : > { %6419 = vmatpush.bf16.msrb.mxu3 %v9076_v25 }
 0xa2a   : > { %6420 = vmatpush.bf16.msrb.mxu3 %v9075_v55 }
 0xa2e   : > { %6421 = vmatpush.bf16.msrb.mxu3 %v9074_v21 }
 0xa32   : > { %6422 = vmatpush.bf16.msrb.mxu3 %v9073_v57 }
 0xa36   : > { %6423 = vmatpush.bf16.msrb.mxu3 %v9072_v60  ;;  %v5370_v34 = vpop.f32.mrf.mxu2 }
 0xa38   : > { %v5855_v36 = vpop.f32.mrf.mxu0  ;;  %v5934_v20 = vpop.f32.mrf.mxu1 }
 0xa39   : > { %6424 = vmatmul.bf16.vlgmr.msrb.gmra.mxu3 %v6366_v50 }
 0xa3c   : > { %v5309_v26 = vpop.f32.mrf.mxu3 }
 0xa3d   : > { %v5371_v48 = vadd.f32 %v5370_v34, %v5309_v26 }
 0xa3e   : > { %v5372_v53 = vpop.f32.mrf.mxu2 }
 0xa40   : > { %v5857_v51 = vpop.f32.mrf.mxu0  ;;  %v5936_v37 = vpop.f32.mrf.mxu1 }
 0xa44   : > { %v5311_v38 = vpop.f32.mrf.mxu3 }
 0xa46   : > { %v5531_v8 = vpop.f32.mrf.mxu2 }
 0xa48   : > { %v6182_v52 = vpop.f32.mrf.mxu0  ;;  %v6263_v54 = vpop.f32.mrf.mxu1 }
 0xa4c   : > { %v5450_v13 = vpop.f32.mrf.mxu3 }
 0xa4d   : > { %v5454_v32 = vadd.f32 %v5450_v13, %v5371_v48 }
 0xa4e   : > { %v5533_v29 = vpop.f32.mrf.mxu2 }
 0xa4f   : > { %v5535_v45 = vadd.f32 %v5531_v8, %v5454_v32 }
 0xa50   : > { %v6184_v19 = vpop.f32.mrf.mxu0  ;;  %v6265_v33 = vpop.f32.mrf.mxu1 }
 0xa54   : > { %v5452_v2 = vpop.f32.mrf.mxu3 }
 0xa56   : > { %v5693_v9 = vpop.f32.mrf.mxu2 }
 0xa58   : > { %v6506_v10 = vpop.f32.mrf.mxu0 }
 0xa5c   : > { %v5612_v12 = vpop.f32.mrf.mxu3 }
 0xa5d   : > { %v5616_v27 = vadd.f32 %v5612_v12, %v5535_v45 }
 0xa5e   : > { %v5695_v41 = vpop.f32.mrf.mxu2 }
 0xa5f   : > { %v5697_v18 = vadd.f32 %v5693_v9, %v5616_v27 }
 0xa60   : > { %v6508_v63 = vpop.f32.mrf.mxu0 }
 0xa64   : > { %v5614_v49 = vpop.f32.mrf.mxu3 }
 0xa76   : > { %v6020_v3 = vpop.f32.mrf.mxu2 }
 0xa7c   : > { %v5774_v11 = vpop.f32.mrf.mxu3 }
 0xa7d   : > { %v5778_v40 = vadd.f32 %v5774_v11, %v5697_v18 }
 0xa7e   : > { %v6022_v47 = vpop.f32.mrf.mxu2 }
 0xa7f   : > { %v5859_v58 = vadd.f32 %v5855_v36, %v5778_v40 }
 0xa81   : > { %v5938_v30 = vadd.f32 %v5934_v20, %v5859_v58 }
 0xa83   : > { %v6024_v16 = vadd.f32 %v6020_v3, %v5938_v30 }
 0xa84   : > { %v5776_v23 = vpop.f32.mrf.mxu3 }
 0xa96   : > { %v6344_v24 = vpop.f32.mrf.mxu2 }
 0xa9c   : > { %v6101_v22 = vpop.f32.mrf.mxu3 }
 0xa9d   : > { %v6105_v7 = vadd.f32 %v6101_v22, %v6024_v16 }
 0xa9e   : > { %v6346_v31 = vpop.f32.mrf.mxu2 }
 0xa9f   : > { %v6186_v59 = vadd.f32 %v6182_v52, %v6105_v7 }
 0xaa1   : > { %v6267_v1 = vadd.f32 %v6263_v54, %v6186_v59 }
 0xaa3   : > { %v6348_v56 = vadd.f32 %v6344_v24, %v6267_v1 }
 0xaa4   : > { %v6103_v43 = vpop.f32.mrf.mxu3 }
 0xabc   : > { %v6425_v6 = vpop.f32.mrf.mxu3 }
 0xabd   : > { %v6429_v5 = vadd.f32 %v6425_v6, %v6348_v56 }
 0xabf   : > { %v6510_v62 = vadd.f32 %v6506_v10, %v6429_v5 }
 0xac1   : > { %v6512_v28 = vadd.f32 %v6511_v15, %v6510_v62 }
 0xac3   : > { %v8695_v44 = vmul.f32 -1.442695, %v6512_v28 }
 0xac4   : > { %v6427_v42 = vpop.f32.mrf.mxu3 }
 0xac5   : > { %9099 = vpow2.f32 %v8695_v44 }
 0xacb   : > { %v9100_v4 = vpop.eup %9099 }
 0xacc   : > { %v6516_v14 = vadd.f32 1.0, %v9100_v4 }
 0xace   : > { %9101 = vrcp.f32 %v6516_v14  ;;  %v6528_v61 = vand.u32 2147483648, %v6516_v14  ;;  %v6526_v17 = vand.u32 2147483647, %v6516_v14  ;;  %vm6522_vm8 = vweird.f32 %v6516_v14 }
 0xad0   : > { %v6529_v55 = vor.u32 1.1754944e-38, %v6528_v61  ;;  %vm6527_vm10 = vcmp.eq.f32.partialorder %v6526_v17, 8.507059e+37 }
 0xad4   : > { %v9102_v0 = vpop.eup %9101 }
 0xad5   : > { %v6518_v39 = vmul.f32 %v9102_v0, %v6516_v14  ;;  %vm6523_vm7 = vweird.f32 %v9102_v0 }
 0xad6   : > { %vm6524_vm9 = vmor %vm6522_vm8, %vm6523_vm7 }
 0xad7   : > { %v6519_v46 = vsub.f32 1.0, %v6518_v39 }
 0xad9   : > { %v6520_v35 = vmul.f32 %v9102_v0, %v6519_v46 }
 0xadb   : > { %v6521_v25 = vadd.f32 %v9102_v0, %v6520_v35 }
 0xadd   : > { %v6525_v21 = vsel %vm6524_vm9, %v9102_v0, %v6521_v25 }
 0xade   : > { %v6530_v57 = vsel %vm6527_vm10, %v6529_v55, %v6525_v21 }
 0xadf   : > { %6532 = vst [vmem:[%s436_s23] sm:$0x1] %v6530_v57 }
 0xae0 PF: > { %s23_s25 = sadd.s32 1, %s9109_s25  }
 0xae1   : > { %p20_p4 = scmp.ge.s32.totalorder %s23_s25, 4  }
 0xae3   :  { %22 = sbr.rel (!%p20_p4) target bundleno = 1 (0x1), region = 162 }

</bundles_post_ra>
